<compile_context>
chip_gen: v6e
topology: v6e:2x2x1
jax: 0.10.0
libtpu: 0.0.40
codegen_flags: <defaults>
</compile_context>

<pallas_src>
import jax
import jax.numpy as jnp
from jax.experimental import pallas as pl
from jax.experimental.pallas import tpu as pltpu

# ---- small, module-consistent hyperparameters -------------------------------
VOCAB = 512         # stand-in for 30522 (synthetic weights, same semantics)
HIDDEN = 64         # hidden_dim
NHEAD = 8           # nhead (PyTorch default in the module)
HEAD_DIM = HIDDEN // NHEAD
FFN = 128           # dim_feedforward (scaled down from 2048)
NUM_LAYERS = 2      # num_layers (scaled down from 6)
NUM_LABELS = 3
MAX_LEN = 16        # max_length (scaled down from 128)
SEQ = 8
BATCH = 2
LN_EPS = 1e-5
NEG_INF = -1e9


def _layer_norm(x, w, b):
    # PyTorch LayerNorm: biased variance over last dim, eps=1e-5. Kept in f32.
    mu = jnp.mean(x, axis=-1, keepdims=True)
    var = jnp.mean((x - mu) ** 2, axis=-1, keepdims=True)
    return (x - mu) * jax.lax.rsqrt(var + LN_EPS) * w + b


# ---- fused Pallas kernel: pos-enc add + N encoder layers + pool + classify ---
def fused_transformer_kernel(x_ref, mask_ref, pos_ref,
                             wqkv_ref, bqkv_ref, wo_ref,
                             w1_ref, b1_ref, w2_ref, vec_ref,
                             wc_ref, bc_ref,
                             o_ref):
    B, S, H = x_ref.shape
    BS = B * S
    D = HEAD_DIM

    # positional-encoding add; batch folded into sublanes: (B*S, H)
    x = (x_ref[...] + pos_ref[...][None]).reshape(BS, H)

    # src_key_padding_mask = (attention_mask == 0) -> additive key bias,
    # replicated per head; combined attention batch index = h*B + b.
    kb = jnp.where(mask_ref[...] == 0, NEG_INF, 0.0).astype(jnp.float32)   # (B, S)
    kbias = jnp.concatenate([kb[:, None, :]] * NHEAD, axis=0)              # (NHEAD*B,1,S)

    scale = 1.0 / (D ** 0.5)

    def split_heads(m2d):
        # (B*S, H) -> (NHEAD*B, S, D): narrow lane slices, cheap outer concat.
        return jnp.concatenate(
            [m2d[:, h * D:(h + 1) * D].reshape(B, S, D) for h in range(NHEAD)],
            axis=0)

    # Static unroll over layers: weights stay resident in VMEM, the activation
    # never touches HBM between layers; only (B, NUM_LABELS) logits go back.
    for l in range(NUM_LAYERS):
        wqkv = wqkv_ref[l]          # (H, 3H) bf16 = [Wq | Wk | Wv]
        bqkv = bqkv_ref[l]          # (1, 3H) f32
        wo = wo_ref[l]              # (H, H)  bf16
        w1 = w1_ref[l]              # (H, FFN) bf16
        b1 = b1_ref[l]              # (1, FFN) f32
        w2 = w2_ref[l]              # (FFN, H) bf16
        vec = vec_ref[l]            # (6, H) f32: bo, ln1w, ln1b, b2, ln2w, ln2b
        bo, ln1w, ln1b = vec[0:1], vec[1:2], vec[2:3]
        b2, ln2w, ln2b = vec[3:4], vec[4:5], vec[5:6]

        # ---- multi-head self-attention: one lane-dense QKV matmul ----
        qkv = jnp.dot(x.astype(jnp.bfloat16), wqkv,
                      preferred_element_type=jnp.float32) + bqkv           # (BS, 3H)
        qh = split_heads(qkv[:, 0 * H:1 * H]).astype(jnp.bfloat16)         # (NHEAD*B,S,D)
        kh = split_heads(qkv[:, 1 * H:2 * H]).astype(jnp.bfloat16)
        vh = split_heads(qkv[:, 2 * H:3 * H]).astype(jnp.bfloat16)

        # scores: batched over (NHEAD*B)
        s = jax.lax.dot_general(qh, kh, (((2,), (2,)), ((0,), (0,))),
                                preferred_element_type=jnp.float32)
        s = s * scale + kbias                                              # (NHEAD*B,S,S)
        s = s - jnp.max(s, axis=-1, keepdims=True)
        p = jnp.exp(s)
        p = p * pl.reciprocal(jnp.sum(p, axis=-1, keepdims=True), approx=True)

        ctx = jax.lax.dot_general(p.astype(jnp.bfloat16), vh,
                                  (((2,), (1,)), ((0,), (0,))),
                                  preferred_element_type=jnp.float32)      # (NHEAD*B,S,D)

        # pack heads back into the lane axis -> one lane-dense output proj
        ctx2d = jnp.concatenate(
            [ctx[h * B:(h + 1) * B].reshape(BS, D) for h in range(NHEAD)],
            axis=-1)                                                       # (BS, H)
        attn = jnp.dot(ctx2d.astype(jnp.bfloat16), wo,
                       preferred_element_type=jnp.float32) + bo            # (BS, H)

        # dropout1 is identity in eval mode
        x = _layer_norm(x + attn, ln1w, ln1b)

        # ---- feed-forward (ReLU, PyTorch default activation) ----
        h1 = jnp.maximum(jnp.dot(x.astype(jnp.bfloat16), w1,
                                 preferred_element_type=jnp.float32) + b1, 0.0)
        h2 = jnp.dot(h1.astype(jnp.bfloat16), w2,
                     preferred_element_type=jnp.float32) + b2
        # dropout / dropout2 are identity in eval mode
        x = _layer_norm(x + h2, ln2w, ln2b)

    # mean over sequence (== transformer_out.mean(dim=0) on (S,B,H)) + classifier
    pooled = jnp.mean(x.reshape(B, S, H), axis=1)                          # (B, H)
    o_ref[...] = jnp.dot(pooled.astype(jnp.bfloat16), wc_ref[...],
                         preferred_element_type=jnp.float32) + bc_ref[...]


# ---- parameter construction (deterministic, synthetic, kernel-ready) ---------
def init_params(key):
    def nrm(k, shape, scale=0.05):
        return (scale * jax.random.normal(k, shape)).astype(jnp.float32)

    keys = jax.random.split(key, 4 + NUM_LAYERS)
    params = {
        "embedding": nrm(keys[0], (VOCAB, HIDDEN)),
        "pos_enc": nrm(keys[1], (MAX_LEN, HIDDEN)),   # nn.Parameter(max_length, hidden)
        "wc": nrm(keys[2], (HIDDEN, NUM_LABELS)).astype(jnp.bfloat16),
        "bc": nrm(keys[3], (1, NUM_LABELS)),
    }

    wqkv_l, bqkv_l, wo_l, w1_l, b1_l, w2_l, vec_l = ([] for _ in range(7))
    for l in range(NUM_LAYERS):
        lk = jax.random.split(keys[4 + l], 8)
        wq = nrm(lk[0], (HIDDEN, HIDDEN))
        wk = nrm(lk[1], (HIDDEN, HIDDEN))
        wv = nrm(lk[2], (HIDDEN, HIDDEN))
        bqkv = nrm(lk[3], (1, 3 * HIDDEN))
        wo = nrm(lk[4], (HIDDEN, HIDDEN))
        bo = nrm(lk[5], (1, HIDDEN))
        w1 = nrm(lk[6], (HIDDEN, FFN))
        w2 = nrm(lk[7], (FFN, HIDDEN))
        b1 = jnp.zeros((1, FFN), jnp.float32)
        b2 = jnp.zeros((1, HIDDEN), jnp.float32)
        ln1w = jnp.ones((1, HIDDEN), jnp.float32)
        ln1b = jnp.zeros((1, HIDDEN), jnp.float32)
        ln2w = jnp.ones((1, HIDDEN), jnp.float32)
        ln2b = jnp.zeros((1, HIDDEN), jnp.float32)

        # lane-dense packed projections (bf16 for the MXU); biases stay f32
        wqkv_l.append(jnp.concatenate([wq, wk, wv], axis=1).astype(jnp.bfloat16))  # (H,3H)
        bqkv_l.append(bqkv)                                                        # (1,3H)
        wo_l.append(wo.astype(jnp.bfloat16))                                       # (H,H)
        w1_l.append(w1.astype(jnp.bfloat16))
        b1_l.append(b1)
        w2_l.append(w2.astype(jnp.bfloat16))
        vec_l.append(jnp.concatenate([bo, ln1w, ln1b, b2, ln2w, ln2b], axis=0))    # (6,H)

    params.update({
        "wqkv": jnp.stack(wqkv_l),   # (L, H, 3H)      bf16
        "bqkv": jnp.stack(bqkv_l),   # (L, 1, 3H)      f32
        "wo":   jnp.stack(wo_l),     # (L, H, H)       bf16
        "w1":   jnp.stack(w1_l),     # (L, H, FFN)     bf16
        "b1":   jnp.stack(b1_l),     # (L, 1, FFN)     f32
        "w2":   jnp.stack(w2_l),     # (L, FFN, H)     bf16
        "vec":  jnp.stack(vec_l),    # (L, 6, H)       f32
    })
    return params


# ---- forward pass -------------------------------------------------------------
def transformer_classifier_forward(params, input_ids, attention_mask):
    B, S = input_ids.shape

    # TODO(synk): embedding token gather is data-dependent indexing; it stays in
    # plain JAX (an in-kernel gather would need a scalar-prefetch grid + DMA loop).
    x = params["embedding"][input_ids].astype(jnp.float32)        # (B, S, H)
    pos = params["pos_enc"][:S, :]                                # (S, H)
    mask = attention_mask.astype(jnp.int32)                       # (B, S)

    weights = (params["wqkv"], params["bqkv"], params["wo"],
               params["w1"], params["b1"], params["w2"], params["vec"],
               params["wc"], params["bc"])

    # Single kernel step (no grid): the batch is folded into sublanes, all layer
    # weights stay resident in VMEM, only (B, NUM_LABELS) logits are written back.
    # TODO(synk): at real module scale (6 layers, H=768, FFN=2048) add a layer
    # grid axis ("arbitrary") with per-layer weight BlockSpecs and
    # pipeline_mode=pl.Buffered(2) so weights stream through v7x's 64 MiB VMEM.
    out = pl.pallas_call(
        fused_transformer_kernel,
        out_shape=jax.ShapeDtypeStruct((B, NUM_LABELS), jnp.float32),
        compiler_params=pltpu.CompilerParams(vmem_limit_bytes=32 * 1024 * 1024),
    )(x, mask, pos, *weights)
    return out


if __name__ == "__main__":
    key = jax.random.PRNGKey(0)
    pkey, ikey = jax.random.split(key)
    params = init_params(pkey)

    input_ids = jax.random.randint(ikey, (BATCH, SEQ), 0, VOCAB, dtype=jnp.int32)
    attention_mask = jnp.array(
        [[1, 1, 1, 1, 1, 1, 1, 1],
         [1, 1, 1, 1, 1, 0, 0, 0]], dtype=jnp.int32)

    logits = transformer_classifier_forward(params, input_ids, attention_mask)
    logits = jax.block_until_ready(logits)
    assert logits.shape == (BATCH, NUM_LABELS)
    assert bool(jnp.all(jnp.isfinite(logits)))
    print("KERNEL_OK")
</pallas_src>

<mosaic_0001>
module attributes {stable_mosaic.version = 11 : i64} {
  func.func @fused_transformer_kernel(%arg0: memref<2x8x64xf32, #tpu.memory_space<vmem>>, %arg1: memref<2x8xi32, #tpu.memory_space<vmem>>, %arg2: memref<8x64xf32, #tpu.memory_space<vmem>>, %arg3: memref<2x64x192xbf16, #tpu.memory_space<vmem>>, %arg4: memref<2x1x192xf32, #tpu.memory_space<vmem>>, %arg5: memref<2x64x64xbf16, #tpu.memory_space<vmem>>, %arg6: memref<2x64x128xbf16, #tpu.memory_space<vmem>>, %arg7: memref<2x1x128xf32, #tpu.memory_space<vmem>>, %arg8: memref<2x128x64xbf16, #tpu.memory_space<vmem>>, %arg9: memref<2x6x64xf32, #tpu.memory_space<vmem>>, %arg10: memref<64x3xbf16, #tpu.memory_space<vmem>>, %arg11: memref<1x3xf32, #tpu.memory_space<vmem>>, %arg12: memref<2x3xf32, #tpu.memory_space<vmem>>) attributes {dimension_semantics = [], scalar_prefetch = 0 : i64, scratch_operands = 0 : i64, tpu.core_type = #tpu.core_type<tc>} {
    %c0 = arith.constant 0 : index
    %c0_0 = arith.constant 0 : index
    %c0_1 = arith.constant 0 : index
    %0 = vector.load %arg0[%c0, %c0_0, %c0_1] : memref<2x8x64xf32, #tpu.memory_space<vmem>>, vector<2x8x64xf32>
    %c0_2 = arith.constant 0 : index
    %c0_3 = arith.constant 0 : index
    %1 = vector.load %arg2[%c0_2, %c0_3] : memref<8x64xf32, #tpu.memory_space<vmem>>, vector<8x64xf32>
    %2 = vector.shape_cast %1 : vector<8x64xf32> to vector<1x8x64xf32>
    %3 = vector.broadcast %2 : vector<1x8x64xf32> to vector<2x8x64xf32>
    %4 = arith.addf %0, %3 : vector<2x8x64xf32>
    %5 = vector.shape_cast %4 : vector<2x8x64xf32> to vector<16x64xf32>
    %c0_4 = arith.constant 0 : index
    %c0_5 = arith.constant 0 : index
    %6 = vector.load %arg1[%c0_4, %c0_5] : memref<2x8xi32, #tpu.memory_space<vmem>>, vector<2x8xi32>
    %c0_i32 = arith.constant 0 : i32
    %7 = vector.broadcast %c0_i32 : i32 to vector<2x8xi32>
    %8 = arith.cmpi eq, %6, %7 : vector<2x8xi32>
    %cst = arith.constant -1.000000e+09 : f32
    %cst_6 = arith.constant 0.000000e+00 : f32
    %9 = vector.broadcast %cst : f32 to vector<2x8xf32>
    %10 = vector.broadcast %cst_6 : f32 to vector<2x8xf32>
    %11 = arith.select %8, %9, %10 : vector<2x8xi1>, vector<2x8xf32>
    %12 = vector.shape_cast %11 : vector<2x8xf32> to vector<2x1x8xf32>
    %13 = tpu.concatenate %12, %12, %12, %12, %12, %12, %12, %12 in 0 : vector<2x1x8xf32>, vector<2x1x8xf32>, vector<2x1x8xf32>, vector<2x1x8xf32>, vector<2x1x8xf32>, vector<2x1x8xf32>, vector<2x1x8xf32>, vector<2x1x8xf32> -> vector<16x1x8xf32>
    %c0_7 = arith.constant 0 : index
    %c0_8 = arith.constant 0 : index
    %c0_9 = arith.constant 0 : index
    %14 = vector.load %arg3[%c0_7, %c0_8, %c0_9] : memref<2x64x192xbf16, #tpu.memory_space<vmem>>, vector<1x64x192xbf16>
    %15 = vector.shape_cast %14 : vector<1x64x192xbf16> to vector<64x192xbf16>
    %c0_10 = arith.constant 0 : index
    %c0_11 = arith.constant 0 : index
    %c0_12 = arith.constant 0 : index
    %16 = vector.load %arg4[%c0_10, %c0_11, %c0_12] : memref<2x1x192xf32, #tpu.memory_space<vmem>>, vector<1x1x192xf32>
    %17 = vector.shape_cast %16 : vector<1x1x192xf32> to vector<1x192xf32>
    %c0_13 = arith.constant 0 : index
    %c0_14 = arith.constant 0 : index
    %c0_15 = arith.constant 0 : index
    %18 = vector.load %arg5[%c0_13, %c0_14, %c0_15] : memref<2x64x64xbf16, #tpu.memory_space<vmem>>, vector<1x64x64xbf16>
    %19 = vector.shape_cast %18 : vector<1x64x64xbf16> to vector<64x64xbf16>
    %c0_16 = arith.constant 0 : index
    %c0_17 = arith.constant 0 : index
    %c0_18 = arith.constant 0 : index
    %20 = vector.load %arg6[%c0_16, %c0_17, %c0_18] : memref<2x64x128xbf16, #tpu.memory_space<vmem>>, vector<1x64x128xbf16>
    %21 = vector.shape_cast %20 : vector<1x64x128xbf16> to vector<64x128xbf16>
    %c0_19 = arith.constant 0 : index
    %c0_20 = arith.constant 0 : index
    %c0_21 = arith.constant 0 : index
    %22 = vector.load %arg7[%c0_19, %c0_20, %c0_21] : memref<2x1x128xf32, #tpu.memory_space<vmem>>, vector<1x1x128xf32>
    %23 = vector.shape_cast %22 : vector<1x1x128xf32> to vector<1x128xf32>
    %c0_22 = arith.constant 0 : index
    %c0_23 = arith.constant 0 : index
    %c0_24 = arith.constant 0 : index
    %24 = vector.load %arg8[%c0_22, %c0_23, %c0_24] : memref<2x128x64xbf16, #tpu.memory_space<vmem>>, vector<1x128x64xbf16>
    %25 = vector.shape_cast %24 : vector<1x128x64xbf16> to vector<128x64xbf16>
    %c0_25 = arith.constant 0 : index
    %c0_26 = arith.constant 0 : index
    %c0_27 = arith.constant 0 : index
    %26 = vector.load %arg9[%c0_25, %c0_26, %c0_27] : memref<2x6x64xf32, #tpu.memory_space<vmem>>, vector<1x6x64xf32>
    %27 = vector.shape_cast %26 : vector<1x6x64xf32> to vector<6x64xf32>
    %28 = vector.extract_strided_slice %27 {offsets = [0, 0], sizes = [1, 64], strides = [1, 1]} : vector<6x64xf32> to vector<1x64xf32>
    %29 = vector.extract_strided_slice %27 {offsets = [1, 0], sizes = [1, 64], strides = [1, 1]} : vector<6x64xf32> to vector<1x64xf32>
    %30 = vector.extract_strided_slice %27 {offsets = [2, 0], sizes = [1, 64], strides = [1, 1]} : vector<6x64xf32> to vector<1x64xf32>
    %31 = vector.extract_strided_slice %27 {offsets = [3, 0], sizes = [1, 64], strides = [1, 1]} : vector<6x64xf32> to vector<1x64xf32>
    %32 = vector.extract_strided_slice %27 {offsets = [4, 0], sizes = [1, 64], strides = [1, 1]} : vector<6x64xf32> to vector<1x64xf32>
    %33 = vector.extract_strided_slice %27 {offsets = [5, 0], sizes = [1, 64], strides = [1, 1]} : vector<6x64xf32> to vector<1x64xf32>
    %34 = arith.truncf %5 : vector<16x64xf32> to vector<16x64xbf16>
    %cst_28 = arith.constant dense<0.000000e+00> : vector<16x192xf32>
    %35 = tpu.matmul %34, %15, %cst_28 {dimension_numbers = #tpu.dot_dimension_numbers<[1], [0], [0], [1], [0, 0, 1, 1], [], []>} : vector<16x64xbf16>, vector<64x192xbf16>, vector<16x192xf32> -> vector<16x192xf32>
    %36 = vector.broadcast %17 : vector<1x192xf32> to vector<16x192xf32>
    %37 = arith.addf %35, %36 : vector<16x192xf32>
    %38 = vector.extract_strided_slice %37 {offsets = [0, 0], sizes = [16, 64], strides = [1, 1]} : vector<16x192xf32> to vector<16x64xf32>
    %39 = vector.extract_strided_slice %38 {offsets = [0, 0], sizes = [16, 8], strides = [1, 1]} : vector<16x64xf32> to vector<16x8xf32>
    %40 = vector.shape_cast %39 : vector<16x8xf32> to vector<2x8x8xf32>
    %41 = vector.extract_strided_slice %38 {offsets = [0, 8], sizes = [16, 8], strides = [1, 1]} : vector<16x64xf32> to vector<16x8xf32>
    %42 = vector.shape_cast %41 : vector<16x8xf32> to vector<2x8x8xf32>
    %43 = vector.extract_strided_slice %38 {offsets = [0, 16], sizes = [16, 8], strides = [1, 1]} : vector<16x64xf32> to vector<16x8xf32>
    %44 = vector.shape_cast %43 : vector<16x8xf32> to vector<2x8x8xf32>
    %45 = vector.extract_strided_slice %38 {offsets = [0, 24], sizes = [16, 8], strides = [1, 1]} : vector<16x64xf32> to vector<16x8xf32>
    %46 = vector.shape_cast %45 : vector<16x8xf32> to vector<2x8x8xf32>
    %47 = vector.extract_strided_slice %38 {offsets = [0, 32], sizes = [16, 8], strides = [1, 1]} : vector<16x64xf32> to vector<16x8xf32>
    %48 = vector.shape_cast %47 : vector<16x8xf32> to vector<2x8x8xf32>
    %49 = vector.extract_strided_slice %38 {offsets = [0, 40], sizes = [16, 8], strides = [1, 1]} : vector<16x64xf32> to vector<16x8xf32>
    %50 = vector.shape_cast %49 : vector<16x8xf32> to vector<2x8x8xf32>
    %51 = vector.extract_strided_slice %38 {offsets = [0, 48], sizes = [16, 8], strides = [1, 1]} : vector<16x64xf32> to vector<16x8xf32>
    %52 = vector.shape_cast %51 : vector<16x8xf32> to vector<2x8x8xf32>
    %53 = vector.extract_strided_slice %38 {offsets = [0, 56], sizes = [16, 8], strides = [1, 1]} : vector<16x64xf32> to vector<16x8xf32>
    %54 = vector.shape_cast %53 : vector<16x8xf32> to vector<2x8x8xf32>
    %55 = tpu.concatenate %40, %42, %44, %46, %48, %50, %52, %54 in 0 : vector<2x8x8xf32>, vector<2x8x8xf32>, vector<2x8x8xf32>, vector<2x8x8xf32>, vector<2x8x8xf32>, vector<2x8x8xf32>, vector<2x8x8xf32>, vector<2x8x8xf32> -> vector<16x8x8xf32>
    %56 = arith.truncf %55 : vector<16x8x8xf32> to vector<16x8x8xbf16>
    %57 = vector.extract_strided_slice %37 {offsets = [0, 64], sizes = [16, 64], strides = [1, 1]} : vector<16x192xf32> to vector<16x64xf32>
    %58 = vector.extract_strided_slice %57 {offsets = [0, 0], sizes = [16, 8], strides = [1, 1]} : vector<16x64xf32> to vector<16x8xf32>
    %59 = vector.shape_cast %58 : vector<16x8xf32> to vector<2x8x8xf32>
    %60 = vector.extract_strided_slice %57 {offsets = [0, 8], sizes = [16, 8], strides = [1, 1]} : vector<16x64xf32> to vector<16x8xf32>
    %61 = vector.shape_cast %60 : vector<16x8xf32> to vector<2x8x8xf32>
    %62 = vector.extract_strided_slice %57 {offsets = [0, 16], sizes = [16, 8], strides = [1, 1]} : vector<16x64xf32> to vector<16x8xf32>
    %63 = vector.shape_cast %62 : vector<16x8xf32> to vector<2x8x8xf32>
    %64 = vector.extract_strided_slice %57 {offsets = [0, 24], sizes = [16, 8], strides = [1, 1]} : vector<16x64xf32> to vector<16x8xf32>
    %65 = vector.shape_cast %64 : vector<16x8xf32> to vector<2x8x8xf32>
    %66 = vector.extract_strided_slice %57 {offsets = [0, 32], sizes = [16, 8], strides = [1, 1]} : vector<16x64xf32> to vector<16x8xf32>
    %67 = vector.shape_cast %66 : vector<16x8xf32> to vector<2x8x8xf32>
    %68 = vector.extract_strided_slice %57 {offsets = [0, 40], sizes = [16, 8], strides = [1, 1]} : vector<16x64xf32> to vector<16x8xf32>
    %69 = vector.shape_cast %68 : vector<16x8xf32> to vector<2x8x8xf32>
    %70 = vector.extract_strided_slice %57 {offsets = [0, 48], sizes = [16, 8], strides = [1, 1]} : vector<16x64xf32> to vector<16x8xf32>
    %71 = vector.shape_cast %70 : vector<16x8xf32> to vector<2x8x8xf32>
    %72 = vector.extract_strided_slice %57 {offsets = [0, 56], sizes = [16, 8], strides = [1, 1]} : vector<16x64xf32> to vector<16x8xf32>
    %73 = vector.shape_cast %72 : vector<16x8xf32> to vector<2x8x8xf32>
    %74 = tpu.concatenate %59, %61, %63, %65, %67, %69, %71, %73 in 0 : vector<2x8x8xf32>, vector<2x8x8xf32>, vector<2x8x8xf32>, vector<2x8x8xf32>, vector<2x8x8xf32>, vector<2x8x8xf32>, vector<2x8x8xf32>, vector<2x8x8xf32> -> vector<16x8x8xf32>
    %75 = arith.truncf %74 : vector<16x8x8xf32> to vector<16x8x8xbf16>
    %76 = vector.extract_strided_slice %37 {offsets = [0, 128], sizes = [16, 64], strides = [1, 1]} : vector<16x192xf32> to vector<16x64xf32>
    %77 = vector.extract_strided_slice %76 {offsets = [0, 0], sizes = [16, 8], strides = [1, 1]} : vector<16x64xf32> to vector<16x8xf32>
    %78 = vector.shape_cast %77 : vector<16x8xf32> to vector<2x8x8xf32>
    %79 = vector.extract_strided_slice %76 {offsets = [0, 8], sizes = [16, 8], strides = [1, 1]} : vector<16x64xf32> to vector<16x8xf32>
    %80 = vector.shape_cast %79 : vector<16x8xf32> to vector<2x8x8xf32>
    %81 = vector.extract_strided_slice %76 {offsets = [0, 16], sizes = [16, 8], strides = [1, 1]} : vector<16x64xf32> to vector<16x8xf32>
    %82 = vector.shape_cast %81 : vector<16x8xf32> to vector<2x8x8xf32>
    %83 = vector.extract_strided_slice %76 {offsets = [0, 24], sizes = [16, 8], strides = [1, 1]} : vector<16x64xf32> to vector<16x8xf32>
    %84 = vector.shape_cast %83 : vector<16x8xf32> to vector<2x8x8xf32>
    %85 = vector.extract_strided_slice %76 {offsets = [0, 32], sizes = [16, 8], strides = [1, 1]} : vector<16x64xf32> to vector<16x8xf32>
    %86 = vector.shape_cast %85 : vector<16x8xf32> to vector<2x8x8xf32>
    %87 = vector.extract_strided_slice %76 {offsets = [0, 40], sizes = [16, 8], strides = [1, 1]} : vector<16x64xf32> to vector<16x8xf32>
    %88 = vector.shape_cast %87 : vector<16x8xf32> to vector<2x8x8xf32>
    %89 = vector.extract_strided_slice %76 {offsets = [0, 48], sizes = [16, 8], strides = [1, 1]} : vector<16x64xf32> to vector<16x8xf32>
    %90 = vector.shape_cast %89 : vector<16x8xf32> to vector<2x8x8xf32>
    %91 = vector.extract_strided_slice %76 {offsets = [0, 56], sizes = [16, 8], strides = [1, 1]} : vector<16x64xf32> to vector<16x8xf32>
    %92 = vector.shape_cast %91 : vector<16x8xf32> to vector<2x8x8xf32>
    %93 = tpu.concatenate %78, %80, %82, %84, %86, %88, %90, %92 in 0 : vector<2x8x8xf32>, vector<2x8x8xf32>, vector<2x8x8xf32>, vector<2x8x8xf32>, vector<2x8x8xf32>, vector<2x8x8xf32>, vector<2x8x8xf32>, vector<2x8x8xf32> -> vector<16x8x8xf32>
    %94 = arith.truncf %93 : vector<16x8x8xf32> to vector<16x8x8xbf16>
    %cst_29 = arith.constant dense<0.000000e+00> : vector<16x8x8xf32>
    %95 = tpu.matmul %56, %75, %cst_29 {dimension_numbers = #tpu.dot_dimension_numbers<[2], [2], [1], [1], [0, 0, 0, 1, 1, 1], [0], [0]>} : vector<16x8x8xbf16>, vector<16x8x8xbf16>, vector<16x8x8xf32> -> vector<16x8x8xf32>
    %cst_30 = arith.constant 0.353553385 : f32
    %96 = vector.broadcast %cst_30 : f32 to vector<16x8x8xf32>
    %97 = arith.mulf %95, %96 : vector<16x8x8xf32>
    %98 = vector.broadcast %13 : vector<16x1x8xf32> to vector<16x8x8xf32>
    %99 = arith.addf %97, %98 : vector<16x8x8xf32>
    %cst_31 = arith.constant dense<0xFF800000> : vector<16x8xf32>
    %100 = vector.multi_reduction <maximumf>, %99, %cst_31 [2] : vector<16x8x8xf32> to vector<16x8xf32>
    %101 = vector.shape_cast %100 : vector<16x8xf32> to vector<16x8x1xf32>
    %102 = vector.broadcast %101 : vector<16x8x1xf32> to vector<16x8x8xf32>
    %103 = arith.subf %99, %102 : vector<16x8x8xf32>
    %104 = math.exp %103 : vector<16x8x8xf32>
    %cst_32 = arith.constant dense<0.000000e+00> : vector<16x8xf32>
    %105 = vector.multi_reduction <add>, %104, %cst_32 [2] : vector<16x8x8xf32> to vector<16x8xf32>
    %106 = vector.shape_cast %105 : vector<16x8xf32> to vector<16x8x1xf32>
    %107 = tpu.reciprocal %106 {approx = true} : vector<16x8x1xf32> -> vector<16x8x1xf32>
    %108 = vector.broadcast %107 : vector<16x8x1xf32> to vector<16x8x8xf32>
    %109 = arith.mulf %104, %108 : vector<16x8x8xf32>
    %110 = arith.truncf %109 : vector<16x8x8xf32> to vector<16x8x8xbf16>
    %cst_33 = arith.constant dense<0.000000e+00> : vector<16x8x8xf32>
    %111 = tpu.matmul %110, %94, %cst_33 {dimension_numbers = #tpu.dot_dimension_numbers<[2], [1], [1], [2], [0, 0, 0, 1, 1, 2], [0], [0]>} : vector<16x8x8xbf16>, vector<16x8x8xbf16>, vector<16x8x8xf32> -> vector<16x8x8xf32>
    %112 = vector.extract_strided_slice %111 {offsets = [0, 0, 0], sizes = [2, 8, 8], strides = [1, 1, 1]} : vector<16x8x8xf32> to vector<2x8x8xf32>
    %113 = vector.shape_cast %112 : vector<2x8x8xf32> to vector<16x8xf32>
    %114 = vector.extract_strided_slice %111 {offsets = [2, 0, 0], sizes = [2, 8, 8], strides = [1, 1, 1]} : vector<16x8x8xf32> to vector<2x8x8xf32>
    %115 = vector.shape_cast %114 : vector<2x8x8xf32> to vector<16x8xf32>
    %116 = vector.extract_strided_slice %111 {offsets = [4, 0, 0], sizes = [2, 8, 8], strides = [1, 1, 1]} : vector<16x8x8xf32> to vector<2x8x8xf32>
    %117 = vector.shape_cast %116 : vector<2x8x8xf32> to vector<16x8xf32>
    %118 = vector.extract_strided_slice %111 {offsets = [6, 0, 0], sizes = [2, 8, 8], strides = [1, 1, 1]} : vector<16x8x8xf32> to vector<2x8x8xf32>
    %119 = vector.shape_cast %118 : vector<2x8x8xf32> to vector<16x8xf32>
    %120 = vector.extract_strided_slice %111 {offsets = [8, 0, 0], sizes = [2, 8, 8], strides = [1, 1, 1]} : vector<16x8x8xf32> to vector<2x8x8xf32>
    %121 = vector.shape_cast %120 : vector<2x8x8xf32> to vector<16x8xf32>
    %122 = vector.extract_strided_slice %111 {offsets = [10, 0, 0], sizes = [2, 8, 8], strides = [1, 1, 1]} : vector<16x8x8xf32> to vector<2x8x8xf32>
    %123 = vector.shape_cast %122 : vector<2x8x8xf32> to vector<16x8xf32>
    %124 = vector.extract_strided_slice %111 {offsets = [12, 0, 0], sizes = [2, 8, 8], strides = [1, 1, 1]} : vector<16x8x8xf32> to vector<2x8x8xf32>
    %125 = vector.shape_cast %124 : vector<2x8x8xf32> to vector<16x8xf32>
    %126 = vector.extract_strided_slice %111 {offsets = [14, 0, 0], sizes = [2, 8, 8], strides = [1, 1, 1]} : vector<16x8x8xf32> to vector<2x8x8xf32>
    %127 = vector.shape_cast %126 : vector<2x8x8xf32> to vector<16x8xf32>
    %128 = tpu.concatenate %113, %115, %117, %119, %121, %123, %125, %127 in 1 : vector<16x8xf32>, vector<16x8xf32>, vector<16x8xf32>, vector<16x8xf32>, vector<16x8xf32>, vector<16x8xf32>, vector<16x8xf32>, vector<16x8xf32> -> vector<16x64xf32>
    %129 = arith.truncf %128 : vector<16x64xf32> to vector<16x64xbf16>
    %cst_34 = arith.constant dense<0.000000e+00> : vector<16x64xf32>
    %130 = tpu.matmul %129, %19, %cst_34 {dimension_numbers = #tpu.dot_dimension_numbers<[1], [0], [0], [1], [0, 0, 1, 1], [], []>} : vector<16x64xbf16>, vector<64x64xbf16>, vector<16x64xf32> -> vector<16x64xf32>
    %131 = vector.broadcast %28 : vector<1x64xf32> to vector<16x64xf32>
    %132 = arith.addf %130, %131 : vector<16x64xf32>
    %133 = arith.addf %5, %132 : vector<16x64xf32>
    %cst_35 = arith.constant dense<0.000000e+00> : vector<16xf32>
    %134 = vector.multi_reduction <add>, %133, %cst_35 [1] : vector<16x64xf32> to vector<16xf32>
    %135 = vector.shape_cast %134 : vector<16xf32> to vector<16x1xf32>
    %cst_36 = arith.constant 6.400000e+01 : f32
    %136 = vector.broadcast %cst_36 : f32 to vector<16x1xf32>
    %137 = arith.divf %135, %136 : vector<16x1xf32>
    %138 = vector.broadcast %137 : vector<16x1xf32> to vector<16x64xf32>
    %139 = arith.subf %133, %138 : vector<16x64xf32>
    %140 = arith.mulf %139, %139 : vector<16x64xf32>
    %cst_37 = arith.constant dense<0.000000e+00> : vector<16xf32>
    %141 = vector.multi_reduction <add>, %140, %cst_37 [1] : vector<16x64xf32> to vector<16xf32>
    %142 = vector.shape_cast %141 : vector<16xf32> to vector<16x1xf32>
    %cst_38 = arith.constant 6.400000e+01 : f32
    %143 = vector.broadcast %cst_38 : f32 to vector<16x1xf32>
    %144 = arith.divf %142, %143 : vector<16x1xf32>
    %145 = vector.broadcast %137 : vector<16x1xf32> to vector<16x64xf32>
    %146 = arith.subf %133, %145 : vector<16x64xf32>
    %cst_39 = arith.constant 9.99999974E-6 : f32
    %147 = vector.broadcast %cst_39 : f32 to vector<16x1xf32>
    %148 = arith.addf %144, %147 : vector<16x1xf32>
    %149 = math.rsqrt %148 : vector<16x1xf32>
    %150 = vector.broadcast %149 : vector<16x1xf32> to vector<16x64xf32>
    %151 = arith.mulf %146, %150 : vector<16x64xf32>
    %152 = vector.broadcast %29 : vector<1x64xf32> to vector<16x64xf32>
    %153 = arith.mulf %151, %152 : vector<16x64xf32>
    %154 = vector.broadcast %30 : vector<1x64xf32> to vector<16x64xf32>
    %155 = arith.addf %153, %154 : vector<16x64xf32>
    %156 = arith.truncf %155 : vector<16x64xf32> to vector<16x64xbf16>
    %cst_40 = arith.constant dense<0.000000e+00> : vector<16x128xf32>
    %157 = tpu.matmul %156, %21, %cst_40 {dimension_numbers = #tpu.dot_dimension_numbers<[1], [0], [0], [1], [0, 0, 1, 1], [], []>} : vector<16x64xbf16>, vector<64x128xbf16>, vector<16x128xf32> -> vector<16x128xf32>
    %158 = vector.broadcast %23 : vector<1x128xf32> to vector<16x128xf32>
    %159 = arith.addf %157, %158 : vector<16x128xf32>
    %cst_41 = arith.constant 0.000000e+00 : f32
    %160 = vector.broadcast %cst_41 : f32 to vector<16x128xf32>
    %161 = arith.maximumf %159, %160 : vector<16x128xf32>
    %162 = arith.truncf %161 : vector<16x128xf32> to vector<16x128xbf16>
    %cst_42 = arith.constant dense<0.000000e+00> : vector<16x64xf32>
    %163 = tpu.matmul %162, %25, %cst_42 {dimension_numbers = #tpu.dot_dimension_numbers<[1], [0], [0], [1], [0, 0, 1, 1], [], []>} : vector<16x128xbf16>, vector<128x64xbf16>, vector<16x64xf32> -> vector<16x64xf32>
    %164 = vector.broadcast %31 : vector<1x64xf32> to vector<16x64xf32>
    %165 = arith.addf %163, %164 : vector<16x64xf32>
    %166 = arith.addf %155, %165 : vector<16x64xf32>
    %cst_43 = arith.constant dense<0.000000e+00> : vector<16xf32>
    %167 = vector.multi_reduction <add>, %166, %cst_43 [1] : vector<16x64xf32> to vector<16xf32>
    %168 = vector.shape_cast %167 : vector<16xf32> to vector<16x1xf32>
    %cst_44 = arith.constant 6.400000e+01 : f32
    %169 = vector.broadcast %cst_44 : f32 to vector<16x1xf32>
    %170 = arith.divf %168, %169 : vector<16x1xf32>
    %171 = vector.broadcast %170 : vector<16x1xf32> to vector<16x64xf32>
    %172 = arith.subf %166, %171 : vector<16x64xf32>
    %173 = arith.mulf %172, %172 : vector<16x64xf32>
    %cst_45 = arith.constant dense<0.000000e+00> : vector<16xf32>
    %174 = vector.multi_reduction <add>, %173, %cst_45 [1] : vector<16x64xf32> to vector<16xf32>
    %175 = vector.shape_cast %174 : vector<16xf32> to vector<16x1xf32>
    %cst_46 = arith.constant 6.400000e+01 : f32
    %176 = vector.broadcast %cst_46 : f32 to vector<16x1xf32>
    %177 = arith.divf %175, %176 : vector<16x1xf32>
    %178 = vector.broadcast %170 : vector<16x1xf32> to vector<16x64xf32>
    %179 = arith.subf %166, %178 : vector<16x64xf32>
    %cst_47 = arith.constant 9.99999974E-6 : f32
    %180 = vector.broadcast %cst_47 : f32 to vector<16x1xf32>
    %181 = arith.addf %177, %180 : vector<16x1xf32>
    %182 = math.rsqrt %181 : vector<16x1xf32>
    %183 = vector.broadcast %182 : vector<16x1xf32> to vector<16x64xf32>
    %184 = arith.mulf %179, %183 : vector<16x64xf32>
    %185 = vector.broadcast %32 : vector<1x64xf32> to vector<16x64xf32>
    %186 = arith.mulf %184, %185 : vector<16x64xf32>
    %187 = vector.broadcast %33 : vector<1x64xf32> to vector<16x64xf32>
    %188 = arith.addf %186, %187 : vector<16x64xf32>
    %c1 = arith.constant 1 : index
    %c0_48 = arith.constant 0 : index
    %c0_49 = arith.constant 0 : index
    %189 = vector.load %arg3[%c1, %c0_48, %c0_49] : memref<2x64x192xbf16, #tpu.memory_space<vmem>>, vector<1x64x192xbf16>
    %190 = vector.shape_cast %189 : vector<1x64x192xbf16> to vector<64x192xbf16>
    %c1_50 = arith.constant 1 : index
    %c0_51 = arith.constant 0 : index
    %c0_52 = arith.constant 0 : index
    %191 = vector.load %arg4[%c1_50, %c0_51, %c0_52] : memref<2x1x192xf32, #tpu.memory_space<vmem>>, vector<1x1x192xf32>
    %192 = vector.shape_cast %191 : vector<1x1x192xf32> to vector<1x192xf32>
    %c1_53 = arith.constant 1 : index
    %c0_54 = arith.constant 0 : index
    %c0_55 = arith.constant 0 : index
    %193 = vector.load %arg5[%c1_53, %c0_54, %c0_55] : memref<2x64x64xbf16, #tpu.memory_space<vmem>>, vector<1x64x64xbf16>
    %194 = vector.shape_cast %193 : vector<1x64x64xbf16> to vector<64x64xbf16>
    %c1_56 = arith.constant 1 : index
    %c0_57 = arith.constant 0 : index
    %c0_58 = arith.constant 0 : index
    %195 = vector.load %arg6[%c1_56, %c0_57, %c0_58] : memref<2x64x128xbf16, #tpu.memory_space<vmem>>, vector<1x64x128xbf16>
    %196 = vector.shape_cast %195 : vector<1x64x128xbf16> to vector<64x128xbf16>
    %c1_59 = arith.constant 1 : index
    %c0_60 = arith.constant 0 : index
    %c0_61 = arith.constant 0 : index
    %197 = vector.load %arg7[%c1_59, %c0_60, %c0_61] : memref<2x1x128xf32, #tpu.memory_space<vmem>>, vector<1x1x128xf32>
    %198 = vector.shape_cast %197 : vector<1x1x128xf32> to vector<1x128xf32>
    %c1_62 = arith.constant 1 : index
    %c0_63 = arith.constant 0 : index
    %c0_64 = arith.constant 0 : index
    %199 = vector.load %arg8[%c1_62, %c0_63, %c0_64] : memref<2x128x64xbf16, #tpu.memory_space<vmem>>, vector<1x128x64xbf16>
    %200 = vector.shape_cast %199 : vector<1x128x64xbf16> to vector<128x64xbf16>
    %c1_65 = arith.constant 1 : index
    %c0_66 = arith.constant 0 : index
    %c0_67 = arith.constant 0 : index
    %201 = vector.load %arg9[%c1_65, %c0_66, %c0_67] : memref<2x6x64xf32, #tpu.memory_space<vmem>>, vector<1x6x64xf32>
    %202 = vector.shape_cast %201 : vector<1x6x64xf32> to vector<6x64xf32>
    %203 = vector.extract_strided_slice %202 {offsets = [0, 0], sizes = [1, 64], strides = [1, 1]} : vector<6x64xf32> to vector<1x64xf32>
    %204 = vector.extract_strided_slice %202 {offsets = [1, 0], sizes = [1, 64], strides = [1, 1]} : vector<6x64xf32> to vector<1x64xf32>
    %205 = vector.extract_strided_slice %202 {offsets = [2, 0], sizes = [1, 64], strides = [1, 1]} : vector<6x64xf32> to vector<1x64xf32>
    %206 = vector.extract_strided_slice %202 {offsets = [3, 0], sizes = [1, 64], strides = [1, 1]} : vector<6x64xf32> to vector<1x64xf32>
    %207 = vector.extract_strided_slice %202 {offsets = [4, 0], sizes = [1, 64], strides = [1, 1]} : vector<6x64xf32> to vector<1x64xf32>
    %208 = vector.extract_strided_slice %202 {offsets = [5, 0], sizes = [1, 64], strides = [1, 1]} : vector<6x64xf32> to vector<1x64xf32>
    %209 = arith.truncf %188 : vector<16x64xf32> to vector<16x64xbf16>
    %cst_68 = arith.constant dense<0.000000e+00> : vector<16x192xf32>
    %210 = tpu.matmul %209, %190, %cst_68 {dimension_numbers = #tpu.dot_dimension_numbers<[1], [0], [0], [1], [0, 0, 1, 1], [], []>} : vector<16x64xbf16>, vector<64x192xbf16>, vector<16x192xf32> -> vector<16x192xf32>
    %211 = vector.broadcast %192 : vector<1x192xf32> to vector<16x192xf32>
    %212 = arith.addf %210, %211 : vector<16x192xf32>
    %213 = vector.extract_strided_slice %212 {offsets = [0, 0], sizes = [16, 64], strides = [1, 1]} : vector<16x192xf32> to vector<16x64xf32>
    %214 = vector.extract_strided_slice %213 {offsets = [0, 0], sizes = [16, 8], strides = [1, 1]} : vector<16x64xf32> to vector<16x8xf32>
    %215 = vector.shape_cast %214 : vector<16x8xf32> to vector<2x8x8xf32>
    %216 = vector.extract_strided_slice %213 {offsets = [0, 8], sizes = [16, 8], strides = [1, 1]} : vector<16x64xf32> to vector<16x8xf32>
    %217 = vector.shape_cast %216 : vector<16x8xf32> to vector<2x8x8xf32>
    %218 = vector.extract_strided_slice %213 {offsets = [0, 16], sizes = [16, 8], strides = [1, 1]} : vector<16x64xf32> to vector<16x8xf32>
    %219 = vector.shape_cast %218 : vector<16x8xf32> to vector<2x8x8xf32>
    %220 = vector.extract_strided_slice %213 {offsets = [0, 24], sizes = [16, 8], strides = [1, 1]} : vector<16x64xf32> to vector<16x8xf32>
    %221 = vector.shape_cast %220 : vector<16x8xf32> to vector<2x8x8xf32>
    %222 = vector.extract_strided_slice %213 {offsets = [0, 32], sizes = [16, 8], strides = [1, 1]} : vector<16x64xf32> to vector<16x8xf32>
    %223 = vector.shape_cast %222 : vector<16x8xf32> to vector<2x8x8xf32>
    %224 = vector.extract_strided_slice %213 {offsets = [0, 40], sizes = [16, 8], strides = [1, 1]} : vector<16x64xf32> to vector<16x8xf32>
    %225 = vector.shape_cast %224 : vector<16x8xf32> to vector<2x8x8xf32>
    %226 = vector.extract_strided_slice %213 {offsets = [0, 48], sizes = [16, 8], strides = [1, 1]} : vector<16x64xf32> to vector<16x8xf32>
    %227 = vector.shape_cast %226 : vector<16x8xf32> to vector<2x8x8xf32>
    %228 = vector.extract_strided_slice %213 {offsets = [0, 56], sizes = [16, 8], strides = [1, 1]} : vector<16x64xf32> to vector<16x8xf32>
    %229 = vector.shape_cast %228 : vector<16x8xf32> to vector<2x8x8xf32>
    %230 = tpu.concatenate %215, %217, %219, %221, %223, %225, %227, %229 in 0 : vector<2x8x8xf32>, vector<2x8x8xf32>, vector<2x8x8xf32>, vector<2x8x8xf32>, vector<2x8x8xf32>, vector<2x8x8xf32>, vector<2x8x8xf32>, vector<2x8x8xf32> -> vector<16x8x8xf32>
    %231 = arith.truncf %230 : vector<16x8x8xf32> to vector<16x8x8xbf16>
    %232 = vector.extract_strided_slice %212 {offsets = [0, 64], sizes = [16, 64], strides = [1, 1]} : vector<16x192xf32> to vector<16x64xf32>
    %233 = vector.extract_strided_slice %232 {offsets = [0, 0], sizes = [16, 8], strides = [1, 1]} : vector<16x64xf32> to vector<16x8xf32>
    %234 = vector.shape_cast %233 : vector<16x8xf32> to vector<2x8x8xf32>
    %235 = vector.extract_strided_slice %232 {offsets = [0, 8], sizes = [16, 8], strides = [1, 1]} : vector<16x64xf32> to vector<16x8xf32>
    %236 = vector.shape_cast %235 : vector<16x8xf32> to vector<2x8x8xf32>
    %237 = vector.extract_strided_slice %232 {offsets = [0, 16], sizes = [16, 8], strides = [1, 1]} : vector<16x64xf32> to vector<16x8xf32>
    %238 = vector.shape_cast %237 : vector<16x8xf32> to vector<2x8x8xf32>
    %239 = vector.extract_strided_slice %232 {offsets = [0, 24], sizes = [16, 8], strides = [1, 1]} : vector<16x64xf32> to vector<16x8xf32>
    %240 = vector.shape_cast %239 : vector<16x8xf32> to vector<2x8x8xf32>
    %241 = vector.extract_strided_slice %232 {offsets = [0, 32], sizes = [16, 8], strides = [1, 1]} : vector<16x64xf32> to vector<16x8xf32>
    %242 = vector.shape_cast %241 : vector<16x8xf32> to vector<2x8x8xf32>
    %243 = vector.extract_strided_slice %232 {offsets = [0, 40], sizes = [16, 8], strides = [1, 1]} : vector<16x64xf32> to vector<16x8xf32>
    %244 = vector.shape_cast %243 : vector<16x8xf32> to vector<2x8x8xf32>
    %245 = vector.extract_strided_slice %232 {offsets = [0, 48], sizes = [16, 8], strides = [1, 1]} : vector<16x64xf32> to vector<16x8xf32>
    %246 = vector.shape_cast %245 : vector<16x8xf32> to vector<2x8x8xf32>
    %247 = vector.extract_strided_slice %232 {offsets = [0, 56], sizes = [16, 8], strides = [1, 1]} : vector<16x64xf32> to vector<16x8xf32>
    %248 = vector.shape_cast %247 : vector<16x8xf32> to vector<2x8x8xf32>
    %249 = tpu.concatenate %234, %236, %238, %240, %242, %244, %246, %248 in 0 : vector<2x8x8xf32>, vector<2x8x8xf32>, vector<2x8x8xf32>, vector<2x8x8xf32>, vector<2x8x8xf32>, vector<2x8x8xf32>, vector<2x8x8xf32>, vector<2x8x8xf32> -> vector<16x8x8xf32>
    %250 = arith.truncf %249 : vector<16x8x8xf32> to vector<16x8x8xbf16>
    %251 = vector.extract_strided_slice %212 {offsets = [0, 128], sizes = [16, 64], strides = [1, 1]} : vector<16x192xf32> to vector<16x64xf32>
    %252 = vector.extract_strided_slice %251 {offsets = [0, 0], sizes = [16, 8], strides = [1, 1]} : vector<16x64xf32> to vector<16x8xf32>
    %253 = vector.shape_cast %252 : vector<16x8xf32> to vector<2x8x8xf32>
    %254 = vector.extract_strided_slice %251 {offsets = [0, 8], sizes = [16, 8], strides = [1, 1]} : vector<16x64xf32> to vector<16x8xf32>
    %255 = vector.shape_cast %254 : vector<16x8xf32> to vector<2x8x8xf32>
    %256 = vector.extract_strided_slice %251 {offsets = [0, 16], sizes = [16, 8], strides = [1, 1]} : vector<16x64xf32> to vector<16x8xf32>
    %257 = vector.shape_cast %256 : vector<16x8xf32> to vector<2x8x8xf32>
    %258 = vector.extract_strided_slice %251 {offsets = [0, 24], sizes = [16, 8], strides = [1, 1]} : vector<16x64xf32> to vector<16x8xf32>
    %259 = vector.shape_cast %258 : vector<16x8xf32> to vector<2x8x8xf32>
    %260 = vector.extract_strided_slice %251 {offsets = [0, 32], sizes = [16, 8], strides = [1, 1]} : vector<16x64xf32> to vector<16x8xf32>
    %261 = vector.shape_cast %260 : vector<16x8xf32> to vector<2x8x8xf32>
    %262 = vector.extract_strided_slice %251 {offsets = [0, 40], sizes = [16, 8], strides = [1, 1]} : vector<16x64xf32> to vector<16x8xf32>
    %263 = vector.shape_cast %262 : vector<16x8xf32> to vector<2x8x8xf32>
    %264 = vector.extract_strided_slice %251 {offsets = [0, 48], sizes = [16, 8], strides = [1, 1]} : vector<16x64xf32> to vector<16x8xf32>
    %265 = vector.shape_cast %264 : vector<16x8xf32> to vector<2x8x8xf32>
    %266 = vector.extract_strided_slice %251 {offsets = [0, 56], sizes = [16, 8], strides = [1, 1]} : vector<16x64xf32> to vector<16x8xf32>
    %267 = vector.shape_cast %266 : vector<16x8xf32> to vector<2x8x8xf32>
    %268 = tpu.concatenate %253, %255, %257, %259, %261, %263, %265, %267 in 0 : vector<2x8x8xf32>, vector<2x8x8xf32>, vector<2x8x8xf32>, vector<2x8x8xf32>, vector<2x8x8xf32>, vector<2x8x8xf32>, vector<2x8x8xf32>, vector<2x8x8xf32> -> vector<16x8x8xf32>
    %269 = arith.truncf %268 : vector<16x8x8xf32> to vector<16x8x8xbf16>
    %cst_69 = arith.constant dense<0.000000e+00> : vector<16x8x8xf32>
    %270 = tpu.matmul %231, %250, %cst_69 {dimension_numbers = #tpu.dot_dimension_numbers<[2], [2], [1], [1], [0, 0, 0, 1, 1, 1], [0], [0]>} : vector<16x8x8xbf16>, vector<16x8x8xbf16>, vector<16x8x8xf32> -> vector<16x8x8xf32>
    %cst_70 = arith.constant 0.353553385 : f32
    %271 = vector.broadcast %cst_70 : f32 to vector<16x8x8xf32>
    %272 = arith.mulf %270, %271 : vector<16x8x8xf32>
    %273 = vector.broadcast %13 : vector<16x1x8xf32> to vector<16x8x8xf32>
    %274 = arith.addf %272, %273 : vector<16x8x8xf32>
    %cst_71 = arith.constant dense<0xFF800000> : vector<16x8xf32>
    %275 = vector.multi_reduction <maximumf>, %274, %cst_71 [2] : vector<16x8x8xf32> to vector<16x8xf32>
    %276 = vector.shape_cast %275 : vector<16x8xf32> to vector<16x8x1xf32>
    %277 = vector.broadcast %276 : vector<16x8x1xf32> to vector<16x8x8xf32>
    %278 = arith.subf %274, %277 : vector<16x8x8xf32>
    %279 = math.exp %278 : vector<16x8x8xf32>
    %cst_72 = arith.constant dense<0.000000e+00> : vector<16x8xf32>
    %280 = vector.multi_reduction <add>, %279, %cst_72 [2] : vector<16x8x8xf32> to vector<16x8xf32>
    %281 = vector.shape_cast %280 : vector<16x8xf32> to vector<16x8x1xf32>
    %282 = tpu.reciprocal %281 {approx = true} : vector<16x8x1xf32> -> vector<16x8x1xf32>
    %283 = vector.broadcast %282 : vector<16x8x1xf32> to vector<16x8x8xf32>
    %284 = arith.mulf %279, %283 : vector<16x8x8xf32>
    %285 = arith.truncf %284 : vector<16x8x8xf32> to vector<16x8x8xbf16>
    %cst_73 = arith.constant dense<0.000000e+00> : vector<16x8x8xf32>
    %286 = tpu.matmul %285, %269, %cst_73 {dimension_numbers = #tpu.dot_dimension_numbers<[2], [1], [1], [2], [0, 0, 0, 1, 1, 2], [0], [0]>} : vector<16x8x8xbf16>, vector<16x8x8xbf16>, vector<16x8x8xf32> -> vector<16x8x8xf32>
    %287 = vector.extract_strided_slice %286 {offsets = [0, 0, 0], sizes = [2, 8, 8], strides = [1, 1, 1]} : vector<16x8x8xf32> to vector<2x8x8xf32>
    %288 = vector.shape_cast %287 : vector<2x8x8xf32> to vector<16x8xf32>
    %289 = vector.extract_strided_slice %286 {offsets = [2, 0, 0], sizes = [2, 8, 8], strides = [1, 1, 1]} : vector<16x8x8xf32> to vector<2x8x8xf32>
    %290 = vector.shape_cast %289 : vector<2x8x8xf32> to vector<16x8xf32>
    %291 = vector.extract_strided_slice %286 {offsets = [4, 0, 0], sizes = [2, 8, 8], strides = [1, 1, 1]} : vector<16x8x8xf32> to vector<2x8x8xf32>
    %292 = vector.shape_cast %291 : vector<2x8x8xf32> to vector<16x8xf32>
    %293 = vector.extract_strided_slice %286 {offsets = [6, 0, 0], sizes = [2, 8, 8], strides = [1, 1, 1]} : vector<16x8x8xf32> to vector<2x8x8xf32>
    %294 = vector.shape_cast %293 : vector<2x8x8xf32> to vector<16x8xf32>
    %295 = vector.extract_strided_slice %286 {offsets = [8, 0, 0], sizes = [2, 8, 8], strides = [1, 1, 1]} : vector<16x8x8xf32> to vector<2x8x8xf32>
    %296 = vector.shape_cast %295 : vector<2x8x8xf32> to vector<16x8xf32>
    %297 = vector.extract_strided_slice %286 {offsets = [10, 0, 0], sizes = [2, 8, 8], strides = [1, 1, 1]} : vector<16x8x8xf32> to vector<2x8x8xf32>
    %298 = vector.shape_cast %297 : vector<2x8x8xf32> to vector<16x8xf32>
    %299 = vector.extract_strided_slice %286 {offsets = [12, 0, 0], sizes = [2, 8, 8], strides = [1, 1, 1]} : vector<16x8x8xf32> to vector<2x8x8xf32>
    %300 = vector.shape_cast %299 : vector<2x8x8xf32> to vector<16x8xf32>
    %301 = vector.extract_strided_slice %286 {offsets = [14, 0, 0], sizes = [2, 8, 8], strides = [1, 1, 1]} : vector<16x8x8xf32> to vector<2x8x8xf32>
    %302 = vector.shape_cast %301 : vector<2x8x8xf32> to vector<16x8xf32>
    %303 = tpu.concatenate %288, %290, %292, %294, %296, %298, %300, %302 in 1 : vector<16x8xf32>, vector<16x8xf32>, vector<16x8xf32>, vector<16x8xf32>, vector<16x8xf32>, vector<16x8xf32>, vector<16x8xf32>, vector<16x8xf32> -> vector<16x64xf32>
    %304 = arith.truncf %303 : vector<16x64xf32> to vector<16x64xbf16>
    %cst_74 = arith.constant dense<0.000000e+00> : vector<16x64xf32>
    %305 = tpu.matmul %304, %194, %cst_74 {dimension_numbers = #tpu.dot_dimension_numbers<[1], [0], [0], [1], [0, 0, 1, 1], [], []>} : vector<16x64xbf16>, vector<64x64xbf16>, vector<16x64xf32> -> vector<16x64xf32>
    %306 = vector.broadcast %203 : vector<1x64xf32> to vector<16x64xf32>
    %307 = arith.addf %305, %306 : vector<16x64xf32>
    %308 = arith.addf %188, %307 : vector<16x64xf32>
    %cst_75 = arith.constant dense<0.000000e+00> : vector<16xf32>
    %309 = vector.multi_reduction <add>, %308, %cst_75 [1] : vector<16x64xf32> to vector<16xf32>
    %310 = vector.shape_cast %309 : vector<16xf32> to vector<16x1xf32>
    %cst_76 = arith.constant 6.400000e+01 : f32
    %311 = vector.broadcast %cst_76 : f32 to vector<16x1xf32>
    %312 = arith.divf %310, %311 : vector<16x1xf32>
    %313 = vector.broadcast %312 : vector<16x1xf32> to vector<16x64xf32>
    %314 = arith.subf %308, %313 : vector<16x64xf32>
    %315 = arith.mulf %314, %314 : vector<16x64xf32>
    %cst_77 = arith.constant dense<0.000000e+00> : vector<16xf32>
    %316 = vector.multi_reduction <add>, %315, %cst_77 [1] : vector<16x64xf32> to vector<16xf32>
    %317 = vector.shape_cast %316 : vector<16xf32> to vector<16x1xf32>
    %cst_78 = arith.constant 6.400000e+01 : f32
    %318 = vector.broadcast %cst_78 : f32 to vector<16x1xf32>
    %319 = arith.divf %317, %318 : vector<16x1xf32>
    %320 = vector.broadcast %312 : vector<16x1xf32> to vector<16x64xf32>
    %321 = arith.subf %308, %320 : vector<16x64xf32>
    %cst_79 = arith.constant 9.99999974E-6 : f32
    %322 = vector.broadcast %cst_79 : f32 to vector<16x1xf32>
    %323 = arith.addf %319, %322 : vector<16x1xf32>
    %324 = math.rsqrt %323 : vector<16x1xf32>
    %325 = vector.broadcast %324 : vector<16x1xf32> to vector<16x64xf32>
    %326 = arith.mulf %321, %325 : vector<16x64xf32>
    %327 = vector.broadcast %204 : vector<1x64xf32> to vector<16x64xf32>
    %328 = arith.mulf %326, %327 : vector<16x64xf32>
    %329 = vector.broadcast %205 : vector<1x64xf32> to vector<16x64xf32>
    %330 = arith.addf %328, %329 : vector<16x64xf32>
    %331 = arith.truncf %330 : vector<16x64xf32> to vector<16x64xbf16>
    %cst_80 = arith.constant dense<0.000000e+00> : vector<16x128xf32>
    %332 = tpu.matmul %331, %196, %cst_80 {dimension_numbers = #tpu.dot_dimension_numbers<[1], [0], [0], [1], [0, 0, 1, 1], [], []>} : vector<16x64xbf16>, vector<64x128xbf16>, vector<16x128xf32> -> vector<16x128xf32>
    %333 = vector.broadcast %198 : vector<1x128xf32> to vector<16x128xf32>
    %334 = arith.addf %332, %333 : vector<16x128xf32>
    %cst_81 = arith.constant 0.000000e+00 : f32
    %335 = vector.broadcast %cst_81 : f32 to vector<16x128xf32>
    %336 = arith.maximumf %334, %335 : vector<16x128xf32>
    %337 = arith.truncf %336 : vector<16x128xf32> to vector<16x128xbf16>
    %cst_82 = arith.constant dense<0.000000e+00> : vector<16x64xf32>
    %338 = tpu.matmul %337, %200, %cst_82 {dimension_numbers = #tpu.dot_dimension_numbers<[1], [0], [0], [1], [0, 0, 1, 1], [], []>} : vector<16x128xbf16>, vector<128x64xbf16>, vector<16x64xf32> -> vector<16x64xf32>
    %339 = vector.broadcast %206 : vector<1x64xf32> to vector<16x64xf32>
    %340 = arith.addf %338, %339 : vector<16x64xf32>
    %341 = arith.addf %330, %340 : vector<16x64xf32>
    %cst_83 = arith.constant dense<0.000000e+00> : vector<16xf32>
    %342 = vector.multi_reduction <add>, %341, %cst_83 [1] : vector<16x64xf32> to vector<16xf32>
    %343 = vector.shape_cast %342 : vector<16xf32> to vector<16x1xf32>
    %cst_84 = arith.constant 6.400000e+01 : f32
    %344 = vector.broadcast %cst_84 : f32 to vector<16x1xf32>
    %345 = arith.divf %343, %344 : vector<16x1xf32>
    %346 = vector.broadcast %345 : vector<16x1xf32> to vector<16x64xf32>
    %347 = arith.subf %341, %346 : vector<16x64xf32>
    %348 = arith.mulf %347, %347 : vector<16x64xf32>
    %cst_85 = arith.constant dense<0.000000e+00> : vector<16xf32>
    %349 = vector.multi_reduction <add>, %348, %cst_85 [1] : vector<16x64xf32> to vector<16xf32>
    %350 = vector.shape_cast %349 : vector<16xf32> to vector<16x1xf32>
    %cst_86 = arith.constant 6.400000e+01 : f32
    %351 = vector.broadcast %cst_86 : f32 to vector<16x1xf32>
    %352 = arith.divf %350, %351 : vector<16x1xf32>
    %353 = vector.broadcast %345 : vector<16x1xf32> to vector<16x64xf32>
    %354 = arith.subf %341, %353 : vector<16x64xf32>
    %cst_87 = arith.constant 9.99999974E-6 : f32
    %355 = vector.broadcast %cst_87 : f32 to vector<16x1xf32>
    %356 = arith.addf %352, %355 : vector<16x1xf32>
    %357 = math.rsqrt %356 : vector<16x1xf32>
    %358 = vector.broadcast %357 : vector<16x1xf32> to vector<16x64xf32>
    %359 = arith.mulf %354, %358 : vector<16x64xf32>
    %360 = vector.broadcast %207 : vector<1x64xf32> to vector<16x64xf32>
    %361 = arith.mulf %359, %360 : vector<16x64xf32>
    %362 = vector.broadcast %208 : vector<1x64xf32> to vector<16x64xf32>
    %363 = arith.addf %361, %362 : vector<16x64xf32>
    %364 = vector.shape_cast %363 : vector<16x64xf32> to vector<2x8x64xf32>
    %cst_88 = arith.constant dense<0.000000e+00> : vector<2x64xf32>
    %365 = vector.multi_reduction <add>, %364, %cst_88 [1] : vector<2x8x64xf32> to vector<2x64xf32>
    %cst_89 = arith.constant 8.000000e+00 : f32
    %366 = vector.broadcast %cst_89 : f32 to vector<2x64xf32>
    %367 = arith.divf %365, %366 : vector<2x64xf32>
    %368 = arith.truncf %367 : vector<2x64xf32> to vector<2x64xbf16>
    %c0_90 = arith.constant 0 : index
    %c0_91 = arith.constant 0 : index
    %369 = vector.load %arg10[%c0_90, %c0_91] : memref<64x3xbf16, #tpu.memory_space<vmem>>, vector<64x3xbf16>
    %cst_92 = arith.constant dense<0.000000e+00> : vector<2x3xf32>
    %370 = tpu.matmul %368, %369, %cst_92 {dimension_numbers = #tpu.dot_dimension_numbers<[1], [0], [0], [1], [0, 0, 1, 1], [], []>} : vector<2x64xbf16>, vector<64x3xbf16>, vector<2x3xf32> -> vector<2x3xf32>
    %c0_93 = arith.constant 0 : index
    %c0_94 = arith.constant 0 : index
    %371 = vector.load %arg11[%c0_93, %c0_94] : memref<1x3xf32, #tpu.memory_space<vmem>>, vector<1x3xf32>
    %372 = vector.broadcast %371 : vector<1x3xf32> to vector<2x3xf32>
    %373 = arith.addf %370, %372 : vector<2x3xf32>
    %c0_95 = arith.constant 0 : index
    %c0_96 = arith.constant 0 : index
    %374 = vector.load %arg12[%c0_95, %c0_96] : memref<2x3xf32, #tpu.memory_space<vmem>>, vector<2x3xf32>
    tpu.vector_store %arg12[%c0_95, %c0_96], %373 {strides = array<i32>} : memref<2x3xf32, #tpu.memory_space<vmem>>, vector<2x3xf32>,
    return
  }
}

</mosaic_0001>

<bundles_post_ra>
// kernel: tpu_custom_call.1
= control target key start
LH: loop header
LB: loop body
LE: loop exit
PB: predicated region body
PF: predicated region fallthrough
CT: control target
= control target key end

     0   :  { %17 = vsyncpa [#allocation3], 0  ;;  %s7873_s0 = inlined_call_operand.hbm [shape: f32[2,8,64], index: 0, kind: input, shape index: {}]   ;;  %s7874_s1 = inlined_call_operand.hbm [shape: s32[2,8], index: 1, kind: input, shape index: {}]   ;;  %s7875_s2 = inlined_call_operand.hbm [shape: f32[8,64], index: 2, kind: input, shape index: {}]   ;;  %s7876_s3 = inlined_call_operand.vmem [shape: bf16[2,64,192], index: 3, kind: input, shape index: {}]   ;;  %s7877_s4 = inlined_call_operand.hbm [shape: f32[2,1,192], index: 4, kind: input, shape index: {}]   ;;  %s7878_s5 = inlined_call_operand.vmem [shape: bf16[2,64,64], index: 5, kind: input, shape index: {}]   ;;  %s7879_s6 = inlined_call_operand.hbm [shape: bf16[2,64,128], index: 6, kind: input, shape index: {}]   ;;  %s7880_s7 = inlined_call_operand.hbm [shape: f32[2,1,128], index: 7, kind: input, shape index: {}]   ;;  %s7881_s8 = inlined_call_operand.vmem [shape: bf16[2,128,64], index: 8, kind: input, shape index: {}]   ;;  %s7882_s9 = inlined_call_operand.vmem [shape: f32[2,6,64], index: 9, kind: input, shape index: {}]   ;;  %s7883_s10 = inlined_call_operand.vmem [shape: bf16[64,3], index: 10, kind: input, shape index: {}]   ;;  %s7884_s11 = inlined_call_operand.vmem [shape: f32[1,3], index: 11, kind: input, shape index: {}]   ;;  %s7885_s12 = inlined_call_operand.hbm [shape: f32[2,3], index: 12, kind: output, shape index: {}]  }
   0x1   :  { %18 = vsyncpa [#allocation6], 0 }
   0x2   :  { %19 = vsyncpa [#allocation9], 0 }
   0x3   :  { %20 = vsyncpa [#allocation12], 0 }
   0x4   :  { %21 = vsyncpa [#allocation4], 0  ;;  %s6508_s21 = smov [#allocation5]   ;;  %s6509_s23 = smov [#allocation8]  }
   0x5   :  { %s40_s22 = sshll.u32 %s6508_s21, 4  ;;  %s61_s24 = sshll.u32 %s6509_s23, 4  ;;  %s41_s22 = int_to_ptr.vmem [resolvable:$true] %s40_s22  ;;  %s62_s24 = int_to_ptr.vmem [resolvable:$true] %s61_s24 }
   0x6   :  { %s6366_s25 = scalar_lea.vmem %s41_s22, 32  ;;  %p6371_p1 = scmp.lt.s32.totalorder %s41_s22, %s41_s22 }
   0x7   :  { %p6367_p0 = scmp.ne.s32.totalorder %s41_s22, %s6366_s25  ;;  %p6372_p2 = scmp.lt.s32.totalorder %s6366_s25, %s6366_s25 }
   0x9   :  { %p6373_p3 = por %p6372_p2, %p6371_p1 }
   0xb   :  { %p6374_p4 = pnand %p6373_p3, %p6367_p0 }
   0xd   :  { %6377 = shalt.err (!%p6374_p4)
}
   0xe   :  { %43 = dma.hbm_to_vmem [thread:$0]  %s7874_s1, 32, %s41_s22, [#allocation6]  }
   0xf   :  { %s6386_s28 = scalar_lea.vmem %s62_s24, 64  ;;  %p6391_p6 = scmp.lt.s32.totalorder %s62_s24, %s62_s24 }
  0x10   :  { %p6387_p5 = scmp.ne.s32.totalorder %s62_s24, %s6386_s28  ;;  %p6392_p7 = scmp.lt.s32.totalorder %s6386_s28, %s6386_s28 }
  0x12   :  { %p6393_p8 = por %p6392_p7, %p6391_p6 }
  0x14   :  { %p6394_p9 = pnand %p6393_p8, %p6387_p5 }
  0x16   :  { %6397 = shalt.err (!%p6394_p9)
}
  0x17   :  { %s6510_s29 = smov 32   ;;  %s6511_s30 = smov 2  }
  0x18   :  { %67 = dma.hbm_to_vmem [thread:$0]  %s7877_s4, 64, %s62_s24, [#allocation9], %s6510_s29, %s6510_s29, %s6511_s30  }
  0x19   :  { %s6512_s15 = smov [#allocation2]  }
  0x1a   :  { %s27_s16 = sshll.u32 %s6512_s15, 4  ;;  %s28_s16 = int_to_ptr.vmem [resolvable:$true] %s27_s16 }
  0x1b   :  { %s6406_s17 = scalar_lea.vmem %s28_s16, 256  ;;  %p6411_p11 = scmp.lt.s32.totalorder %s28_s16, %s28_s16 }
  0x1c   :  { %p6407_p10 = scmp.ne.s32.totalorder %s28_s16, %s6406_s17  ;;  %p6412_p12 = scmp.lt.s32.totalorder %s6406_s17, %s6406_s17 }
  0x1e   :  { %p6413_p13 = por %p6412_p12, %p6411_p11 }
  0x20   :  { %p6414_p0 = pnand %p6413_p13, %p6407_p10 }
  0x22   :  { %6417 = shalt.err (!%p6414_p0)
}
  0x23   :  { %s6513_s1 = smov 128   ;;  %s6514_s18 = smov 8  }
  0x24   :  { %33 = dma.hbm_to_vmem [thread:$0]  %s7873_s0, 256, %s28_s16, [#allocation3], %s6513_s1, %s6513_s1, %s6514_s18  }
  0x25   :  { %s6515_s21 = smov [#allocation7]   ;;  %s6516_s4 = smov [#allocation10]  }
  0x26   :  { %s50_s22 = sshll.u32 %s6515_s21, 4  ;;  %s75_s23 = sshll.u32 %s6516_s4, 4  ;;  %s51_s22 = int_to_ptr.vmem [resolvable:$true] %s50_s22  ;;  %s76_s23 = int_to_ptr.vmem [resolvable:$true] %s75_s23 }
  0x27   :  { %s6426_s24 = scalar_lea.vmem %s51_s22, 128  ;;  %p6431_p2 = scmp.lt.s32.totalorder %s51_s22, %s51_s22 }
  0x28   :  { %p6427_p1 = scmp.ne.s32.totalorder %s51_s22, %s6426_s24  ;;  %p6432_p3 = scmp.lt.s32.totalorder %s6426_s24, %s6426_s24 }
  0x2a   :  { %p6433_p4 = por %p6432_p3, %p6431_p2 }
  0x2c   :  { %p6434_p5 = pnand %p6433_p4, %p6427_p1 }
  0x2e   :  { %6437 = shalt.err (!%p6434_p5)
}
  0x2f   :  { %53 = dma.hbm_to_vmem [thread:$0]  %s7875_s2, 128, %s51_s22, [#allocation6]  }
  0x30   :  { %s6446_s27 = scalar_lea.vmem %s76_s23, 1024  ;;  %p6451_p7 = scmp.lt.s32.totalorder %s76_s23, %s76_s23 }
  0x31   :  { %p6447_p6 = scmp.ne.s32.totalorder %s76_s23, %s6446_s27  ;;  %p6452_p8 = scmp.lt.s32.totalorder %s6446_s27, %s6446_s27 }
  0x33   :  { %p6453_p9 = por %p6452_p8, %p6451_p7 }
  0x35   :  { %p6454_p10 = pnand %p6453_p9, %p6447_p6 }
  0x37   :  { %6457 = shalt.err (!%p6454_p10)
}
  0x38   :  { %s6517_s0 = smov 64   ;;  %s6518_s28 = smov 4  }
  0x39   :  { %81 = dma.hbm_to_vmem [thread:$0]  %s7879_s6, 1024, %s76_s23, [#allocation9], %s6517_s0, %s6517_s0, %s6518_s28  }
  0x3a   :  { %s6519_s14 = smov [#allocation11]  }
  0x3b   :  { %s87_s15 = sshll.u32 %s6519_s14, 4  ;;  %s88_s15 = int_to_ptr.vmem [resolvable:$true] %s87_s15 }
  0x3c   :  { %s6466_s2 = scalar_lea.vmem %s88_s15, 32  ;;  %p6471_p12 = scmp.lt.s32.totalorder %s88_s15, %s88_s15 }
  0x3d   :  { %p6467_p11 = scmp.ne.s32.totalorder %s88_s15, %s6466_s2  ;;  %p6472_p13 = scmp.lt.s32.totalorder %s6466_s2, %s6466_s2 }
  0x3f   :  { %p6473_p0 = por %p6472_p13, %p6471_p12 }
  0x41   :  { %p6474_p1 = pnand %p6473_p0, %p6467_p11 }
  0x43   :  { %6477 = shalt.err (!%p6474_p1)
}
  0x44   :  { %s6520_s16 = smov 16   ;;  %s6521_s17 = smov 1  }
  0x45   :  { %93 = dma.hbm_to_vmem [thread:$0]  %s7880_s7, 32, %s88_s15, [#allocation12], %s6520_s16, %s6520_s16, %s6521_s17  }
  0x46   :  { %6498 = dma.done.wait [#allocation3], 256  }
  0x47   :  { %6499 = vsyncadd [#allocation3], 4294967040 }
  0x48   :  { %6500 = dma.done.wait [#allocation6], 160  }
  0x49   :  { %6501 = vsyncadd [#allocation6], 4294967136 }
  0x4a   :  { %6502 = dma.done.wait [#allocation9], 1088  }
  0x4b   :  { %6503 = vsyncadd [#allocation9], 4294966208 }
  0x4c   :  { %6504 = dma.done.wait [#allocation12], 32  }
  0x4d   :  { %6505 = vsyncadd [#allocation12], 4294967264  ;;  %v6522_v0 = vmov 0   ;;  %v6523_v1 = vmov 0.0   ;;  %v6154_v2 = vld [vmem:[%s7876_s3 + $0x34] ss:$8 sps:$4 sm:$0xff]   ;;  %v133_v16 = vlaneseq }
  0x4e   :  { %283 = vmatprep.mubr.bf16.mxu0 %v6522_v0  ;;  %5435 = vmatprep.subr.bf16.mxu1 %v6523_v1  ;;  %v6156_v3 = vld [vmem:[%s7876_s3 + $0x30] ss:$8 sps:$4 sm:$0xff]   ;;  %v6157_v4 = vld [vmem:[%s7876_s3 + $0x24] ss:$8 sps:$4 sm:$0xff]   ;;  %v6159_v5 = vld [vmem:[%s7876_s3 + $0x20] ss:$8 sps:$4 sm:$0xff]  }
  0x4f   :  { %259 = vmatprep.subr.bf16.mxu0 %v6154_v2  ;;  %v6160_v6 = vld [vmem:[%s7876_s3 + $0x14] ss:$8 sps:$4 sm:$0xff]   ;;  %v6162_v7 = vld [vmem:[%s7876_s3 + $0x10] ss:$8 sps:$4 sm:$0xff]   ;;  %v121_v8 = vld [vmem:[#allocation2] sm:$0xff]  ;;  %vm247_vm0 = vcmask 523264  }
  0x50   :  { %260 = vmatpush1.bf16.msra.mxu0 %v6156_v3  ;;  %v122_v9 = vld [vmem:[#allocation2 + $0x8] sm:$0xff]  ;;  %v123_v10 = vld [vmem:[#allocation7] sm:$0xff]  ;;  %v6662_v17 = vshrl.u32 %v133_v16, 7  ;;  %v160_v19 = vld [vmem:[#allocation8] sm:$0x3]  ;;  %s6524_s2 = smov 120  }
  0x51   :  { %261 = vmatprep.subr.bf16.mxu0 %v6157_v4  ;;  %v6163_v11 = vld [vmem:[%s7876_s3 + $0x4] ss:$8 sps:$4 sm:$0xff]   ;;  %v6165_v12 = vld [vmem:[%s7876_s3] ss:$8 sps:$4 sm:$0xff]   ;;  %v6654_v13 = vadd.f32 %v123_v10, %v121_v8  ;;  %v6656_v14 = vadd.f32 %v123_v10, %v122_v9  ;;  %s6525_s17 = smov 112   ;;  %vm6526_vm1 = vmmov 0  }
  0x52   :  { %v6665_v18 = vsub.s32 0, %v6662_v17  ;;  %v6669_v21 = vsub.s32 1, %v6662_v17  ;;  %5437 = vmatprep.mubr.msk.bf16.mxu1 %vm6526_vm1, %v6523_v1  ;;  %s6527_s1 = smov 96   ;;  %s6528_s19 = smov 104   ;;  %vm417_vm2 = vcmask 64512   ;;  %vm1436_vm3 = vcmask 1043456  }
  0x53   :  { %v195_v15 = vpack.c.bf16 %v6656_v14, %v6654_v13  ;;  %s6529_s6 = smov 88   ;;  %s6530_s20 = smov 80   ;;  %vm2228_vm5 = vcmask 130048   ;;  %vm2231_vm6 = vcmask 195584   ;;  %vm2234_vm7 = vcmask 261120  }
  0x54   :  { %262 = vmatpush1.bf16.msra.mxu0 %v6159_v5  ;;  %v200_v20 = vrot.slane %v160_v19, %v6665_v18  ;;  %v204_v25 = vrot.slane %v160_v19, %v6669_v21  ;;  %s6531_s21 = smov 72   ;;  %s6533_s7 = smov 24   ;;  %vm2237_vm8 = vcmask 326656   ;;  %vm2240_vm9 = vcmask 392192  }
  0x55   :  { %263 = vmatprep.subr.bf16.mxu0 %v6160_v6  ;;  %s6534_s25 = smov 40   ;;  %s6535_s28 = smov 48   ;;  %vm2243_vm10 = vcmask 457728   ;;  %vm5015_vm11 = vcmask 1041409   ;;  %vm5085_vm12 = vcmask 17408  }
  0x56   :  { %s7886_s14 = smov 56  }
  0x58   :  { %264 = vmatpush1.bf16.msra.mxu0 %v6162_v7 }
  0x59   :  { %265 = vmatprep.subr.bf16.mxu0 %v6163_v11 }
  0x5c   :  { %266 = vmatpush1.bf16.msra.mxu0 %v6165_v12 }
  0x5d   :  { %5459 = vmatprep.subr.bf16.mxu0 %v6523_v1 }
  0x5f   :  { %5113 = vmatmul.mubr.msk.bf16.vlgmr.msra.gmra.mxu0 %vm247_vm0, %v195_v15 }
  0x60   :  { %5461 = vmatprep.mubr.msk.bf16.mxu0 %vm6526_vm1, %v6523_v1 }
 0x11f   :  { %v285_v22 = vpop.f32.mrf.mxu0 }
 0x120   :  { %v286_v23 = vadd.f32 %v285_v22, %v200_v20 }
 0x121   :  { %v287_v24 = vpop.f32.mrf.mxu0 }
 0x122   :  { %296 = vrot.lane.b32.xlu0 %v286_v23, %s6524_s2  ;;  %v6673_v29 = vadd.f32 %v287_v24, %v204_v25  ;;  %v338_v33 = vpack.c.bf16 %v286_v23, %v286_v23 }
 0x123   :  { %v289_v26 = vpop.f32.mrf.mxu0 }
 0x124   :  { %v290_v27 = vadd.f32 %v289_v26, %v200_v20 }
 0x125   :  { %v291_v28 = vpop.f32.mrf.mxu0 }
 0x126   :  { %v6675_v30 = vadd.f32 %v291_v28, %v204_v25  ;;  %298 = vrot.lane.b32.xlu0 %v290_v27, %s6524_s2  ;;  %v5949_v31 = vpack.i.bf16 %v290_v27, %v286_v23  ;;  %v339_v34 = vpack.c.bf16 %v290_v27, %v290_v27 }
 0x128   :  { %5950 = vrot.lane.b32.xlu1 %v5949_v31, %s6525_s17  ;;  %v6681_v32 = vpack.i.bf16 %v6675_v30, %v6673_v29 }
 0x12a   :  { %5960 = vrot.lane.b32.xlu0 %v5949_v31, %s6527_s1 }
 0x12c   :  { %5955 = vrot.lane.b32.xlu1 %v5949_v31, %s6528_s19 }
 0x12e   :  { %415 = vrot.lane.b32.xlu0 %v338_v33, %s6517_s0 }
 0x130   :  { %5965 = vrot.lane.b32.xlu1 %v5949_v31, %s6529_s6 }
 0x132   :  { %465 = vrot.lane.b32.xlu0 %v339_v34, %s6517_s0 }
 0x134   :  { %5970 = vrot.lane.b32.xlu1 %v5949_v31, %s6530_s20 }
 0x138   :  { %5975 = vrot.lane.b32.xlu1 %v5949_v31, %s6531_s21 }
 0x194   :  { %v297_v35 = vpop.permute.xlu0 %296 }
 0x195   :  { %v6694_v36 = vpack.c.bf16 %v297_v35, %v297_v35 }
 0x197   :  { %514 = vrot.lane.b32.xlu0 %v6694_v36, %s6517_s0 }
 0x198   :  { %v299_v37 = vpop.permute.xlu0 %298 }
 0x199   :  { %v6698_v38 = vpack.c.bf16 %v299_v37, %v299_v37 }
 0x19a   :  { %v5951_v39 = vpop.permute.xlu1 %5950 }
 0x19b   :  { %563 = vrot.lane.b32.xlu1 %v6698_v38, %s6517_s0  ;;  %v5953_v40 = vunpack.i.h.bf16 %v5951_v39  ;;  %v5952_v41 = vunpack.i.l.bf16 %v5951_v39 }
 0x19c   :  { %v5961_v42 = vpop.permute.xlu0 %5960 }
 0x19d   :  { %v6702_v43 = vpack.c.bf16 %v5953_v40, %v5953_v40  ;;  %v6704_v44 = vpack.c.bf16 %v5952_v41, %v5952_v41  ;;  %v5963_v49 = vunpack.i.h.bf16 %v5961_v42  ;;  %v5962_v53 = vunpack.i.l.bf16 %v5961_v42 }
 0x19e   :  { %v5956_v45 = vpop.permute.xlu1 %5955 }
 0x19f   :  { %661 = vrot.lane.b32.xlu1 %v6702_v43, %s6517_s0  ;;  %612 = vrot.lane.b32.xlu0 %v6704_v44, %s6517_s0  ;;  %v5958_v46 = vunpack.i.h.bf16 %v5956_v45  ;;  %v5957_v47 = vunpack.i.l.bf16 %v5956_v45  ;;  %v6720_v56 = vpack.c.bf16 %v5963_v49, %v5963_v49  ;;  %v6722_v57 = vpack.c.bf16 %v5962_v53, %v5962_v53 }
 0x1a0   :  { %v416_v48 = vpop.permute.xlu0 %415  ;;  %v398_v45 = vpack.c.bf16 %v6673_v29, %v6673_v29  ;;  %v399_v29 = vpack.c.bf16 %v6675_v30, %v6675_v30 }
 0x1a1   :  { %v422_v50 = vsel %vm417_vm2, %v416_v48, 0  ;;  %v6711_v51 = vpack.c.bf16 %v5958_v46, %v5958_v46  ;;  %v6713_v52 = vpack.c.bf16 %v5957_v47, %v5957_v47 }
 0x1a2   :  { %v5966_v54 = vpop.permute.xlu1 %5965  ;;  %5436 = vmatpush3.bf16.xpose.msra.mxu1 %v422_v50  ;;  %v1438_v48 = vsel %vm1436_vm3, %v398_v45, 0  ;;  %v1484_v49 = vsel %vm1436_vm3, %v399_v29, 0  ;;  %v6532_v50 = vmov 1966171168  }
 0x1a3   :  { %759 = vrot.lane.b32.xlu1 %v6711_v51, %s6517_s0  ;;  %710 = vrot.lane.b32.xlu0 %v6713_v52, %s6517_s0  ;;  %v5968_v58 = vunpack.i.h.bf16 %v5966_v54  ;;  %v5967_v59 = vunpack.i.l.bf16 %v5966_v54 }
 0x1a4   :  { %5441 = vmatprep.subr.bf16.mxu1 %v6523_v1  ;;  %v466_v55 = vpop.permute.xlu0 %465 }
 0x1a5   :  { %v471_v61 = vsel %vm417_vm2, %v466_v55, 0  ;;  %v6730_v62 = vpack.c.bf16 %v5968_v58, %v5968_v58  ;;  %v6732_v63 = vpack.c.bf16 %v5967_v59, %v5967_v59 }
 0x1a6   :  { %v5971_v60 = vpop.permute.xlu1 %5970 }
 0x1a7   :  { %857 = vrot.lane.b32.xlu1 %v6720_v56, %s6517_s0  ;;  %808 = vrot.lane.b32.xlu0 %v6722_v57, %s6517_s0  ;;  %v5973_v2 = vunpack.i.h.bf16 %v5971_v60  ;;  %v5972_v3 = vunpack.i.l.bf16 %v5971_v60 }
 0x1a9   :  { %5438 = vmatmul.mubr.msk.bf16.vlgmr.msra.gmra.mxu1 %vm417_vm2, %v338_v33  ;;  %v6741_v5 = vpack.c.bf16 %v5973_v2, %v5973_v2  ;;  %v6743_v6 = vpack.c.bf16 %v5972_v3, %v5972_v3 }
 0x1aa   :  { %v5976_v4 = vpop.permute.xlu1 %5975  ;;  %5442 = vmatpush3.bf16.xpose.msra.mxu1 %v471_v61  ;;  %5443 = vmatprep.mubr.msk.bf16.mxu1 %vm6526_vm1, %v6523_v1 }
 0x1ab   :  { %955 = vrot.lane.b32.xlu1 %v6730_v62, %s6517_s0  ;;  %906 = vrot.lane.b32.xlu0 %v6732_v63, %s6517_s0  ;;  %v5978_v7 = vunpack.i.h.bf16 %v5976_v4  ;;  %v5977_v8 = vunpack.i.l.bf16 %v5976_v4 }
 0x1ac   :  { %5447 = vmatprep.subr.bf16.mxu1 %v6523_v1 }
 0x1ad   :  { %v6750_v9 = vpack.c.bf16 %v5978_v7, %v5978_v7  ;;  %v6752_v10 = vpack.c.bf16 %v5977_v8, %v5977_v8 }
 0x1af   :  { %1053 = vrot.lane.b32.xlu1 %v6741_v5, %s6517_s0  ;;  %1004 = vrot.lane.b32.xlu0 %v6743_v6, %s6517_s0 }
 0x1b1   :  { %5444 = vmatmul.mubr.msk.bf16.vlgmr.msra.gmra.mxu1 %vm417_vm2, %v339_v34 }
 0x1b2   :  { %5449 = vmatprep.mubr.msk.bf16.mxu1 %vm6526_vm1, %v6523_v1 }
 0x1b3   :  { %1151 = vrot.lane.b32.xlu1 %v6750_v9, %s6517_s0  ;;  %1102 = vrot.lane.b32.xlu0 %v6752_v10, %s6517_s0 }
 0x209   :  { %v515_v11 = vpop.permute.xlu0 %514 }
 0x20a   :  { %v520_v12 = vsel %vm417_vm2, %v515_v11, 0 }
 0x20b   :  { %5448 = vmatpush3.bf16.xpose.msra.mxu1 %v520_v12 }
 0x20c   :  { %5453 = vmatprep.subr.bf16.mxu1 %v6523_v1 }
 0x20d   :  { %v564_v15 = vpop.permute.xlu1 %563 }
 0x20e   :  { %v569_v19 = vsel %vm417_vm2, %v564_v15, 0 }
 0x211   :  { %v613_v16 = vpop.permute.xlu0 %612  ;;  %v662_v22 = vpop.permute.xlu1 %661 }
 0x212   :  { %v618_v20 = vsel %vm417_vm2, %v613_v16, 0  ;;  %5450 = vmatmul.mubr.msk.bf16.vlgmr.msra.gmra.mxu1 %vm417_vm2, %v6694_v36  ;;  %v667_v24 = vsel %vm417_vm2, %v662_v22, 0 }
 0x213   :  { %5454 = vmatpush3.bf16.xpose.msra.mxu1 %v569_v19  ;;  %5460 = vmatpush3.bf16.xpose.msra.mxu0 %v618_v20 }
 0x214   :  { %5455 = vmatprep.mubr.msk.bf16.mxu1 %vm6526_vm1, %v6523_v1  ;;  %5465 = vmatprep.subr.bf16.mxu1 %v6523_v1 }
 0x215   :  { %5471 = vmatprep.subr.bf16.mxu0 %v6523_v1  ;;  %v711_v23 = vpop.permute.xlu0 %710  ;;  %v760_v26 = vpop.permute.xlu1 %759 }
 0x216   :  { %v716_v25 = vsel %vm417_vm2, %v711_v23, 0  ;;  %v765_v28 = vsel %vm417_vm2, %v760_v26, 0 }
 0x219   :  { %v809_v27 = vpop.permute.xlu0 %808  ;;  %v858_v33 = vpop.permute.xlu1 %857 }
 0x21a   :  { %5456 = vmatmul.mubr.msk.bf16.vlgmr.msra.gmra.mxu1 %vm417_vm2, %v6698_v38  ;;  %5462 = vmatmul.mubr.msk.bf16.vlgmr.msra.gmra.mxu0 %vm417_vm2, %v6704_v44  ;;  %v814_v31 = vsel %vm417_vm2, %v809_v27, 0  ;;  %v863_v35 = vsel %vm417_vm2, %v858_v33, 0 }
 0x21b   :  { %5466 = vmatpush3.bf16.xpose.msra.mxu1 %v667_v24  ;;  %5472 = vmatpush3.bf16.xpose.msra.mxu0 %v716_v25 }
 0x21c   :  { %5467 = vmatprep.mubr.msk.bf16.mxu1 %vm6526_vm1, %v6523_v1  ;;  %5473 = vmatprep.mubr.msk.bf16.mxu0 %vm6526_vm1, %v6523_v1 }
 0x21d   :  { %5477 = vmatprep.subr.bf16.mxu1 %v6523_v1  ;;  %5483 = vmatprep.subr.bf16.mxu0 %v6523_v1  ;;  %v907_v34 = vpop.permute.xlu0 %906  ;;  %v956_v37 = vpop.permute.xlu1 %955 }
 0x21e   :  { %v912_v36 = vsel %vm417_vm2, %v907_v34, 0  ;;  %v961_v39 = vsel %vm417_vm2, %v956_v37, 0 }
 0x221   :  { %v1005_v38 = vpop.permute.xlu0 %1004  ;;  %v1054_v41 = vpop.permute.xlu1 %1053 }
 0x222   :  { %5468 = vmatmul.mubr.msk.bf16.vlgmr.msra.gmra.mxu1 %vm417_vm2, %v6702_v43  ;;  %5474 = vmatmul.mubr.msk.bf16.vlgmr.msra.gmra.mxu0 %vm417_vm2, %v6713_v52  ;;  %v1010_v40 = vsel %vm417_vm2, %v1005_v38, 0  ;;  %v1059_v43 = vsel %vm417_vm2, %v1054_v41, 0  ;;  %v126_v52 = vld [vmem:[#allocation5] sm:$0x3] }
 0x223   :  { %5478 = vmatpush3.bf16.xpose.msra.mxu1 %v765_v28  ;;  %5484 = vmatpush3.bf16.xpose.msra.mxu0 %v814_v31  ;;  %vm127_vm4 = vcmp.eq.s32.totalorder %v126_v52, 0 }
 0x224   :  { %5479 = vmatprep.mubr.msk.bf16.mxu1 %vm6526_vm1, %v6523_v1  ;;  %5485 = vmatprep.mubr.msk.bf16.mxu0 %vm6526_vm1, %v6523_v1  ;;  %v128_v30 = vsel %vm127_vm4, -1e+09, %v6523_v1 }
 0x225   :  { %5489 = vmatprep.subr.bf16.mxu1 %v6523_v1  ;;  %5495 = vmatprep.subr.bf16.mxu0 %v6523_v1  ;;  %v1103_v42 = vpop.permute.xlu0 %1102  ;;  %v1152_v46 = vpop.permute.xlu1 %1151 }
 0x226   :  { %v1108_v44 = vsel %vm417_vm2, %v1103_v42, 0  ;;  %v1157_v47 = vsel %vm417_vm2, %v1152_v46, 0 }
 0x22a   :  { %5480 = vmatmul.mubr.msk.bf16.vlgmr.msra.gmra.mxu1 %vm417_vm2, %v6711_v51  ;;  %5486 = vmatmul.mubr.msk.bf16.vlgmr.msra.gmra.mxu0 %vm417_vm2, %v6722_v57  ;;  %v131_v51 = vunpack.c.l.s4 %v6532_v50 }
 0x22b   :  { %5490 = vmatpush3.bf16.xpose.msra.mxu1 %v863_v35  ;;  %5496 = vmatpush3.bf16.xpose.msra.mxu0 %v912_v36 }
 0x22c   :  { %5491 = vmatprep.mubr.msk.bf16.mxu1 %vm6526_vm1, %v6523_v1  ;;  %5497 = vmatprep.mubr.msk.bf16.mxu0 %vm6526_vm1, %v6523_v1  ;;  %v132_v53 = vunpack.c.0.s8 %v131_v51 }
 0x22d   :  { %5501 = vmatprep.subr.bf16.mxu1 %v6523_v1  ;;  %5507 = vmatprep.subr.bf16.mxu0 %v6523_v1 }
 0x22e   :  { %v135_v54 = vsub.s32 %v132_v53, %v6662_v17 }
 0x230   :  { %v136_v55 = vrot.slane %v128_v30, %v135_v54 }
 0x232   :  { %5492 = vmatmul.mubr.msk.bf16.vlgmr.msra.gmra.mxu1 %vm417_vm2, %v6720_v56  ;;  %5498 = vmatmul.mubr.msk.bf16.vlgmr.msra.gmra.mxu0 %vm417_vm2, %v6732_v63  ;;  %v144_v56 = vrot.slane %v136_v55, %v135_v54  ;;  %v137_v57 = vcombine.high %v136_v55, %v136_v55 }
 0x233   :  { %5502 = vmatpush3.bf16.xpose.msra.mxu1 %v961_v39  ;;  %5508 = vmatpush3.bf16.xpose.msra.mxu0 %v1010_v40 }
 0x234   :  { %5503 = vmatprep.mubr.msk.bf16.mxu1 %vm6526_vm1, %v6523_v1  ;;  %5509 = vmatprep.mubr.msk.bf16.mxu0 %vm6526_vm1, %v6523_v1  ;;  %v6855_v58 = vrot.slane %v144_v56, %v6665_v18 }
 0x235   :  { %5513 = vmatprep.subr.bf16.mxu1 %v6523_v1  ;;  %5519 = vmatprep.subr.bf16.mxu0 %v6523_v1 }
 0x23a   :  { %5504 = vmatmul.mubr.msk.bf16.vlgmr.msra.gmra.mxu1 %vm417_vm2, %v6730_v62  ;;  %5510 = vmatmul.mubr.msk.bf16.vlgmr.msra.gmra.mxu0 %vm417_vm2, %v6743_v6  ;;  %v151_v62 = vrot.slane %v137_v57, %v135_v54 }
 0x23b   :  { %5514 = vmatpush3.bf16.xpose.msra.mxu1 %v1059_v43  ;;  %5520 = vmatpush3.bf16.xpose.msra.mxu0 %v1108_v44 }
 0x23c   :  { %5515 = vmatprep.mubr.msk.bf16.mxu1 %vm6526_vm1, %v6523_v1  ;;  %5521 = vmatprep.mubr.msk.bf16.mxu0 %vm6526_vm1, %v6523_v1 }
 0x23d   :  { %5525 = vmatprep.subr.bf16.mxu1 %v6523_v1  ;;  %5531 = vmatprep.subr.bf16.mxu0 %v6523_v1 }
 0x242   :  { %5516 = vmatmul.mubr.msk.bf16.vlgmr.msra.gmra.mxu1 %vm417_vm2, %v6741_v5  ;;  %5522 = vmatmul.mubr.msk.bf16.vlgmr.msra.gmra.mxu0 %vm417_vm2, %v6752_v10  ;;  %v6863_v5 = vrot.slane %v151_v62, %v6665_v18 }
 0x243   :  { %5526 = vmatpush3.bf16.xpose.msra.mxu1 %v1157_v47  ;;  %5532 = vmatpush3.bf16.msra.mxu0 %v1438_v48 }
 0x244   :  { %5527 = vmatprep.mubr.msk.bf16.mxu1 %vm6526_vm1, %v6523_v1  ;;  %5537 = vmatprep.subr.bf16.mxu1 %v6523_v1 }
 0x245   :  { %5533 = vmatprep.mubr.msk.bf16.mxu0 %vm6526_vm1, %v6523_v1  ;;  %5543 = vmatprep.subr.bf16.mxu0 %v6523_v1 }
 0x24a   :  { %5528 = vmatmul.mubr.msk.bf16.vlgmr.msra.gmra.mxu1 %vm417_vm2, %v6750_v9 }
 0x24b   :  { %5538 = vmatpush3.bf16.msra.mxu1 %v1484_v49  ;;  %5539 = vmatprep.mubr.msk.bf16.mxu1 %vm6526_vm1, %v6523_v1 }
 0x24c   :  { %5549 = vmatprep.subr.bf16.mxu1 %v6523_v1 }
 0x269   :  { %v458_v59 = vpop.f32.mrf.mxu1 }
 0x26a   :  { %v1199_v60 = vmul.f32 0.35355338, %v458_v59 }
 0x26b   :  { %v5439_v61 = vpop.f32.mrf.mxu1 }
 0x26c   :  { %v6858_v63 = vadd.f32 %v6855_v58, %v1199_v60 }
 0x26d   :  { %v461_v2 = vpop.f32.mrf.mxu1 }
 0x26e   :  { %v1241_v3 = vsel %vm417_vm2, %v6858_v63, -inf }
 0x26f   :  { %1242 = vmax.xlane.f32.xlu0 %v1241_v3  ;;  %v5440_v4 = vpop.f32.mrf.mxu1 }
 0x271   :  { %v507_v6 = vpop.f32.mrf.mxu1 }
 0x272   :  { %v1200_v7 = vmul.f32 0.35355338, %v507_v6 }
 0x273   :  { %v5445_v8 = vpop.f32.mrf.mxu1 }
 0x274   :  { %v6866_v9 = vadd.f32 %v6863_v5, %v1200_v7 }
 0x275   :  { %v510_v10 = vpop.f32.mrf.mxu1 }
 0x276   :  { %v1244_v11 = vsel %vm417_vm2, %v6866_v9, -inf }
 0x277   :  { %1245 = vmax.xlane.f32.xlu1 %v1244_v11  ;;  %v5446_v12 = vpop.f32.mrf.mxu1 }
 0x2d2   :  { %v556_v15 = vpop.f32.mrf.mxu1 }
 0x2d3   :  { %v1201_v16 = vmul.f32 0.35355338, %v556_v15 }
 0x2d4   :  { %v5451_v19 = vpop.f32.mrf.mxu1 }
 0x2d5   :  { %v6871_v20 = vadd.f32 %v6855_v58, %v1201_v16 }
 0x2d6   :  { %v559_v22 = vpop.f32.mrf.mxu1 }
 0x2d7   :  { %v1247_v23 = vsel %vm417_vm2, %v6871_v20, -inf }
 0x2d8   :  { %1248 = vmax.xlane.f32.xlu0 %v1247_v23  ;;  %v5452_v24 = vpop.f32.mrf.mxu1 }
 0x2da   :  { %v605_v25 = vpop.f32.mrf.mxu1  ;;  %v654_v26 = vpop.f32.mrf.mxu0 }
 0x2db   :  { %v1202_v27 = vmul.f32 0.35355338, %v605_v25  ;;  %v1203_v28 = vmul.f32 0.35355338, %v654_v26 }
 0x2dc   :  { %v5457_v31 = vpop.f32.mrf.mxu1  ;;  %v5463_v33 = vpop.f32.mrf.mxu0 }
 0x2dd   :  { %v6876_v34 = vadd.f32 %v6863_v5, %v1202_v27  ;;  %v6879_v35 = vadd.f32 %v6855_v58, %v1203_v28 }
 0x2de   :  { %v608_v36 = vpop.f32.mrf.mxu1  ;;  %v657_v37 = vpop.f32.mrf.mxu0 }
 0x2df   :  { %v1250_v38 = vsel %vm417_vm2, %v6876_v34, -inf  ;;  %v1253_v39 = vsel %vm417_vm2, %v6879_v35, -inf }
 0x2e0   :  { %1251 = vmax.xlane.f32.xlu0 %v1250_v38  ;;  %v5458_v40 = vpop.f32.mrf.mxu1  ;;  %1254 = vmax.xlane.f32.xlu1 %v1253_v39  ;;  %v5464_v41 = vpop.f32.mrf.mxu0 }
 0x2e2   :  { %v703_v42 = vpop.f32.mrf.mxu1  ;;  %v6885_v43 = vpop.f32.mrf.mxu0 }
 0x2e3   :  { %v1204_v44 = vmul.f32 0.35355338, %v703_v42 }
 0x2e4   :  { %v5469_v45 = vpop.f32.mrf.mxu1  ;;  %v5475_v46 = vpop.f32.mrf.mxu0 }
 0x2e5   :  { %v6888_v47 = vadd.f32 %v6863_v5, %v1204_v44 }
 0x2e6   :  { %v706_v48 = vpop.f32.mrf.mxu1  ;;  %v755_v29 = vpop.f32.mrf.mxu0 }
 0x2e7   :  { %v1256_v49 = vsel %vm417_vm2, %v6888_v47, -inf }
 0x2e8   :  { %1257 = vmax.xlane.f32.xlu0 %v1256_v49  ;;  %v5470_v50 = vpop.f32.mrf.mxu1  ;;  %v5476_v51 = vpop.f32.mrf.mxu0 }
 0x2ea   :  { %v801_v52 = vpop.f32.mrf.mxu1  ;;  %v850_v53 = vpop.f32.mrf.mxu0 }
 0x2eb   :  { %v1206_v54 = vmul.f32 0.35355338, %v801_v52  ;;  %v1205_v52 = vmul.f32 0.35355338, %v6885_v43 }
 0x2ec   :  { %v5481_v30 = vpop.f32.mrf.mxu1  ;;  %v5487_v55 = vpop.f32.mrf.mxu0 }
 0x2ed   :  { %v6893_v56 = vadd.f32 %v6863_v5, %v1206_v54 }
 0x2ee   :  { %v804_v57 = vpop.f32.mrf.mxu1  ;;  %v853_v59 = vpop.f32.mrf.mxu0 }
 0x2ef   :  { %v1262_v60 = vsel %vm417_vm2, %v6893_v56, -inf  ;;  %v1207_v59 = vmul.f32 0.35355338, %v850_v53 }
 0x2f0   :  { %1263 = vmax.xlane.f32.xlu0 %v1262_v60  ;;  %v5482_v61 = vpop.f32.mrf.mxu1  ;;  %v5488_v62 = vpop.f32.mrf.mxu0 }
 0x2f1   :  { %5980 = vrot.lane.b32.xlu1 %v6681_v32, %s6524_s2  ;;  %v6918_v62 = vadd.f32 %v6855_v58, %v1205_v52 }
 0x2f2   :  { %v899_v2 = vpop.f32.mrf.mxu1  ;;  %v948_v3 = vpop.f32.mrf.mxu0 }
 0x2f3   :  { %v1208_v4 = vmul.f32 0.35355338, %v899_v2  ;;  %v1209_v43 = vmul.f32 0.35355338, %v948_v3  ;;  %v1259_v53 = vsel %vm417_vm2, %v6918_v62, -inf }
 0x2f4   :  { %v5493_v6 = vpop.f32.mrf.mxu1  ;;  %v5499_v7 = vpop.f32.mrf.mxu0 }
 0x2f5   :  { %v6900_v8 = vadd.f32 %v6863_v5, %v1208_v4  ;;  %v6937_v3 = vadd.f32 %v6855_v58, %v1209_v43 }
 0x2f6   :  { %v902_v10 = vpop.f32.mrf.mxu1  ;;  %v951_v11 = vpop.f32.mrf.mxu0 }
 0x2f7   :  { %v1268_v12 = vsel %vm417_vm2, %v6900_v8, -inf }
 0x2f8   :  { %1269 = vmax.xlane.f32.xlu0 %v1268_v12  ;;  %v5494_v15 = vpop.f32.mrf.mxu1  ;;  %v5500_v16 = vpop.f32.mrf.mxu0 }
 0x2f9   :  { %v1243_v30 = vpop.xlane.xlu0 %1242  ;;  %v1271_v16 = vsel %vm417_vm2, %v6937_v3, -inf }
 0x2fa   :  { %v997_v19 = vpop.f32.mrf.mxu1  ;;  %v1046_v22 = vpop.f32.mrf.mxu0  ;;  %v1289_v60 = vsub.f32 %v6858_v63, %v1243_v30  ;;  %v6930_v63 = vadd.f32 %v6855_v58, %v1207_v59 }
 0x2fb   :  { %v1210_v23 = vmul.f32 0.35355338, %v997_v19  ;;  %v1211_v11 = vmul.f32 0.35355338, %v1046_v22 }
 0x2fc   :  { %v5505_v24 = vpop.f32.mrf.mxu1  ;;  %v5511_v25 = vpop.f32.mrf.mxu0  ;;  %v1305_v7 = vmul.f32 1.442695, %v1289_v60  ;;  %v1265_v12 = vsel %vm417_vm2, %v6930_v63, -inf }
 0x2fd   :  { %v6905_v26 = vadd.f32 %v6863_v5, %v1210_v23  ;;  %v6942_v19 = vadd.f32 %v6855_v58, %v1211_v11 }
 0x2fe   :  { %v1000_v27 = vpop.f32.mrf.mxu1  ;;  %v1049_v28 = vpop.f32.mrf.mxu0 }
 0x2ff   :  { %v1274_v31 = vsel %vm417_vm2, %v6905_v26, -inf  ;;  %v1277_v23 = vsel %vm417_vm2, %v6942_v19, -inf }
 0x300   :  { %v1246_v33 = vpop.xlane.xlu1 %1245  ;;  %1275 = vmax.xlane.f32.xlu0 %v1274_v31  ;;  %v5506_v36 = vpop.f32.mrf.mxu1 }
 0x301   :  { %v1290_v37 = vsub.f32 %v6866_v9, %v1246_v33  ;;  %v5512_v38 = vpop.f32.mrf.mxu0 }
 0x302   :  { %v1095_v39 = vpop.f32.mrf.mxu1 }
 0x303   :  { %v1307_v40 = vmul.f32 1.442695, %v1290_v37  ;;  %v1212_v41 = vmul.f32 0.35355338, %v1095_v39  ;;  %v1144_v42 = vpop.f32.mrf.mxu0 }
 0x304   :  { %v5517_v44 = vpop.f32.mrf.mxu1  ;;  %v1213_v15 = vmul.f32 0.35355338, %v1144_v42 }
 0x305   :  { %6214 = vpow2.f32 %v1307_v40  ;;  %v5523_v45 = vpop.f32.mrf.mxu0  ;;  %v6911_v46 = vadd.f32 %v6863_v5, %v1212_v41 }
 0x306   :  { %v1098_v48 = vpop.f32.mrf.mxu1  ;;  %6216 = vpow2.f32 %v1305_v7  ;;  %v6947_v22 = vadd.f32 %v6855_v58, %v1213_v15 }
 0x307   :  { %v1147_v29 = vpop.f32.mrf.mxu0  ;;  %v1280_v49 = vsel %vm417_vm2, %v6911_v46, -inf }
 0x308   :  { %1281 = vmax.xlane.f32.xlu0 %v1280_v49  ;;  %v5518_v50 = vpop.f32.mrf.mxu1  ;;  %v1283_v24 = vsel %vm417_vm2, %v6947_v22, -inf }
 0x309   :  { %v5524_v51 = vpop.f32.mrf.mxu0 }
 0x30a   :  { %v1193_v9 = vpop.f32.mrf.mxu1 }
 0x30b   :  { %v1214_v57 = vmul.f32 0.35355338, %v1193_v9 }
 0x30c   :  { %v5529_v54 = vpop.f32.mrf.mxu1 }
 0x30d   :  { %v6925_v6 = vadd.f32 %v6863_v5, %v1214_v57 }
 0x30e   :  { %v1196_v55 = vpop.f32.mrf.mxu1 }
 0x30f   :  { %v1286_v10 = vsel %vm417_vm2, %v6925_v6, -inf }
 0x310   :  { %v5530_v61 = vpop.f32.mrf.mxu1 }
 0x312   :  { %v6920_v2 = vpop.eup %6214 }
 0x313   :  { %v1340_v4 = vsel %vm417_vm2, %v6920_v2, 0.0  ;;  %v6951_v25 = vpop.eup %6216 }
 0x314   :  { %1341 = vadd.xlane.f32.xlu0 %v1340_v4  ;;  %v1337_v27 = vsel %vm417_vm2, %v6951_v25, 0.0 }
 0x315   :  { %1260 = vmax.xlane.f32.xlu1 %v1259_v53 }
 0x318   :  { %1287 = vmax.xlane.f32.xlu0 %v1286_v10 }
 0x319   :  { %1266 = vmax.xlane.f32.xlu1 %v1265_v12 }
 0x31d   :  { %1272 = vmax.xlane.f32.xlu1 %v1271_v16 }
 0x321   :  { %1278 = vmax.xlane.f32.xlu1 %v1277_v23 }
 0x325   :  { %1284 = vmax.xlane.f32.xlu1 %v1283_v24 }
 0x329   :  { %1338 = vadd.xlane.f32.xlu1 %v1337_v27 }
 0x32e   :  { %5985 = vrot.lane.b32.xlu0 %v6681_v32, %s6525_s17 }
 0x33a   :  { %5990 = vrot.lane.b32.xlu1 %v6681_v32, %s6528_s19 }
 0x361   :  { %v1249_v28 = vpop.xlane.xlu0 %1248 }
 0x362   :  { %v1291_v31 = vsub.f32 %v6871_v20, %v1249_v28 }
 0x364   :  { %v1309_v33 = vmul.f32 1.442695, %v1291_v31 }
 0x366   :  { %6218 = vpow2.f32 %v1309_v33 }
 0x369   :  { %v1255_v36 = vpop.xlane.xlu1 %1254  ;;  %v1252_v37 = vpop.xlane.xlu0 %1251 }
 0x36a   :  { %v1293_v38 = vsub.f32 %v6879_v35, %v1255_v36  ;;  %v1292_v39 = vsub.f32 %v6876_v34, %v1252_v37 }
 0x36c   :  { %v1313_v40 = vmul.f32 1.442695, %v1293_v38  ;;  %v1311_v41 = vmul.f32 1.442695, %v1292_v39 }
 0x36d   :  { %v6979_v30 = vpop.permute.xlu1 %5980 }
 0x36e   :  { %6220 = vpow2.f32 %v1313_v40  ;;  %v5983_v15 = vunpack.i.h.bf16 %v6979_v30 }
 0x36f   :  { %6222 = vpow2.f32 %v1311_v41 }
 0x370   :  { %v401_v27 = vpack.c.bf16 %v5983_v15, %v5983_v15 }
 0x371   :  { %v1258_v42 = vpop.xlane.xlu0 %1257 }
 0x372   :  { %v1294_v44 = vsub.f32 %v6888_v47, %v1258_v42  ;;  %v1576_v36 = vsel %vm1436_vm3, %v401_v27, 0 }
 0x373   :  { %v6963_v45 = vpop.eup %6218 }
 0x374   :  { %v1315_v48 = vmul.f32 1.442695, %v1294_v44  ;;  %v1343_v20 = vsel %vm417_vm2, %v6963_v45, 0.0 }
 0x375   :  { %1344 = vadd.xlane.f32.xlu1 %v1343_v20 }
 0x376   :  { %6224 = vpow2.f32 %v1315_v48 }
 0x379   :  { %v1264_v51 = vpop.xlane.xlu0 %1263 }
 0x37a   :  { %v1296_v60 = vsub.f32 %v6893_v56, %v1264_v51 }
 0x37b   :  { %v6967_v29 = vpop.eup %6220 }
 0x37c   :  { %v6969_v35 = vpop.eup %6222  ;;  %v1349_v34 = vsel %vm417_vm2, %v6967_v29, 0.0  ;;  %v1319_v7 = vmul.f32 1.442695, %v1296_v60 }
 0x37d   :  { %1350 = vadd.xlane.f32.xlu1 %v1349_v34  ;;  %v1346_v49 = vsel %vm417_vm2, %v6969_v35, 0.0 }
 0x37e   :  { %1347 = vadd.xlane.f32.xlu0 %v1346_v49 }
 0x381   :  { %v1270_v9 = vpop.xlane.xlu0 %1269 }
 0x382   :  { %v1298_v53 = vsub.f32 %v6900_v8, %v1270_v9 }
 0x383   :  { %v6975_v47 = vpop.eup %6224 }
 0x384   :  { %v1352_v50 = vsel %vm417_vm2, %v6975_v47, 0.0  ;;  %v1323_v16 = vmul.f32 1.442695, %v1298_v53 }
 0x385   :  { %1353 = vadd.xlane.f32.xlu0 %v1352_v50  ;;  %v5982_v50 = vunpack.i.l.bf16 %v6979_v30 }
 0x389   :  { %v1276_v52 = vpop.xlane.xlu0 %1275 }
 0x38a   :  { %v1300_v8 = vsub.f32 %v6905_v26, %v1276_v52 }
 0x38c   :  { %v1327_v37 = vmul.f32 1.442695, %v1300_v8 }
 0x391   :  { %v1282_v54 = vpop.xlane.xlu0 %1281 }
 0x392   :  { %v1302_v39 = vsub.f32 %v6911_v46, %v1282_v54  ;;  %v400_v54 = vpack.c.bf16 %v5982_v50, %v5982_v50 }
 0x394   :  { %v1331_v44 = vmul.f32 1.442695, %v1302_v39  ;;  %v1530_v30 = vsel %vm1436_vm3, %v400_v54, 0 }
 0x39d   :  { %v1342_v55 = vpop.xlane.xlu0 %1341 }
 0x39e   :  { %6226 = vrcp.f32 %v1342_v55  ;;  %v1261_v57 = vpop.xlane.xlu1 %1260 }
 0x39f   :  { %v1295_v59 = vsub.f32 %v6918_v62, %v1261_v57 }
 0x3a1   :  { %v1317_v61 = vmul.f32 1.442695, %v1295_v59 }
 0x3a2   :  { %v1267_v4 = vpop.xlane.xlu1 %1266 }
 0x3a3   :  { %6228 = vpow2.f32 %v1317_v61  ;;  %v1297_v43 = vsub.f32 %v6930_v63, %v1267_v4 }
 0x3a5   :  { %v1321_v10 = vmul.f32 1.442695, %v1297_v43  ;;  %v1288_v43 = vpop.xlane.xlu0 %1287 }
 0x3a6   :  { %v1273_v11 = vpop.xlane.xlu1 %1272 }
 0x3a7   :  { %6230 = vpow2.f32 %v1321_v10  ;;  %v1299_v12 = vsub.f32 %v6937_v3, %v1273_v11 }
 0x3a8   :  { %6232 = vpow2.f32 %v1319_v7  ;;  %v1304_v7 = vsub.f32 %v6925_v6, %v1288_v43 }
 0x3a9   :  { %v1325_v62 = vmul.f32 1.442695, %v1299_v12  ;;  %v5986_v6 = vpop.permute.xlu0 %5985 }
 0x3aa   :  { %v1279_v23 = vpop.xlane.xlu1 %1278  ;;  %v1335_v53 = vmul.f32 1.442695, %v1304_v7 }
 0x3ab   :  { %v6227_v56 = vpop.eup %6226  ;;  %6234 = vpow2.f32 %v1325_v62  ;;  %v1301_v24 = vsub.f32 %v6942_v19, %v1279_v23  ;;  %v5987_v23 = vunpack.i.l.bf16 %v5986_v6 }
 0x3ac   :  { %v1402_v63 = vmul.f32 %v6227_v56, %v6920_v2  ;;  %6236 = vpow2.f32 %v1323_v16 }
 0x3ad   :  { %v1329_v28 = vmul.f32 1.442695, %v1301_v24  ;;  %v402_v24 = vpack.c.bf16 %v5987_v23, %v5987_v23 }
 0x3ae   :  { %v1285_v31 = vpop.xlane.xlu1 %1284  ;;  %v1418_v33 = vpack.c.bf16 %v1402_v63, %v1402_v63 }
 0x3af   :  { %6238 = vpow2.f32 %v1329_v28  ;;  %v1303_v38 = vsub.f32 %v6947_v22, %v1285_v31  ;;  %v1622_v28 = vsel %vm1436_vm3, %v402_v24, 0  ;;  %v5988_v31 = vunpack.i.h.bf16 %v5986_v6 }
 0x3b0   :  { %v6990_v3 = vpop.eup %6228  ;;  %5540 = vmatmul.mubr.msk.bf16.vlgmr.msra.gmra.mxu1 %vm417_vm2, %v1418_v33 }
 0x3b1   :  { %5550 = vmatpush3.bf16.msra.mxu1 %v1576_v36  ;;  %v1355_v2 = vsel %vm417_vm2, %v6990_v3, 0.0  ;;  %5551 = vmatprep.mubr.msk.bf16.mxu1 %vm6526_vm1, %v6523_v1  ;;  %v1333_v40 = vmul.f32 1.442695, %v1303_v38  ;;  %v403_v38 = vpack.c.bf16 %v5988_v31, %v5988_v31 }
 0x3b2   :  { %v1339_v26 = vpop.xlane.xlu1 %1338  ;;  %1356 = vadd.xlane.f32.xlu1 %v1355_v2  ;;  %5561 = vmatprep.subr.bf16.mxu1 %v6523_v1 }
 0x3b3   :  { %6240 = vrcp.f32 %v1339_v26 }
 0x3b4   :  { %v7000_v19 = vpop.eup %6230  ;;  %6242 = vpow2.f32 %v1327_v37 }
 0x3b5   :  { %v1361_v22 = vsel %vm417_vm2, %v7000_v19, 0.0  ;;  %v7005_v41 = vpop.eup %6232  ;;  %6244 = vpow2.f32 %v1333_v40 }
 0x3b6   :  { %1362 = vadd.xlane.f32.xlu0 %v1361_v22  ;;  %v1358_v20 = vsel %vm417_vm2, %v7005_v41, 0.0  ;;  %6246 = vpow2.f32 %v1331_v44  ;;  %v5991_v12 = vpop.permute.xlu1 %5990  ;;  %v1668_v44 = vsel %vm1436_vm3, %v403_v38, 0 }
 0x3b7   :  { %6248 = vpow2.f32 %v1335_v53  ;;  %v5992_v8 = vunpack.i.l.bf16 %v5991_v12  ;;  %v5993_v22 = vunpack.i.h.bf16 %v5991_v12 }
 0x3b8   :  { %v7007_v42 = vpop.eup %6234 }
 0x3b9   :  { %v1367_v48 = vsel %vm417_vm2, %v7007_v42, 0.0  ;;  %v7013_v34 = vpop.eup %6236  ;;  %v404_v37 = vpack.c.bf16 %v5992_v8, %v5992_v8 }
 0x3ba   :  { %1368 = vadd.xlane.f32.xlu1 %v1367_v48  ;;  %1359 = vadd.xlane.f32.xlu0 %v1358_v20  ;;  %v1364_v46 = vsel %vm417_vm2, %v7013_v34, 0.0  ;;  %v405_v48 = vpack.c.bf16 %v5993_v22, %v5993_v22 }
 0x3bb   :  { %v1714_v40 = vsel %vm1436_vm3, %v404_v37, 0 }
 0x3bc   :  { %v7017_v49 = vpop.eup %6238 }
 0x3bd   :  { %v1373_v9 = vsel %vm417_vm2, %v7017_v49, 0.0 }
 0x3be   :  { %1365 = vadd.xlane.f32.xlu0 %v1364_v46  ;;  %v1760_v46 = vsel %vm1436_vm3, %v405_v48, 0 }
 0x3c0   :  { %v6241_v51 = vpop.eup %6240 }
 0x3c1   :  { %v7022_v52 = vpop.eup %6242  ;;  %v1401_v55 = vmul.f32 %v6241_v51, %v6951_v25 }
 0x3c2   :  { %1374 = vadd.xlane.f32.xlu0 %v1373_v9  ;;  %v1370_v59 = vsel %vm417_vm2, %v7022_v52, 0.0  ;;  %v7027_v60 = vpop.eup %6244 }
 0x3c3   :  { %v1417_v57 = vpack.c.bf16 %v1401_v55, %v1401_v55  ;;  %v1379_v25 = vsel %vm417_vm2, %v7027_v60, 0.0  ;;  %v7036_v61 = vpop.eup %6246 }
 0x3c4   :  { %v1376_v4 = vsel %vm417_vm2, %v7036_v61, 0.0  ;;  %v7047_v10 = vpop.eup %6248 }
 0x3c5   :  { %5534 = vmatmul.mubr.msk.bf16.vlgmr.msra.gmra.mxu0 %vm417_vm2, %v1417_v57  ;;  %v1382_v11 = vsel %vm417_vm2, %v7047_v10, 0.0 }
 0x3c6   :  { %1371 = vadd.xlane.f32.xlu0 %v1370_v59  ;;  %5544 = vmatpush3.bf16.msra.mxu0 %v1530_v30 }
 0x3c7   :  { %5545 = vmatprep.mubr.msk.bf16.mxu0 %vm6526_vm1, %v6523_v1  ;;  %5555 = vmatprep.subr.bf16.mxu0 %v6523_v1 }
 0x3ca   :  { %1380 = vadd.xlane.f32.xlu0 %v1379_v25 }
 0x3cb   :  { %5995 = vrot.lane.b32.xlu1 %v6681_v32, %s6527_s1 }
 0x3ce   :  { %1377 = vadd.xlane.f32.xlu0 %v1376_v4 }
 0x3e4   :  { %6000 = vrot.lane.b32.xlu0 %v6681_v32, %s6529_s6 }
 0x3e8   :  { %6005 = vrot.lane.b32.xlu0 %v6681_v32, %s6530_s20 }
 0x3ec   :  { %6010 = vrot.lane.b32.xlu0 %v6681_v32, %s6531_s21 }
 0x3ef   :  { %1383 = vadd.xlane.f32.xlu1 %v1382_v11 }
 0x3fe   :  { %v1345_v15 = vpop.xlane.xlu1 %1344 }
 0x3ff   :  { %6250 = vrcp.f32 %v1345_v15 }
 0x406   :  { %v1351_v16 = vpop.xlane.xlu1 %1350 }
 0x407   :  { %6252 = vrcp.f32 %v1351_v16  ;;  %v1348_v62 = vpop.xlane.xlu0 %1347 }
 0x408   :  { %6254 = vrcp.f32 %v1348_v62 }
 0x40c   :  { %v6251_v56 = vpop.eup %6250 }
 0x40d   :  { %v1403_v27 = vmul.f32 %v6251_v56, %v6963_v45 }
 0x40e   :  { %v1354_v63 = vpop.xlane.xlu0 %1353 }
 0x40f   :  { %6256 = vrcp.f32 %v1354_v63  ;;  %v1419_v32 = vpack.c.bf16 %v1403_v27, %v1403_v27 }
 0x411   :  { %5546 = vmatmul.mubr.msk.bf16.vlgmr.msra.gmra.mxu0 %vm417_vm2, %v1419_v32 }
 0x412   :  { %5556 = vmatpush3.bf16.msra.mxu0 %v1622_v28  ;;  %5557 = vmatprep.mubr.msk.bf16.mxu0 %vm6526_vm1, %v6523_v1 }
 0x413   :  { %5567 = vmatprep.subr.bf16.mxu0 %v6523_v1 }
 0x414   :  { %v6253_v33 = vpop.eup %6252 }
 0x415   :  { %v6255_v36 = vpop.eup %6254  ;;  %v1405_v45 = vmul.f32 %v6253_v33, %v6967_v29 }
 0x416   :  { %v1404_v2 = vmul.f32 %v6255_v36, %v6969_v35 }
 0x417   :  { %v1421_v26 = vpack.c.bf16 %v1405_v45, %v1405_v45 }
 0x418   :  { %v1420_v39 = vpack.c.bf16 %v1404_v2, %v1404_v2 }
 0x419   :  { %5558 = vmatmul.mubr.msk.bf16.vlgmr.msra.gmra.mxu0 %vm417_vm2, %v1421_v26 }
 0x41a   :  { %5552 = vmatmul.mubr.msk.bf16.vlgmr.msra.gmra.mxu1 %vm417_vm2, %v1420_v39  ;;  %5568 = vmatpush3.bf16.msra.mxu0 %v1714_v40 }
 0x41b   :  { %5562 = vmatpush3.bf16.msra.mxu1 %v1668_v44  ;;  %5563 = vmatprep.mubr.msk.bf16.mxu1 %vm6526_vm1, %v6523_v1 }
 0x41c   :  { %v6257_v29 = vpop.eup %6256  ;;  %5573 = vmatprep.subr.bf16.mxu1 %v6523_v1  ;;  %5569 = vmatprep.mubr.msk.bf16.mxu0 %vm6526_vm1, %v6523_v1 }
 0x41d   :  { %v1406_v35 = vmul.f32 %v6257_v29, %v6975_v47  ;;  %5579 = vmatprep.subr.bf16.mxu0 %v6523_v1 }
 0x41f   :  { %v1422_v20 = vpack.c.bf16 %v1406_v35, %v1406_v35 }
 0x422   :  { %5564 = vmatmul.mubr.msk.bf16.vlgmr.msra.gmra.mxu1 %vm417_vm2, %v1422_v20 }
 0x423   :  { %5574 = vmatpush3.bf16.msra.mxu1 %v1760_v46  ;;  %5575 = vmatprep.mubr.msk.bf16.mxu1 %vm6526_vm1, %v6523_v1 }
 0x424   :  { %5585 = vmatprep.subr.bf16.mxu1 %v6523_v1 }
 0x43b   :  { %v1357_v50 = vpop.xlane.xlu1 %1356 }
 0x43c   :  { %6258 = vrcp.f32 %v1357_v50 }
 0x43f   :  { %v1363_v51 = vpop.xlane.xlu0 %1362 }
 0x440   :  { %6260 = vrcp.f32 %v1363_v51 }
 0x443   :  { %v1369_v9 = vpop.xlane.xlu1 %1368  ;;  %v1360_v47 = vpop.xlane.xlu0 %1359 }
 0x444   :  { %6262 = vrcp.f32 %v1360_v47 }
 0x447   :  { %v5996_v54 = vpop.permute.xlu1 %5995  ;;  %v1366_v55 = vpop.xlane.xlu0 %1365 }
 0x448   :  { %v5997_v57 = vunpack.i.l.bf16 %v5996_v54  ;;  %6264 = vrcp.f32 %v1366_v55  ;;  %v5998_v11 = vunpack.i.h.bf16 %v5996_v54 }
 0x449   :  { %v6259_v59 = vpop.eup %6258  ;;  %6266 = vrcp.f32 %v1369_v9 }
 0x44a   :  { %v406_v30 = vpack.c.bf16 %v5997_v57, %v5997_v57  ;;  %v1407_v25 = vmul.f32 %v6259_v59, %v6990_v3  ;;  %v407_v6 = vpack.c.bf16 %v5998_v11, %v5998_v11 }
 0x44b   :  { %v1375_v4 = vpop.xlane.xlu0 %1374 }
 0x44c   :  { %v1423_v43 = vpack.c.bf16 %v1407_v25, %v1407_v25  ;;  %v1806_v7 = vsel %vm1436_vm3, %v406_v30, 0  ;;  %v1852_v27 = vsel %vm1436_vm3, %v407_v6, 0 }
 0x44d   :  { %v6261_v53 = vpop.eup %6260 }
 0x44e   :  { %5570 = vmatmul.mubr.msk.bf16.vlgmr.msra.gmra.mxu0 %vm417_vm2, %v1423_v43  ;;  %v1409_v15 = vmul.f32 %v6261_v53, %v7000_v19 }
 0x44f   :  { %5580 = vmatpush3.bf16.msra.mxu0 %v1806_v7  ;;  %v1372_v12 = vpop.xlane.xlu0 %1371  ;;  %5581 = vmatprep.mubr.msk.bf16.mxu0 %vm6526_vm1, %v6523_v1 }
 0x450   :  { %5591 = vmatprep.subr.bf16.mxu0 %v6523_v1  ;;  %6268 = vrcp.f32 %v1372_v12  ;;  %v1425_v23 = vpack.c.bf16 %v1409_v15, %v1409_v15 }
 0x451   :  { %v6263_v3 = vpop.eup %6262  ;;  %6270 = vrcp.f32 %v1375_v4 }
 0x452   :  { %v1408_v62 = vmul.f32 %v6263_v3, %v7005_v41 }
 0x453   :  { %v1381_v16 = vpop.xlane.xlu0 %1380 }
 0x454   :  { %v1424_v56 = vpack.c.bf16 %v1408_v62, %v1408_v62 }
 0x455   :  { %v6265_v24 = vpop.eup %6264 }
 0x456   :  { %5582 = vmatmul.mubr.msk.bf16.vlgmr.msra.gmra.mxu0 %vm417_vm2, %v1425_v23  ;;  %5576 = vmatmul.mubr.msk.bf16.vlgmr.msra.gmra.mxu1 %vm417_vm2, %v1424_v56  ;;  %v1410_v19 = vmul.f32 %v6265_v24, %v7013_v34  ;;  %v6267_v41 = vpop.eup %6266 }
 0x457   :  { %v1378_v63 = vpop.xlane.xlu0 %1377  ;;  %5593 = vmatprep.mubr.msk.bf16.mxu0 %vm6526_vm1, %v6523_v1  ;;  %5586 = vmatpush3.bf16.msra.mxu1 %v1852_v27  ;;  %v1411_v45 = vmul.f32 %v6267_v41, %v7007_v42 }
 0x458   :  { %5587 = vmatprep.mubr.msk.bf16.mxu1 %vm6526_vm1, %v6523_v1  ;;  %6272 = vrcp.f32 %v1378_v63  ;;  %5597 = vmatprep.subr.bf16.mxu1 %v6523_v1  ;;  %v1426_v31 = vpack.c.bf16 %v1410_v19, %v1410_v19 }
 0x459   :  { %6274 = vrcp.f32 %v1381_v16  ;;  %v1427_v29 = vpack.c.bf16 %v1411_v45, %v1411_v45 }
 0x45b   :  { %v6001_v32 = vpop.permute.xlu0 %6000 }
 0x45c   :  { %v6003_v8 = vunpack.i.h.bf16 %v6001_v32  ;;  %v6002_v28 = vunpack.i.l.bf16 %v6001_v32 }
 0x45d   :  { %v6269_v33 = vpop.eup %6268 }
 0x45e   :  { %v409_v36 = vpack.c.bf16 %v6003_v8, %v6003_v8  ;;  %v408_v37 = vpack.c.bf16 %v6002_v28, %v6002_v28  ;;  %5588 = vmatmul.mubr.msk.bf16.vlgmr.msra.gmra.mxu1 %vm417_vm2, %v1426_v31  ;;  %v1412_v40 = vmul.f32 %v6269_v33, %v7022_v52  ;;  %v6271_v42 = vpop.eup %6270 }
 0x45f   :  { %v6006_v38 = vpop.permute.xlu0 %6005  ;;  %5599 = vmatprep.mubr.msk.bf16.mxu1 %vm6526_vm1, %v6523_v1  ;;  %v1413_v51 = vmul.f32 %v6271_v42, %v7017_v49 }
 0x460   :  { %v6008_v2 = vunpack.i.h.bf16 %v6006_v38  ;;  %v6007_v26 = vunpack.i.l.bf16 %v6006_v38  ;;  %v1898_v34 = vsel %vm1436_vm3, %v408_v37, 0  ;;  %v1944_v39 = vsel %vm1436_vm3, %v409_v36, 0 }
 0x461   :  { %5592 = vmatpush3.bf16.msra.mxu0 %v1898_v34  ;;  %5598 = vmatpush3.bf16.msra.mxu1 %v1944_v39  ;;  %v1428_v46 = vpack.c.bf16 %v1412_v40, %v1412_v40  ;;  %v1429_v55 = vpack.c.bf16 %v1413_v51, %v1413_v51 }
 0x462   :  { %v411_v22 = vpack.c.bf16 %v6008_v2, %v6008_v2  ;;  %v410_v44 = vpack.c.bf16 %v6007_v26, %v6007_v26  ;;  %5603 = vmatprep.subr.bf16.mxu0 %v6523_v1  ;;  %5609 = vmatprep.subr.bf16.mxu1 %v6523_v1 }
 0x463   :  { %v6011_v35 = vpop.permute.xlu0 %6010 }
 0x464   :  { %v6012_v48 = vunpack.i.l.bf16 %v6011_v35  ;;  %5594 = vmatmul.mubr.msk.bf16.vlgmr.msra.gmra.mxu0 %vm417_vm2, %v1427_v29  ;;  %v1990_v20 = vsel %vm1436_vm3, %v410_v44, 0  ;;  %v2036_v50 = vsel %vm1436_vm3, %v411_v22, 0  ;;  %v6013_v9 = vunpack.i.h.bf16 %v6011_v35 }
 0x465   :  { %5604 = vmatpush3.bf16.msra.mxu0 %v1990_v20  ;;  %5605 = vmatprep.mubr.msk.bf16.mxu0 %vm6526_vm1, %v6523_v1  ;;  %v6273_v52 = vpop.eup %6272 }
 0x466   :  { %5615 = vmatprep.subr.bf16.mxu0 %v6523_v1  ;;  %5600 = vmatmul.mubr.msk.bf16.vlgmr.msra.gmra.mxu1 %vm417_vm2, %v1428_v46  ;;  %v412_v47 = vpack.c.bf16 %v6012_v48, %v6012_v48  ;;  %v1414_v54 = vmul.f32 %v6273_v52, %v7036_v61  ;;  %v6275_v57 = vpop.eup %6274  ;;  %v413_v59 = vpack.c.bf16 %v6013_v9, %v6013_v9 }
 0x467   :  { %5610 = vmatpush3.bf16.msra.mxu1 %v2036_v50  ;;  %5611 = vmatprep.mubr.msk.bf16.mxu1 %vm6526_vm1, %v6523_v1  ;;  %v1415_v25 = vmul.f32 %v6275_v57, %v7027_v60 }
 0x468   :  { %5621 = vmatprep.subr.bf16.mxu1 %v6523_v1  ;;  %v2082_v30 = vsel %vm1436_vm3, %v412_v47, 0  ;;  %v1430_v49 = vpack.c.bf16 %v1414_v54, %v1414_v54  ;;  %v2128_v61 = vsel %vm1436_vm3, %v413_v59, 0 }
 0x469   :  { %v1431_v7 = vpack.c.bf16 %v1415_v25, %v1415_v25 }
 0x46c   :  { %5606 = vmatmul.mubr.msk.bf16.vlgmr.msra.gmra.mxu0 %vm417_vm2, %v1429_v55 }
 0x46d   :  { %5616 = vmatpush3.bf16.msra.mxu0 %v2082_v30  ;;  %5617 = vmatprep.mubr.msk.bf16.mxu0 %vm6526_vm1, %v6523_v1 }
 0x46e   :  { %5627 = vmatprep.subr.bf16.mxu0 %v6523_v1  ;;  %5612 = vmatmul.mubr.msk.bf16.vlgmr.msra.gmra.mxu1 %vm417_vm2, %v1430_v49  ;;  %v6166_v49 = vld [vmem:[%s7878_s5 + $0x18] sm:$0xff]  }
 0x46f   :  { %5622 = vmatpush3.bf16.msra.mxu1 %v2128_v61  ;;  %5623 = vmatprep.mubr.msk.bf16.mxu1 %vm6526_vm1, %v6523_v1 }
 0x470   :  { %v7123_v4 = vpop.f32.mrf.mxu1  ;;  %5639 = vmatprep.subr.bf16.mxu1 %v6523_v1 }
 0x472   :  { %v5541_v43 = vpop.f32.mrf.mxu1 }
 0x474   :  { %v1523_v53 = vpop.f32.mrf.mxu1  ;;  %5618 = vmatmul.mubr.msk.bf16.vlgmr.msra.gmra.mxu0 %vm417_vm2, %v1431_v7  ;;  %v6167_v7 = vld [vmem:[%s7878_s5 + $0x10] sm:$0xff]  }
 0x475   :  { %5635 = vmatprep.mubr.msk.bf16.mxu0 %vm6526_vm1, %v6523_v1  ;;  %5628 = vmatpush3.bf16.msra.mxu0 %v6166_v49 }
 0x476   :  { %v5542_v60 = vpop.f32.mrf.mxu1  ;;  %5629 = vmatprep.subr.bf16.mxu0 %v6523_v1 }
 0x478   :  { %v1384_v11 = vpop.xlane.xlu1 %1383 }
 0x479   :  { %6276 = vrcp.f32 %v1384_v11  ;;  %5630 = vmatpush3.bf16.msra.mxu0 %v6167_v7 }
 0x47a   :  { %5631 = vmatprep.subr.bf16.mxu0 %v6523_v1 }
 0x485   :  { %v7131_v15 = vpop.f32.mrf.mxu0 }
 0x486   :  { %v6277_v12 = vpop.eup %6276 }
 0x487   :  { %v1416_v3 = vmul.f32 %v6277_v12, %v7047_v10  ;;  %v5535_v6 = vpop.f32.mrf.mxu0 }
 0x489   :  { %v1432_v16 = vpack.c.bf16 %v1416_v3, %v1416_v3  ;;  %v1477_v62 = vpop.f32.mrf.mxu0  ;;  %v6168_v3 = vld [vmem:[%s7878_s5 + $0x8] sm:$0xff]  }
 0x48a   :  { %5632 = vmatpush3.bf16.msra.mxu0 %v6168_v3  ;;  %v7182_v3 = vld [vmem:[%s7882_s9] sm:$0x3f] }
 0x48b   :  { %5624 = vmatmul.mubr.msk.bf16.vlgmr.msra.gmra.mxu1 %vm417_vm2, %v1432_v16  ;;  %v5536_v23 = vpop.f32.mrf.mxu0  ;;  %5633 = vmatprep.subr.bf16.mxu0 %v6523_v1 }
 0x48c   :  { %5647 = vmatprep.mubr.msk.bf16.mxu1 %vm6526_vm1, %v6523_v1 }
 0x4d1   :  { %v1566_v56 = vpop.f32.mrf.mxu0 }
 0x4d3   :  { %v5547_v24 = vpop.f32.mrf.mxu0 }
 0x4d5   :  { %v1569_v27 = vpop.f32.mrf.mxu0 }
 0x4d7   :  { %v5548_v63 = vpop.f32.mrf.mxu0 }
 0x4d9   :  { %v1658_v19 = vpop.f32.mrf.mxu0 }
 0x4da   :  { %v1612_v41 = vpop.f32.mrf.mxu1 }
 0x4db   :  { %v6014_v32 = vpack.i.bf16 %v1612_v41, %v1566_v56  ;;  %v5559_v8 = vpop.f32.mrf.mxu0 }
 0x4dc   :  { %v5553_v28 = vpop.f32.mrf.mxu1 }
 0x4dd   :  { %6015 = vrot.lane.b32.xlu0 %v6014_v32, %s6514_s18  ;;  %v1661_v10 = vpop.f32.mrf.mxu0  ;;  %v6169_v28 = vld [vmem:[%s7878_s5] sm:$0xff]  }
 0x4de   :  { %v1615_v31 = vpop.f32.mrf.mxu1  ;;  %5634 = vmatpush3.bf16.msra.mxu0 %v6169_v28 }
 0x4df   :  { %v5560_v33 = vpop.f32.mrf.mxu0  ;;  %5651 = vmatprep.subr.bf16.mxu0 %v6523_v1 }
 0x4e0   :  { %v5554_v36 = vpop.f32.mrf.mxu1 }
 0x4e2   :  { %v1704_v37 = vpop.f32.mrf.mxu1 }
 0x4e3   :  { %v6019_v45 = vpack.i.bf16 %v1704_v37, %v1658_v19 }
 0x4e4   :  { %v5565_v38 = vpop.f32.mrf.mxu1 }
 0x4e5   :  { %6020 = vrot.lane.b32.xlu0 %v6019_v45, %s6520_s16 }
 0x4e6   :  { %v1707_v2 = vpop.f32.mrf.mxu1 }
 0x4e8   :  { %v5566_v26 = vpop.f32.mrf.mxu1 }
 0x50e   :  { %v1750_v34 = vpop.f32.mrf.mxu0 }
 0x510   :  { %v5571_v39 = vpop.f32.mrf.mxu0 }
 0x512   :  { %v1753_v40 = vpop.f32.mrf.mxu0 }
 0x514   :  { %v5572_v22 = vpop.f32.mrf.mxu0 }
 0x516   :  { %v1842_v44 = vpop.f32.mrf.mxu0  ;;  %v1796_v29 = vpop.f32.mrf.mxu1 }
 0x517   :  { %v6024_v42 = vpack.i.bf16 %v1796_v29, %v1750_v34 }
 0x518   :  { %v5583_v35 = vpop.f32.mrf.mxu0  ;;  %v5577_v48 = vpop.f32.mrf.mxu1 }
 0x519   :  { %6025 = vrot.lane.b32.xlu1 %v6024_v42, %s6533_s7 }
 0x51a   :  { %v1845_v20 = vpop.f32.mrf.mxu0  ;;  %v1799_v46 = vpop.f32.mrf.mxu1 }
 0x51c   :  { %v5584_v50 = vpop.f32.mrf.mxu0  ;;  %v5578_v52 = vpop.f32.mrf.mxu1 }
 0x51e   :  { %v1888_v51 = vpop.f32.mrf.mxu1 }
 0x51f   :  { %v6029_v9 = vpack.i.bf16 %v1888_v51, %v1842_v44 }
 0x520   :  { %v5589_v47 = vpop.f32.mrf.mxu1 }
 0x521   :  { %6030 = vrot.lane.b32.xlu0 %v6029_v9, %s6510_s29 }
 0x522   :  { %v1891_v54 = vpop.f32.mrf.mxu1 }
 0x524   :  { %v1934_v55 = vpop.f32.mrf.mxu0  ;;  %v5590_v57 = vpop.f32.mrf.mxu1 }
 0x526   :  { %v5595_v59 = vpop.f32.mrf.mxu0  ;;  %v1980_v30 = vpop.f32.mrf.mxu1 }
 0x527   :  { %v6034_v25 = vpack.i.bf16 %v1980_v30, %v1934_v55 }
 0x528   :  { %v1937_v61 = vpop.f32.mrf.mxu0  ;;  %v5601_v43 = vpop.f32.mrf.mxu1 }
 0x529   :  { %6035 = vrot.lane.b32.xlu0 %v6034_v25, %s6534_s25 }
 0x52a   :  { %v5596_v53 = vpop.f32.mrf.mxu0  ;;  %v1983_v60 = vpop.f32.mrf.mxu1 }
 0x52c   :  { %v2026_v11 = vpop.f32.mrf.mxu0  ;;  %v5602_v12 = vpop.f32.mrf.mxu1 }
 0x52e   :  { %v5607_v6 = vpop.f32.mrf.mxu0  ;;  %v2072_v16 = vpop.f32.mrf.mxu1 }
 0x52f   :  { %v6039_v62 = vpack.i.bf16 %v2072_v16, %v2026_v11  ;;  %v2250_v6 = vrot.slane %v7182_v3, %v6665_v18 }
 0x530   :  { %v2029_v23 = vpop.f32.mrf.mxu0  ;;  %v5613_v56 = vpop.f32.mrf.mxu1 }
 0x531   :  { %6040 = vrot.lane.b32.xlu0 %v6039_v62, %s6535_s28 }
 0x532   :  { %v5608_v24 = vpop.f32.mrf.mxu0  ;;  %v2075_v27 = vpop.f32.mrf.mxu1 }
 0x534   :  { %v2118_v63 = vpop.f32.mrf.mxu0  ;;  %v5614_v19 = vpop.f32.mrf.mxu1 }
 0x536   :  { %v5619_v41 = vpop.f32.mrf.mxu0 }
 0x538   :  { %v2121_v32 = vpop.f32.mrf.mxu0 }
 0x53a   :  { %v5620_v8 = vpop.f32.mrf.mxu0 }
 0x54b   :  { %v2164_v10 = vpop.f32.mrf.mxu1 }
 0x54c   :  { %v6044_v31 = vpack.i.bf16 %v2164_v10, %v2118_v63 }
 0x54d   :  { %v5625_v33 = vpop.f32.mrf.mxu1 }
 0x54e   :  { %6045 = vrot.lane.b32.xlu0 %v6044_v31, %s7886_s14 }
 0x54f   :  { %v2167_v36 = vpop.f32.mrf.mxu1  ;;  %v6016_v45 = vpop.permute.xlu0 %6015 }
 0x550   :  { %v6018_v39 = vunpack.i.h.bf16 %v6016_v45  ;;  %v6017_v40 = vunpack.i.l.bf16 %v6016_v45 }
 0x551   :  { %v5626_v37 = vpop.f32.mrf.mxu1 }
 0x552   :  { %v2227_v46 = vsel %vm417_vm2, %v7123_v4, %v6018_v39  ;;  %v2226_v50 = vsel %vm417_vm2, %v7131_v15, %v6017_v40  ;;  %v6174_v39 = vld [vmem:[%s7881_s8 + $0x38] sm:$0xff]   ;;  %v6175_v40 = vld [vmem:[%s7881_s8 + $0x30] sm:$0xff]  }
 0x557   :  { %v6021_v38 = vpop.permute.xlu0 %6020 }
 0x558   :  { %v6023_v22 = vunpack.i.h.bf16 %v6021_v38  ;;  %v6022_v44 = vunpack.i.l.bf16 %v6021_v38 }
 0x55a   :  { %v2230_v9 = vsel %vm2228_vm5, %v2227_v46, %v6023_v22  ;;  %v2229_v47 = vsel %vm2228_vm5, %v2226_v50, %v6022_v44  ;;  %v6176_v22 = vld [vmem:[%s7881_s8 + $0x28] sm:$0xff]   ;;  %v6177_v44 = vld [vmem:[%s7881_s8 + $0x20] sm:$0xff]  }
 0x58b   :  { %v6026_v34 = vpop.permute.xlu1 %6025 }
 0x58c   :  { %v6028_v29 = vunpack.i.h.bf16 %v6026_v34  ;;  %v6027_v42 = vunpack.i.l.bf16 %v6026_v34  ;;  %v6173_v34 = vld [vmem:[#allocation10] sm:$0xff]  }
 0x58e   :  { %v2233_v57 = vsel %vm2231_vm6, %v2230_v9, %v6028_v29  ;;  %v2232_v59 = vsel %vm2231_vm6, %v2229_v47, %v6027_v42  ;;  %v6178_v29 = vld [vmem:[%s7881_s8 + $0x18] sm:$0xff]   ;;  %v2351_v9 = vrot.slane %v7182_v3, %v6669_v21  ;;  %v2356_v47 = vsub.s32 2, %v6662_v17 }
 0x593   :  { %v6031_v2 = vpop.permute.xlu0 %6030 }
 0x594   :  { %v6033_v48 = vunpack.i.h.bf16 %v6031_v2  ;;  %v6032_v20 = vunpack.i.l.bf16 %v6031_v2  ;;  %v6170_v2 = vld [vmem:[#allocation10 + $0x18] sm:$0xff]  }
 0x595   :  { %5640 = vmatpush3.bf16.msra.mxu1 %v6170_v2 }
 0x596   :  { %v2236_v30 = vsel %vm2234_vm7, %v2233_v57, %v6033_v48  ;;  %v2235_v4 = vsel %vm2234_vm7, %v2232_v59, %v6032_v20  ;;  %5641 = vmatprep.subr.bf16.mxu1 %v6523_v1  ;;  %v2357_v59 = vrot.slane %v7182_v3, %v2356_v47 }
 0x59b   :  { %v6036_v26 = vpop.permute.xlu0 %6035 }
 0x59c   :  { %v6038_v52 = vunpack.i.h.bf16 %v6036_v26  ;;  %v6037_v51 = vunpack.i.l.bf16 %v6036_v26  ;;  %v6172_v26 = vld [vmem:[#allocation10 + $0x8] sm:$0xff]  }
 0x59e   :  { %v2239_v15 = vsel %vm2237_vm8, %v2236_v30, %v6038_v52  ;;  %v2238_v25 = vsel %vm2237_vm8, %v2235_v4, %v6037_v51 }
 0x5a3   :  { %v6041_v35 = vpop.permute.xlu0 %6040 }
 0x5a4   :  { %v6043_v54 = vunpack.i.h.bf16 %v6041_v35  ;;  %v6042_v55 = vunpack.i.l.bf16 %v6041_v35 }
 0x5a6   :  { %v2242_v7 = vsel %vm2240_vm9, %v2239_v15, %v6043_v54  ;;  %v2241_v53 = vsel %vm2240_vm9, %v2238_v25, %v6042_v55  ;;  %v6179_v25 = vld [vmem:[%s7881_s8 + $0x10] sm:$0xff]  }
 0x5c0   :  { %v6046_v49 = vpop.permute.xlu0 %6045 }
 0x5c1   :  { %v6048_v61 = vunpack.i.h.bf16 %v6046_v49  ;;  %v6047_v43 = vunpack.i.l.bf16 %v6046_v49 }
 0x5c3   :  { %v2245_v60 = vsel %vm2243_vm10, %v2242_v7, %v6048_v61  ;;  %v2244_v11 = vsel %vm2243_vm10, %v2241_v53, %v6047_v43  ;;  %v6180_v61 = vld [vmem:[%s7881_s8 + $0x8] sm:$0xff]   ;;  %v6181_v43 = vld [vmem:[%s7881_s8] sm:$0xff]  }
 0x5c4   :  { %v2246_v12 = vpack.c.bf16 %v2245_v60, %v2244_v11 }
 0x5c6   :  { %5636 = vmatmul.mubr.msk.bf16.vlgmr.msra.gmra.mxu0 %vm247_vm0, %v2246_v12 }
 0x5c7   :  { %5667 = vmatprep.mubr.msk.bf16.mxu0 %vm6526_vm1, %v6523_v1  ;;  %5652 = vmatpush3.bf16.msra.mxu0 %v6174_v39 }
 0x5c8   :  { %5653 = vmatprep.subr.bf16.mxu0 %v6523_v1 }
 0x5cb   :  { %5654 = vmatpush3.bf16.msra.mxu0 %v6175_v40  ;;  %v6184_v40 = vld [vmem:[%s7876_s3 + $0x74] ss:$8 sps:$4 sm:$0xff]  }
 0x5cc   :  { %5655 = vmatprep.subr.bf16.mxu0 %v6523_v1 }
 0x5cf   :  { %5656 = vmatpush3.bf16.msra.mxu0 %v6176_v22  ;;  %v6182_v22 = vld [vmem:[%s7876_s3 + $0x70] ss:$8 sps:$4 sm:$0xff]  }
 0x5d0   :  { %5657 = vmatprep.subr.bf16.mxu0 %v6523_v1 }
 0x5d3   :  { %5658 = vmatpush3.bf16.msra.mxu0 %v6177_v44  ;;  %v6187_v44 = vld [vmem:[%s7876_s3 + $0x64] ss:$8 sps:$4 sm:$0xff]  }
 0x5d4   :  { %5659 = vmatprep.subr.bf16.mxu0 %v6523_v1 }
 0x5d7   :  { %5660 = vmatpush3.bf16.msra.mxu0 %v6178_v29  ;;  %v6185_v29 = vld [vmem:[%s7876_s3 + $0x60] ss:$8 sps:$4 sm:$0xff]  }
 0x5d8   :  { %5661 = vmatprep.subr.bf16.mxu0 %v6523_v1 }
 0x5db   :  { %5662 = vmatpush3.bf16.msra.mxu0 %v6179_v25 }
 0x5dc   :  { %5663 = vmatprep.subr.bf16.mxu0 %v6523_v1 }
 0x5df   :  { %5664 = vmatpush3.bf16.msra.mxu0 %v6180_v61 }
 0x5e0   :  { %5665 = vmatprep.subr.bf16.mxu0 %v6523_v1 }
 0x5e3   :  { %5666 = vmatpush3.bf16.msra.mxu0 %v6181_v43 }
 0x5e4   :  { %5683 = vmatprep.subr.bf16.mxu0 %v6523_v1 }
 0x686   :  { %v2312_v16 = vpop.f32.mrf.mxu0 }
 0x687   :  { %v2313_v62 = vadd.f32 %v2312_v16, %v2250_v6 }
 0x688   :  { %v5637_v23 = vpop.f32.mrf.mxu0 }
 0x689   :  { %v2319_v56 = vadd.f32 %v2313_v62, %v6654_v13 }
 0x68a   :  { %v2315_v24 = vpop.f32.mrf.mxu0 }
 0x68b   :  { %v2316_v27 = vadd.f32 %v2315_v24, %v2250_v6  ;;  %v2321_v63 = vsel %vm247_vm0, %v2319_v56, 0.0 }
 0x68c   :  { %2322 = vadd.xlane.f32.xlu1 %v2321_v63  ;;  %v5638_v19 = vpop.f32.mrf.mxu0 }
 0x68d   :  { %v2320_v41 = vadd.f32 %v2316_v27, %v6656_v14  ;;  %v6171_v14 = vld [vmem:[#allocation10 + $0x10] sm:$0xff]  }
 0x68e   :  { %5642 = vmatpush3.bf16.msra.mxu1 %v6171_v14 }
 0x68f   :  { %v2324_v32 = vsel %vm247_vm0, %v2320_v41, 0.0  ;;  %5643 = vmatprep.subr.bf16.mxu1 %v6523_v1 }
 0x690   :  { %2325 = vadd.xlane.f32.xlu0 %v2324_v32 }
 0x692   :  { %5644 = vmatpush3.bf16.msra.mxu1 %v6172_v26 }
 0x693   :  { %5645 = vmatprep.subr.bf16.mxu1 %v6523_v1 }
 0x696   :  { %5646 = vmatpush3.bf16.msra.mxu1 %v6173_v34 }
 0x697   :  { %2684 = vmatprep.subr.bf16.mxu1 %v6184_v40 }
 0x715   :  { %v2323_v8 = vpop.xlane.xlu1 %2322 }
 0x716   :  { %v2328_v28 = vmul.f32 0.015625, %v2323_v8 }
 0x718   :  { %v2330_v10 = vsub.f32 %v2319_v56, %v2328_v28  ;;  %v2440_v56 = vsub.s32 3, %v6662_v17 }
 0x719   :  { %v2326_v31 = vpop.xlane.xlu0 %2325 }
 0x71a   :  { %v2329_v33 = vmul.f32 0.015625, %v2326_v31  ;;  %v2332_v36 = vmul.f32 %v2330_v10, %v2330_v10  ;;  %v2441_v24 = vrot.slane %v7182_v3, %v2440_v56 }
 0x71c   :  { %v2331_v37 = vsub.f32 %v2320_v41, %v2329_v33  ;;  %v2334_v13 = vsel %vm247_vm0, %v2332_v36, 0.0 }
 0x71d   :  { %2335 = vadd.xlane.f32.xlu0 %v2334_v13 }
 0x71e   :  { %v2333_v45 = vmul.f32 %v2331_v37, %v2331_v37 }
 0x720   :  { %v2337_v38 = vsel %vm247_vm0, %v2333_v45, 0.0 }
 0x721   :  { %2338 = vadd.xlane.f32.xlu1 %v2337_v38 }
 0x7a6   :  { %v2336_v42 = vpop.xlane.xlu0 %2335 }
 0x7a7   :  { %v2340_v35 = vmul.f32 0.015625, %v2336_v42  ;;  %v6188_v42 = vld [vmem:[%s7876_s3 + $0x50] ss:$8 sps:$4 sm:$0xff]  }
 0x7a9   :  { %v2342_v48 = vadd.f32 1e-05, %v2340_v35  ;;  %v6190_v35 = vld [vmem:[%s7876_s3 + $0x54] ss:$8 sps:$4 sm:$0xff]  }
 0x7aa   :  { %v2339_v20 = vpop.xlane.xlu1 %2338 }
 0x7ab   :  { %6278 = vrsqrt.f32 %v2342_v48  ;;  %v2341_v46 = vmul.f32 0.015625, %v2339_v20  ;;  %v6193_v48 = vld [vmem:[%s7876_s3 + $0x44] ss:$8 sps:$4 sm:$0xff]   ;;  %v6191_v20 = vld [vmem:[%s7876_s3 + $0x40] ss:$8 sps:$4 sm:$0xff]  }
 0x7ad   :  { %v2343_v50 = vadd.f32 1e-05, %v2341_v46 }
 0x7af   :  { %6280 = vrsqrt.f32 %v2343_v50 }
 0x7b8   :  { %v6279_v52 = vpop.eup %6278 }
 0x7b9   :  { %v2346_v51 = vmul.f32 %v6279_v52, %v2330_v10 }
 0x7bb   :  { %v2352_v57 = vmul.f32 %v2351_v9, %v2346_v51 }
 0x7bc   :  { %v6281_v54 = vpop.eup %6280 }
 0x7bd   :  { %v2347_v55 = vmul.f32 %v6281_v54, %v2331_v37  ;;  %v2358_v4 = vadd.f32 %v2357_v59, %v2352_v57 }
 0x7bf   :  { %v2353_v30 = vmul.f32 %v2351_v9, %v2347_v55  ;;  %v2561_v55 = vsub.s32 4, %v6662_v17 }
 0x7c1   :  { %v2359_v49 = vadd.f32 %v2357_v59, %v2353_v30  ;;  %v2562_v30 = vrot.slane %v7182_v3, %v2561_v55 }
 0x7c3   :  { %v2360_v15 = vpack.c.bf16 %v2359_v49, %v2358_v4 }
 0x7c5   :  { %5648 = vmatmul.mubr.msk.bf16.vlgmr.msra.gmra.mxu1 %vm247_vm0, %v2360_v15 }
 0x7c6   :  { %2708 = vmatprep.mubr.bf16.mxu1 %v6522_v0  ;;  %v5151_v0 = vld [vmem:[#allocation11] ss:$0 sm:$0xff]  ;;  %2685 = vmatpush1.bf16.msra.mxu1 %v6182_v22 }
 0x7c7   :  { %2686 = vmatprep.subr.bf16.mxu1 %v6187_v44 }
 0x7ca   :  { %2687 = vmatpush1.bf16.msra.mxu1 %v6185_v29 }
 0x7cb   :  { %2688 = vmatprep.subr.bf16.mxu1 %v6190_v35 }
 0x7ce   :  { %2689 = vmatpush1.bf16.msra.mxu1 %v6188_v42 }
 0x7cf   :  { %2690 = vmatprep.subr.bf16.mxu1 %v6193_v48 }
 0x7d2   :  { %2691 = vmatpush1.bf16.msra.mxu1 %v6191_v20 }
 0x7d3   :  { %5671 = vmatprep.subr.bf16.mxu1 %v6523_v1 }
 0x885   :  { %v2428_v7 = vpop.f32.mrf.mxu1 }
 0x886   :  { %v2429_v60 = vadd.f32 %v5151_v0, %v2428_v7 }
 0x887   :  { %v5649_v53 = vpop.f32.mrf.mxu1 }
 0x888   :  { %v2435_v16 = vmax.f32 %v2429_v60, 0.0  ;;  %v2581_v60 = vld [vmem:[#allocation8 + $0x2] sm:$0x3] }
 0x889   :  { %v2431_v11 = vpop.f32.mrf.mxu1 }
 0x88a   :  { %v2432_v12 = vadd.f32 %v5151_v0, %v2431_v11 }
 0x88b   :  { %v5650_v6 = vpop.f32.mrf.mxu1 }
 0x88c   :  { %v2436_v62 = vmax.f32 %v2432_v12, 0.0  ;;  %v2626_v12 = vrot.slane %v2581_v60, %v6665_v18 }
 0x88e   :  { %v2437_v23 = vpack.c.bf16 %v2436_v62, %v2435_v16 }
 0x890   :  { %5668 = vmatmul.mubr.bf16.vlgmr.msra.gmra.mxu0 %v2437_v23 }
 0x891   :  { %5685 = vmatprep.mubr.msk.bf16.mxu0 %vm6526_vm1, %v6523_v1 }
 0x950   :  { %v2524_v27 = vpop.f32.mrf.mxu0 }
 0x951   :  { %v2525_v63 = vadd.f32 %v2524_v27, %v2441_v24 }
 0x952   :  { %v5669_v19 = vpop.f32.mrf.mxu0 }
 0x953   :  { %v2531_v41 = vadd.f32 %v2525_v63, %v2358_v4  ;;  %v2567_v4 = vsub.s32 5, %v6662_v17 }
 0x954   :  { %v2527_v32 = vpop.f32.mrf.mxu0 }
 0x955   :  { %v2528_v8 = vadd.f32 %v2527_v32, %v2441_v24  ;;  %v2533_v28 = vsel %vm247_vm0, %v2531_v41, 0.0  ;;  %v2568_v61 = vrot.slane %v7182_v3, %v2567_v4  ;;  %v2630_v3 = vrot.slane %v2581_v60, %v6669_v21 }
 0x956   :  { %2534 = vadd.xlane.f32.xlu0 %v2533_v28  ;;  %v5670_v10 = vpop.f32.mrf.mxu0 }
 0x957   :  { %v2532_v31 = vadd.f32 %v2528_v8, %v2359_v49 }
 0x959   :  { %v2536_v33 = vsel %vm247_vm0, %v2532_v31, 0.0 }
 0x95a   :  { %2537 = vadd.xlane.f32.xlu1 %v2536_v33 }
 0x9df   :  { %v2535_v36 = vpop.xlane.xlu0 %2534 }
 0x9e0   :  { %v2539_v37 = vmul.f32 0.015625, %v2535_v36 }
 0x9e2   :  { %v2541_v13 = vsub.f32 %v2531_v41, %v2539_v37 }
 0x9e3   :  { %v2538_v45 = vpop.xlane.xlu1 %2537 }
 0x9e4   :  { %v2540_v38 = vmul.f32 0.015625, %v2538_v45  ;;  %v2543_v2 = vmul.f32 %v2541_v13, %v2541_v13 }
 0x9e6   :  { %v2542_v14 = vsub.f32 %v2532_v31, %v2540_v38  ;;  %v2545_v26 = vsel %vm247_vm0, %v2543_v2, 0.0 }
 0x9e7   :  { %2546 = vadd.xlane.f32.xlu0 %v2545_v26 }
 0x9e8   :  { %v2544_v34 = vmul.f32 %v2542_v14, %v2542_v14 }
 0x9ea   :  { %v2548_v39 = vsel %vm247_vm0, %v2544_v34, 0.0 }
 0x9eb   :  { %2549 = vadd.xlane.f32.xlu1 %v2548_v39 }
 0xa70   :  { %v2547_v46 = vpop.xlane.xlu0 %2546 }
 0xa71   :  { %v2551_v50 = vmul.f32 0.015625, %v2547_v46 }
 0xa73   :  { %v2553_v52 = vadd.f32 1e-05, %v2551_v50 }
 0xa74   :  { %v2550_v51 = vpop.xlane.xlu1 %2549 }
 0xa75   :  { %6282 = vrsqrt.f32 %v2553_v52  ;;  %v2552_v9 = vmul.f32 0.015625, %v2550_v51 }
 0xa77   :  { %v2554_v54 = vadd.f32 1e-05, %v2552_v9 }
 0xa79   :  { %6284 = vrsqrt.f32 %v2554_v54 }
 0xa82   :  { %v6283_v57 = vpop.eup %6282 }
 0xa83   :  { %v2557_v59 = vmul.f32 %v6283_v57, %v2541_v13 }
 0xa85   :  { %v2563_v25 = vmul.f32 %v2562_v30, %v2557_v59 }
 0xa86   :  { %v6285_v49 = vpop.eup %6284 }
 0xa87   :  { %v2558_v15 = vmul.f32 %v6285_v49, %v2542_v14  ;;  %v7278_v0 = vadd.f32 %v2568_v61, %v2563_v25 }
 0xa89   :  { %v2564_v43 = vmul.f32 %v2562_v30, %v2558_v15 }
 0xa8b   :  { %v7280_v7 = vadd.f32 %v2568_v61, %v2564_v43 }
 0xa8d   :  { %v2621_v53 = vpack.c.bf16 %v7280_v7, %v7278_v0 }
 0xa8f   :  { %5206 = vmatmul.mubr.msk.bf16.vlgmr.msra.gmra.mxu1 %vm247_vm0, %v2621_v53 }
 0xa90   :  { %5673 = vmatprep.mubr.msk.bf16.mxu1 %vm6526_vm1, %v6523_v1 }
 0xb4f   :  { %v2710_v11 = vpop.f32.mrf.mxu1 }
 0xb50   :  { %v2711_v62 = vadd.f32 %v2710_v11, %v2626_v12 }
 0xb51   :  { %v2712_v6 = vpop.f32.mrf.mxu1 }
 0xb52   :  { %v7289_v27 = vadd.f32 %v2712_v6, %v2630_v3  ;;  %v2763_v32 = vpack.c.bf16 %v2711_v62, %v2711_v62 }
 0xb53   :  { %v2714_v16 = vpop.f32.mrf.mxu1 }
 0xb54   :  { %v2715_v23 = vadd.f32 %v2714_v16, %v2626_v12 }
 0xb55   :  { %v2716_v24 = vpop.f32.mrf.mxu1 }
 0xb56   :  { %v7291_v63 = vadd.f32 %v2716_v24, %v2630_v3  ;;  %v6054_v19 = vpack.i.bf16 %v2715_v23, %v2711_v62  ;;  %v2764_v8 = vpack.c.bf16 %v2715_v23, %v2715_v23 }
 0xb58   :  { %6055 = vrot.lane.b32.xlu1 %v6054_v19, %s6525_s17  ;;  %6050 = vrot.lane.b32.xlu0 %v6054_v19, %s6524_s2  ;;  %v7297_v41 = vpack.i.bf16 %v7291_v63, %v7289_v27 }
 0xb5c   :  { %6060 = vrot.lane.b32.xlu1 %v6054_v19, %s6528_s19  ;;  %6065 = vrot.lane.b32.xlu0 %v6054_v19, %s6527_s1 }
 0xb60   :  { %6070 = vrot.lane.b32.xlu1 %v6054_v19, %s6529_s6  ;;  %6075 = vrot.lane.b32.xlu0 %v6054_v19, %s6530_s20 }
 0xb64   :  { %6080 = vrot.lane.b32.xlu0 %v6054_v19, %s6531_s21  ;;  %2840 = vrot.lane.b32.xlu1 %v2763_v32, %s6517_s0 }
 0xb68   :  { %2889 = vrot.lane.b32.xlu1 %v2764_v8, %s6517_s0 }
 0xbca   :  { %v6056_v28 = vpop.permute.xlu1 %6055  ;;  %v6051_v10 = vpop.permute.xlu0 %6050 }
 0xbcb   :  { %v6053_v31 = vunpack.i.h.bf16 %v6051_v10  ;;  %v6052_v33 = vunpack.i.l.bf16 %v6051_v10  ;;  %v6058_v36 = vunpack.i.h.bf16 %v6056_v28  ;;  %v6057_v37 = vunpack.i.l.bf16 %v6056_v28 }
 0xbcd   :  { %v7306_v13 = vpack.c.bf16 %v6052_v33, %v6052_v33  ;;  %v7308_v45 = vpack.c.bf16 %v6053_v31, %v6053_v31  ;;  %v7314_v2 = vpack.c.bf16 %v6057_v37, %v6057_v37  ;;  %v7316_v34 = vpack.c.bf16 %v6058_v36, %v6058_v36 }
 0xbce   :  { %v6061_v38 = vpop.permute.xlu1 %6060  ;;  %v6066_v39 = vpop.permute.xlu0 %6065 }
 0xbcf   :  { %2938 = vrot.lane.b32.xlu0 %v7306_v13, %s6517_s0  ;;  %2987 = vrot.lane.b32.xlu1 %v7308_v45, %s6517_s0  ;;  %v6063_v14 = vunpack.i.h.bf16 %v6061_v38  ;;  %v6062_v26 = vunpack.i.l.bf16 %v6061_v38  ;;  %v6068_v44 = vunpack.i.h.bf16 %v6066_v39  ;;  %v6067_v29 = vunpack.i.l.bf16 %v6066_v39 }
 0xbd1   :  { %v7322_v22 = vpack.c.bf16 %v6062_v26, %v6062_v26  ;;  %v7324_v42 = vpack.c.bf16 %v6063_v14, %v6063_v14  ;;  %v7331_v46 = vpack.c.bf16 %v6067_v29, %v6067_v29  ;;  %v7333_v51 = vpack.c.bf16 %v6068_v44, %v6068_v44 }
 0xbd2   :  { %v6071_v40 = vpop.permute.xlu1 %6070  ;;  %v6076_v20 = vpop.permute.xlu0 %6075 }
 0xbd3   :  { %3036 = vrot.lane.b32.xlu0 %v7314_v2, %s6517_s0  ;;  %3085 = vrot.lane.b32.xlu1 %v7316_v34, %s6517_s0  ;;  %v6073_v50 = vunpack.i.h.bf16 %v6071_v40  ;;  %v6072_v52 = vunpack.i.l.bf16 %v6071_v40  ;;  %v6078_v54 = vunpack.i.h.bf16 %v6076_v20  ;;  %v6077_v57 = vunpack.i.l.bf16 %v6076_v20 }
 0xbd5   :  { %v7340_v9 = vpack.c.bf16 %v6072_v52, %v6072_v52  ;;  %v7342_v30 = vpack.c.bf16 %v6073_v50, %v6073_v50  ;;  %v7350_v25 = vpack.c.bf16 %v6077_v57, %v6077_v57  ;;  %v7352_v53 = vpack.c.bf16 %v6078_v54, %v6078_v54 }
 0xbd6   :  { %v2841_v35 = vpop.permute.xlu1 %2840  ;;  %v6081_v49 = vpop.permute.xlu0 %6080 }
 0xbd7   :  { %v2846_v48 = vsel %vm417_vm2, %v2841_v35, 0  ;;  %3134 = vrot.lane.b32.xlu0 %v7322_v22, %s6517_s0  ;;  %3183 = vrot.lane.b32.xlu1 %v7324_v42, %s6517_s0  ;;  %v6083_v61 = vunpack.i.h.bf16 %v6081_v49  ;;  %v6082_v43 = vunpack.i.l.bf16 %v6081_v49  ;;  %v2824_v35 = vpack.c.bf16 %v7291_v63, %v7291_v63 }
 0xbd8   :  { %5672 = vmatpush3.bf16.xpose.msra.mxu1 %v2846_v48 }
 0xbd9   :  { %5677 = vmatprep.subr.bf16.mxu1 %v6523_v1  ;;  %v7361_v60 = vpack.c.bf16 %v6082_v43, %v6082_v43  ;;  %v7363_v11 = vpack.c.bf16 %v6083_v61, %v6083_v61  ;;  %v3897_v20 = vsel %vm1436_vm3, %v2824_v35, 0 }
 0xbda   :  { %v2890_v59 = vpop.permute.xlu1 %2889 }
 0xbdb   :  { %3232 = vrot.lane.b32.xlu0 %v7331_v46, %s6517_s0  ;;  %3281 = vrot.lane.b32.xlu1 %v7333_v51, %s6517_s0  ;;  %v2895_v15 = vsel %vm417_vm2, %v2890_v59, 0 }
 0xbdf   :  { %3330 = vrot.lane.b32.xlu0 %v7340_v9, %s6517_s0  ;;  %3379 = vrot.lane.b32.xlu1 %v7342_v30, %s6517_s0 }
 0xbe0   :  { %5674 = vmatmul.mubr.msk.bf16.vlgmr.msra.gmra.mxu1 %vm417_vm2, %v2763_v32 }
 0xbe1   :  { %5678 = vmatpush3.bf16.xpose.msra.mxu1 %v2895_v15  ;;  %5679 = vmatprep.mubr.msk.bf16.mxu1 %vm6526_vm1, %v6523_v1 }
 0xbe2   :  { %5689 = vmatprep.subr.bf16.mxu1 %v6523_v1 }
 0xbe3   :  { %3428 = vrot.lane.b32.xlu0 %v7350_v25, %s6517_s0  ;;  %3477 = vrot.lane.b32.xlu1 %v7352_v53, %s6517_s0 }
 0xbe7   :  { %3526 = vrot.lane.b32.xlu0 %v7361_v60, %s6517_s0  ;;  %3575 = vrot.lane.b32.xlu1 %v7363_v11, %s6517_s0 }
 0xbe8   :  { %5680 = vmatmul.mubr.msk.bf16.vlgmr.msra.gmra.mxu1 %vm417_vm2, %v2764_v8 }
 0xbe9   :  { %5691 = vmatprep.mubr.msk.bf16.mxu1 %vm6526_vm1, %v6523_v1 }
 0xc41   :  { %v2939_v12 = vpop.permute.xlu0 %2938  ;;  %v2988_v6 = vpop.permute.xlu1 %2987 }
 0xc42   :  { %v2944_v3 = vsel %vm417_vm2, %v2939_v12, 0  ;;  %v2993_v16 = vsel %vm417_vm2, %v2988_v6, 0 }
 0xc43   :  { %5684 = vmatpush3.bf16.xpose.msra.mxu0 %v2944_v3  ;;  %5690 = vmatpush3.bf16.xpose.msra.mxu1 %v2993_v16 }
 0xc44   :  { %5695 = vmatprep.subr.bf16.mxu0 %v6523_v1  ;;  %5701 = vmatprep.subr.bf16.mxu1 %v6523_v1 }
 0xc45   :  { %v3037_v62 = vpop.permute.xlu0 %3036  ;;  %v3086_v23 = vpop.permute.xlu1 %3085 }
 0xc46   :  { %v3042_v24 = vsel %vm417_vm2, %v3037_v62, 0  ;;  %v3091_v19 = vsel %vm417_vm2, %v3086_v23, 0 }
 0xc49   :  { %v3135_v32 = vpop.permute.xlu0 %3134  ;;  %v3184_v8 = vpop.permute.xlu1 %3183 }
 0xc4a   :  { %5686 = vmatmul.mubr.msk.bf16.vlgmr.msra.gmra.mxu0 %vm417_vm2, %v7306_v13  ;;  %5692 = vmatmul.mubr.msk.bf16.vlgmr.msra.gmra.mxu1 %vm417_vm2, %v7308_v45  ;;  %v3140_v28 = vsel %vm417_vm2, %v3135_v32, 0  ;;  %v3189_v10 = vsel %vm417_vm2, %v3184_v8, 0 }
 0xc4b   :  { %5696 = vmatpush3.bf16.xpose.msra.mxu0 %v3042_v24  ;;  %5702 = vmatpush3.bf16.xpose.msra.mxu1 %v3091_v19 }
 0xc4c   :  { %5697 = vmatprep.mubr.msk.bf16.mxu0 %vm6526_vm1, %v6523_v1  ;;  %5703 = vmatprep.mubr.msk.bf16.mxu1 %vm6526_vm1, %v6523_v1 }
 0xc4d   :  { %5707 = vmatprep.subr.bf16.mxu0 %v6523_v1  ;;  %5713 = vmatprep.subr.bf16.mxu1 %v6523_v1  ;;  %v3233_v31 = vpop.permute.xlu0 %3232  ;;  %v3282_v33 = vpop.permute.xlu1 %3281 }
 0xc4e   :  { %v3238_v36 = vsel %vm417_vm2, %v3233_v31, 0  ;;  %v3287_v37 = vsel %vm417_vm2, %v3282_v33, 0 }
 0xc51   :  { %v3331_v13 = vpop.permute.xlu0 %3330  ;;  %v3380_v45 = vpop.permute.xlu1 %3379 }
 0xc52   :  { %5698 = vmatmul.mubr.msk.bf16.vlgmr.msra.gmra.mxu0 %vm417_vm2, %v7314_v2  ;;  %5704 = vmatmul.mubr.msk.bf16.vlgmr.msra.gmra.mxu1 %vm417_vm2, %v7316_v34  ;;  %v3336_v38 = vsel %vm417_vm2, %v3331_v13, 0  ;;  %v3385_v2 = vsel %vm417_vm2, %v3380_v45, 0 }
 0xc53   :  { %5708 = vmatpush3.bf16.xpose.msra.mxu0 %v3140_v28  ;;  %5714 = vmatpush3.bf16.xpose.msra.mxu1 %v3189_v10 }
 0xc54   :  { %5709 = vmatprep.mubr.msk.bf16.mxu0 %vm6526_vm1, %v6523_v1  ;;  %5715 = vmatprep.mubr.msk.bf16.mxu1 %vm6526_vm1, %v6523_v1 }
 0xc55   :  { %5719 = vmatprep.subr.bf16.mxu0 %v6523_v1  ;;  %5725 = vmatprep.subr.bf16.mxu1 %v6523_v1  ;;  %v3429_v14 = vpop.permute.xlu0 %3428  ;;  %v3478_v26 = vpop.permute.xlu1 %3477 }
 0xc56   :  { %v3434_v34 = vsel %vm417_vm2, %v3429_v14, 0  ;;  %v3483_v39 = vsel %vm417_vm2, %v3478_v26, 0 }
 0xc59   :  { %v3527_v40 = vpop.permute.xlu0 %3526 }
 0xc5a   :  { %5710 = vmatmul.mubr.msk.bf16.vlgmr.msra.gmra.mxu0 %vm417_vm2, %v7322_v22  ;;  %5716 = vmatmul.mubr.msk.bf16.vlgmr.msra.gmra.mxu1 %vm417_vm2, %v7324_v42  ;;  %v3576_v22 = vpop.permute.xlu1 %3575  ;;  %v3532_v44 = vsel %vm417_vm2, %v3527_v40, 0  ;;  %v2823_v42 = vpack.c.bf16 %v7289_v27, %v7289_v27 }
 0xc5b   :  { %5720 = vmatpush3.bf16.xpose.msra.mxu0 %v3238_v36  ;;  %5726 = vmatpush3.bf16.xpose.msra.mxu1 %v3287_v37  ;;  %v3581_v29 = vsel %vm417_vm2, %v3576_v22, 0 }
 0xc5c   :  { %5721 = vmatprep.mubr.msk.bf16.mxu0 %vm6526_vm1, %v6523_v1  ;;  %5727 = vmatprep.mubr.msk.bf16.mxu1 %vm6526_vm1, %v6523_v1  ;;  %v3851_v48 = vsel %vm1436_vm3, %v2823_v42, 0 }
 0xc5d   :  { %5731 = vmatprep.subr.bf16.mxu0 %v6523_v1  ;;  %5737 = vmatprep.subr.bf16.mxu1 %v6523_v1 }
 0xc62   :  { %5722 = vmatmul.mubr.msk.bf16.vlgmr.msra.gmra.mxu0 %vm417_vm2, %v7331_v46  ;;  %5728 = vmatmul.mubr.msk.bf16.vlgmr.msra.gmra.mxu1 %vm417_vm2, %v7333_v51 }
 0xc63   :  { %5732 = vmatpush3.bf16.xpose.msra.mxu0 %v3336_v38  ;;  %5738 = vmatpush3.bf16.xpose.msra.mxu1 %v3385_v2 }
 0xc64   :  { %5733 = vmatprep.mubr.msk.bf16.mxu0 %vm6526_vm1, %v6523_v1  ;;  %5739 = vmatprep.mubr.msk.bf16.mxu1 %vm6526_vm1, %v6523_v1 }
 0xc65   :  { %5743 = vmatprep.subr.bf16.mxu0 %v6523_v1  ;;  %5749 = vmatprep.subr.bf16.mxu1 %v6523_v1 }
 0xc6a   :  { %5734 = vmatmul.mubr.msk.bf16.vlgmr.msra.gmra.mxu0 %vm417_vm2, %v7340_v9  ;;  %5740 = vmatmul.mubr.msk.bf16.vlgmr.msra.gmra.mxu1 %vm417_vm2, %v7342_v30 }
 0xc6b   :  { %5744 = vmatpush3.bf16.xpose.msra.mxu0 %v3434_v34  ;;  %5750 = vmatpush3.bf16.xpose.msra.mxu1 %v3483_v39 }
 0xc6c   :  { %5745 = vmatprep.mubr.msk.bf16.mxu0 %vm6526_vm1, %v6523_v1  ;;  %5751 = vmatprep.mubr.msk.bf16.mxu1 %vm6526_vm1, %v6523_v1 }
 0xc6d   :  { %5755 = vmatprep.subr.bf16.mxu0 %v6523_v1  ;;  %5761 = vmatprep.subr.bf16.mxu1 %v6523_v1 }
 0xc72   :  { %5746 = vmatmul.mubr.msk.bf16.vlgmr.msra.gmra.mxu0 %vm417_vm2, %v7350_v25  ;;  %5752 = vmatmul.mubr.msk.bf16.vlgmr.msra.gmra.mxu1 %vm417_vm2, %v7352_v53 }
 0xc73   :  { %5756 = vmatpush3.bf16.xpose.msra.mxu0 %v3532_v44  ;;  %5762 = vmatpush3.bf16.xpose.msra.mxu1 %v3581_v29 }
 0xc74   :  { %5757 = vmatprep.mubr.msk.bf16.mxu0 %vm6526_vm1, %v6523_v1  ;;  %5763 = vmatprep.mubr.msk.bf16.mxu1 %vm6526_vm1, %v6523_v1 }
 0xc75   :  { %5767 = vmatprep.subr.bf16.mxu0 %v6523_v1  ;;  %5773 = vmatprep.subr.bf16.mxu1 %v6523_v1 }
 0xc7a   :  { %5758 = vmatmul.mubr.msk.bf16.vlgmr.msra.gmra.mxu0 %vm417_vm2, %v7361_v60  ;;  %5764 = vmatmul.mubr.msk.bf16.vlgmr.msra.gmra.mxu1 %vm417_vm2, %v7363_v11 }
 0xc7b   :  { %5768 = vmatpush3.bf16.msra.mxu0 %v3851_v48  ;;  %5774 = vmatpush3.bf16.msra.mxu1 %v3897_v20 }
 0xc7c   :  { %5769 = vmatprep.mubr.msk.bf16.mxu0 %vm6526_vm1, %v6523_v1  ;;  %5779 = vmatprep.subr.bf16.mxu0 %v6523_v1 }
 0xc7d   :  { %5775 = vmatprep.mubr.msk.bf16.mxu1 %vm6526_vm1, %v6523_v1  ;;  %5785 = vmatprep.subr.bf16.mxu1 %v6523_v1 }
 0xca0   :  { %v2882_v27 = vpop.f32.mrf.mxu1 }
 0xca1   :  { %v3623_v63 = vmul.f32 0.35355338, %v2882_v27 }
 0xca2   :  { %v5675_v46 = vpop.f32.mrf.mxu1 }
 0xca3   :  { %v7465_v50 = vadd.f32 %v3623_v63, %v6855_v58 }
 0xca4   :  { %v2885_v52 = vpop.f32.mrf.mxu1 }
 0xca5   :  { %v3655_v51 = vsel %vm417_vm2, %v7465_v50, -inf }
 0xca6   :  { %3656 = vmax.xlane.f32.xlu0 %v3655_v51  ;;  %v5676_v9 = vpop.f32.mrf.mxu1 }
 0xca8   :  { %v2931_v54 = vpop.f32.mrf.mxu1 }
 0xca9   :  { %v3624_v57 = vmul.f32 0.35355338, %v2931_v54 }
 0xcaa   :  { %v5681_v59 = vpop.f32.mrf.mxu1 }
 0xcab   :  { %v7470_v30 = vadd.f32 %v3624_v57, %v6863_v5 }
 0xcac   :  { %v2934_v49 = vpop.f32.mrf.mxu1 }
 0xcad   :  { %v3658_v15 = vsel %vm417_vm2, %v7470_v30, -inf }
 0xcae   :  { %3659 = vmax.xlane.f32.xlu1 %v3658_v15  ;;  %v5682_v25 = vpop.f32.mrf.mxu1 }
 0xcbf   :  { %6085 = vrot.lane.b32.xlu1 %v7297_v41, %s6524_s2 }
 0xd0a   :  { %v2980_v61 = vpop.f32.mrf.mxu0  ;;  %v3029_v43 = vpop.f32.mrf.mxu1 }
 0xd0b   :  { %v3625_v53 = vmul.f32 0.35355338, %v2980_v61  ;;  %v3626_v60 = vmul.f32 0.35355338, %v3029_v43 }
 0xd0c   :  { %v5687_v11 = vpop.f32.mrf.mxu0  ;;  %v5693_v12 = vpop.f32.mrf.mxu1 }
 0xd0d   :  { %v7477_v6 = vadd.f32 %v3625_v53, %v6855_v58  ;;  %v7480_v62 = vadd.f32 %v3626_v60, %v6863_v5 }
 0xd0e   :  { %v2983_v3 = vpop.f32.mrf.mxu0  ;;  %v3032_v16 = vpop.f32.mrf.mxu1 }
 0xd0f   :  { %v3661_v23 = vsel %vm417_vm2, %v7477_v6, -inf  ;;  %v3664_v31 = vsel %vm417_vm2, %v7480_v62, -inf }
 0xd10   :  { %v5694_v24 = vpop.f32.mrf.mxu1  ;;  %3662 = vmax.xlane.f32.xlu0 %v3661_v23  ;;  %v5688_v19 = vpop.f32.mrf.mxu0 }
 0xd12   :  { %v3078_v32 = vpop.f32.mrf.mxu0  ;;  %v3127_v8 = vpop.f32.mrf.mxu1 }
 0xd13   :  { %v3627_v28 = vmul.f32 0.35355338, %v3078_v32  ;;  %v3628_v10 = vmul.f32 0.35355338, %v3127_v8 }
 0xd14   :  { %v5705_v33 = vpop.f32.mrf.mxu1  ;;  %3665 = vmax.xlane.f32.xlu0 %v3664_v31  ;;  %v5699_v36 = vpop.f32.mrf.mxu0 }
 0xd15   :  { %v7487_v37 = vadd.f32 %v3628_v10, %v6863_v5  ;;  %v7490_v13 = vadd.f32 %v3627_v28, %v6855_v58 }
 0xd16   :  { %v3081_v45 = vpop.f32.mrf.mxu0  ;;  %v3130_v38 = vpop.f32.mrf.mxu1 }
 0xd17   :  { %v3670_v2 = vsel %vm417_vm2, %v7487_v37, -inf  ;;  %v3667_v14 = vsel %vm417_vm2, %v7490_v13, -inf }
 0xd18   :  { %v5706_v26 = vpop.f32.mrf.mxu1  ;;  %3671 = vmax.xlane.f32.xlu0 %v3670_v2  ;;  %3668 = vmax.xlane.f32.xlu1 %v3667_v14  ;;  %v5700_v34 = vpop.f32.mrf.mxu0 }
 0xd1a   :  { %v3176_v39 = vpop.f32.mrf.mxu0  ;;  %v3225_v40 = vpop.f32.mrf.mxu1 }
 0xd1b   :  { %v3629_v22 = vmul.f32 0.35355338, %v3176_v39  ;;  %v3630_v44 = vmul.f32 0.35355338, %v3225_v40 }
 0xd1c   :  { %v5711_v29 = vpop.f32.mrf.mxu0  ;;  %v5717_v42 = vpop.f32.mrf.mxu1 }
 0xd1d   :  { %v7497_v35 = vadd.f32 %v3630_v44, %v6863_v5  ;;  %v7500_v48 = vadd.f32 %v3629_v22, %v6855_v58 }
 0xd1e   :  { %v3179_v20 = vpop.f32.mrf.mxu0  ;;  %v3228_v27 = vpop.f32.mrf.mxu1 }
 0xd1f   :  { %v3676_v63 = vsel %vm417_vm2, %v7497_v35, -inf  ;;  %v3673_v46 = vsel %vm417_vm2, %v7500_v48, -inf }
 0xd20   :  { %v5718_v52 = vpop.f32.mrf.mxu1  ;;  %3677 = vmax.xlane.f32.xlu0 %v3676_v63  ;;  %3674 = vmax.xlane.f32.xlu1 %v3673_v46  ;;  %v5712_v51 = vpop.f32.mrf.mxu0 }
 0xd22   :  { %v3274_v9 = vpop.f32.mrf.mxu0  ;;  %v3323_v54 = vpop.f32.mrf.mxu1 }
 0xd23   :  { %v3631_v57 = vmul.f32 0.35355338, %v3274_v9  ;;  %v3632_v59 = vmul.f32 0.35355338, %v3323_v54 }
 0xd24   :  { %v5723_v49 = vpop.f32.mrf.mxu0  ;;  %v5729_v15 = vpop.f32.mrf.mxu1 }
 0xd25   :  { %v7507_v25 = vadd.f32 %v3631_v57, %v6855_v58  ;;  %v7510_v61 = vadd.f32 %v3632_v59, %v6863_v5 }
 0xd26   :  { %v3277_v43 = vpop.f32.mrf.mxu0  ;;  %v3326_v53 = vpop.f32.mrf.mxu1 }
 0xd27   :  { %v3682_v60 = vsel %vm417_vm2, %v7510_v61, -inf  ;;  %v3679_v11 = vsel %vm417_vm2, %v7507_v25, -inf }
 0xd28   :  { %v5730_v12 = vpop.f32.mrf.mxu1  ;;  %3683 = vmax.xlane.f32.xlu0 %v3682_v60  ;;  %3680 = vmax.xlane.f32.xlu1 %v3679_v11  ;;  %v5724_v3 = vpop.f32.mrf.mxu0 }
 0xd2a   :  { %v3372_v16 = vpop.f32.mrf.mxu0  ;;  %v3421_v23 = vpop.f32.mrf.mxu1 }
 0xd2b   :  { %v3633_v24 = vmul.f32 0.35355338, %v3372_v16  ;;  %v3634_v19 = vmul.f32 0.35355338, %v3421_v23 }
 0xd2c   :  { %v5735_v32 = vpop.f32.mrf.mxu0  ;;  %v5741_v8 = vpop.f32.mrf.mxu1 }
 0xd2d   :  { %v7517_v28 = vadd.f32 %v3633_v24, %v6855_v58  ;;  %v7520_v10 = vadd.f32 %v3634_v19, %v6863_v5 }
 0xd2e   :  { %v3375_v31 = vpop.f32.mrf.mxu0  ;;  %v3424_v33 = vpop.f32.mrf.mxu1 }
 0xd2f   :  { %v3657_v36 = vpop.xlane.xlu0 %3656  ;;  %v3688_v45 = vsel %vm417_vm2, %v7520_v10, -inf  ;;  %v3685_v38 = vsel %vm417_vm2, %v7517_v28, -inf }
 0xd30   :  { %v3703_v2 = vsub.f32 %v7465_v50, %v3657_v36  ;;  %v5742_v14 = vpop.f32.mrf.mxu1  ;;  %3689 = vmax.xlane.f32.xlu0 %v3688_v45  ;;  %3686 = vmax.xlane.f32.xlu1 %v3685_v38  ;;  %v5736_v26 = vpop.f32.mrf.mxu0 }
 0xd32   :  { %v3719_v34 = vmul.f32 1.442695, %v3703_v2  ;;  %v3470_v39 = vpop.f32.mrf.mxu0  ;;  %v3519_v40 = vpop.f32.mrf.mxu1 }
 0xd33   :  { %v3635_v22 = vmul.f32 0.35355338, %v3470_v39  ;;  %v3636_v44 = vmul.f32 0.35355338, %v3519_v40 }
 0xd34   :  { %6286 = vpow2.f32 %v3719_v34  ;;  %v5747_v29 = vpop.f32.mrf.mxu0  ;;  %v5753_v42 = vpop.f32.mrf.mxu1 }
 0xd35   :  { %v7528_v20 = vadd.f32 %v3635_v22, %v6855_v58  ;;  %v7531_v27 = vadd.f32 %v3636_v44, %v6863_v5 }
 0xd36   :  { %v3522_v63 = vpop.f32.mrf.mxu1  ;;  %v3473_v50 = vpop.f32.mrf.mxu0 }
 0xd37   :  { %v3660_v46 = vpop.xlane.xlu1 %3659  ;;  %v3694_v52 = vsel %vm417_vm2, %v7531_v27, -inf  ;;  %v3691_v51 = vsel %vm417_vm2, %v7528_v20, -inf }
 0xd38   :  { %v3704_v9 = vsub.f32 %v7470_v30, %v3660_v46  ;;  %v5754_v54 = vpop.f32.mrf.mxu1  ;;  %3695 = vmax.xlane.f32.xlu0 %v3694_v52  ;;  %3692 = vmax.xlane.f32.xlu1 %v3691_v51  ;;  %v5748_v57 = vpop.f32.mrf.mxu0 }
 0xd3a   :  { %v3721_v59 = vmul.f32 1.442695, %v3704_v9  ;;  %v3617_v49 = vpop.f32.mrf.mxu1  ;;  %v3568_v15 = vpop.f32.mrf.mxu0 }
 0xd3b   :  { %v3637_v60 = vmul.f32 0.35355338, %v3568_v15  ;;  %v3638_v19 = vmul.f32 0.35355338, %v3617_v49 }
 0xd3c   :  { %6288 = vpow2.f32 %v3721_v59  ;;  %v5759_v43 = vpop.f32.mrf.mxu0  ;;  %v5765_v53 = vpop.f32.mrf.mxu1 }
 0xd3d   :  { %v7541_v24 = vadd.f32 %v3637_v60, %v6855_v58  ;;  %v7550_v31 = vadd.f32 %v3638_v19, %v6863_v5  ;;  %v7561_v5 = vpop.permute.xlu1 %6085 }
 0xd3e   :  { %v3571_v11 = vpop.f32.mrf.mxu0  ;;  %v3620_v12 = vpop.f32.mrf.mxu1 }
 0xd3f   :  { %v3697_v32 = vsel %vm417_vm2, %v7541_v24, -inf  ;;  %v3700_v58 = vsel %vm417_vm2, %v7550_v31, -inf }
 0xd40   :  { %v5760_v3 = vpop.f32.mrf.mxu0  ;;  %v5766_v16 = vpop.f32.mrf.mxu1 }
 0xd41   :  { %v7538_v23 = vpop.eup %6286 }
 0xd42   :  { %v3751_v30 = vsel %vm417_vm2, %v7538_v23, 0.0 }
 0xd43   :  { %3752 = vadd.xlane.f32.xlu1 %v3751_v30 }
 0xd47   :  { %3698 = vmax.xlane.f32.xlu1 %v3697_v32 }
 0xd49   :  { %v7547_v8 = vpop.eup %6288 }
 0xd4a   :  { %v3754_v33 = vsel %vm417_vm2, %v7547_v8, 0.0 }
 0xd4b   :  { %3755 = vadd.xlane.f32.xlu0 %v3754_v33 }
 0xd4f   :  { %3701 = vmax.xlane.f32.xlu0 %v3700_v58 }
 0xd58   :  { %6095 = vrot.lane.b32.xlu1 %v7297_v41, %s6528_s19  ;;  %s7887_s19 = smov 56  }
 0xd65   :  { %6090 = vrot.lane.b32.xlu0 %v7297_v41, %s6525_s17 }
 0xd99   :  { %v3663_v36 = vpop.xlane.xlu0 %3662 }
 0xd9a   :  { %v3705_v45 = vsub.f32 %v7477_v6, %v3663_v36 }
 0xd9c   :  { %v3723_v38 = vmul.f32 1.442695, %v3705_v45 }
 0xd9d   :  { %v3666_v2 = vpop.xlane.xlu0 %3665 }
 0xd9e   :  { %6290 = vpow2.f32 %v3723_v38  ;;  %v3706_v14 = vsub.f32 %v7480_v62, %v3666_v2 }
 0xda0   :  { %v3725_v26 = vmul.f32 1.442695, %v3706_v14 }
 0xda1   :  { %v3672_v34 = vpop.xlane.xlu0 %3671  ;;  %v3669_v39 = vpop.xlane.xlu1 %3668 }
 0xda2   :  { %6292 = vpow2.f32 %v3725_v26  ;;  %v3708_v40 = vsub.f32 %v7487_v37, %v3672_v34  ;;  %v3707_v22 = vsub.f32 %v7490_v13, %v3669_v39 }
 0xda4   :  { %v3729_v44 = vmul.f32 1.442695, %v3708_v40  ;;  %v3727_v29 = vmul.f32 1.442695, %v3707_v22 }
 0xda6   :  { %6294 = vpow2.f32 %v3729_v44 }
 0xda7   :  { %6296 = vpow2.f32 %v3727_v29 }
 0xda9   :  { %v3678_v6 = vpop.xlane.xlu0 %3677  ;;  %v3675_v42 = vpop.xlane.xlu1 %3674 }
 0xdaa   :  { %v3710_v63 = vsub.f32 %v7497_v35, %v3678_v6  ;;  %v3709_v50 = vsub.f32 %v7500_v48, %v3675_v42 }
 0xdab   :  { %v7568_v46 = vpop.eup %6290 }
 0xdac   :  { %v3733_v62 = vmul.f32 1.442695, %v3710_v63  ;;  %v3731_v52 = vmul.f32 1.442695, %v3709_v50  ;;  %v3757_v51 = vsel %vm417_vm2, %v7568_v46, 0.0 }
 0xdad   :  { %3758 = vadd.xlane.f32.xlu1 %v3757_v51 }
 0xdae   :  { %6298 = vpow2.f32 %v3733_v62  ;;  %v6087_v62 = vunpack.i.l.bf16 %v7561_v5 }
 0xdaf   :  { %v7572_v37 = vpop.eup %6292  ;;  %6300 = vpow2.f32 %v3731_v52 }
 0xdb0   :  { %v3760_v13 = vsel %vm417_vm2, %v7572_v37, 0.0 }
 0xdb1   :  { %3761 = vadd.xlane.f32.xlu0 %v3760_v13  ;;  %v3684_v9 = vpop.xlane.xlu0 %3683  ;;  %v3681_v35 = vpop.xlane.xlu1 %3680 }
 0xdb2   :  { %v3712_v48 = vsub.f32 %v7510_v61, %v3684_v9  ;;  %v3711_v54 = vsub.f32 %v7507_v25, %v3681_v35 }
 0xdb3   :  { %v7578_v57 = vpop.eup %6294 }
 0xdb4   :  { %v7580_v59 = vpop.eup %6296  ;;  %v3735_v49 = vmul.f32 1.442695, %v3711_v54  ;;  %v3766_v15 = vsel %vm417_vm2, %v7578_v57, 0.0  ;;  %v3737_v43 = vmul.f32 1.442695, %v3712_v48  ;;  %v6088_v48 = vunpack.i.h.bf16 %v7561_v5 }
 0xdb5   :  { %3767 = vadd.xlane.f32.xlu0 %v3766_v15  ;;  %v3763_v53 = vsel %vm417_vm2, %v7580_v59, 0.0 }
 0xdb6   :  { %3764 = vadd.xlane.f32.xlu1 %v3763_v53  ;;  %6302 = vpow2.f32 %v3735_v49  ;;  %v2826_v15 = vpack.c.bf16 %v6088_v48, %v6088_v48 }
 0xdb7   :  { %6304 = vpow2.f32 %v3737_v43 }
 0xdb8   :  { %v3989_v5 = vsel %vm1436_vm3, %v2826_v15, 0 }
 0xdb9   :  { %v3690_v60 = vpop.xlane.xlu0 %3689  ;;  %v3687_v61 = vpop.xlane.xlu1 %3686 }
 0xdba   :  { %v3714_v25 = vsub.f32 %v7520_v10, %v3690_v60  ;;  %v3713_v11 = vsub.f32 %v7517_v28, %v3687_v61 }
 0xdbb   :  { %v7588_v12 = vpop.eup %6298 }
 0xdbc   :  { %v7590_v3 = vpop.eup %6300  ;;  %v3741_v16 = vmul.f32 1.442695, %v3714_v25  ;;  %v3739_v30 = vmul.f32 1.442695, %v3713_v11  ;;  %v3772_v19 = vsel %vm417_vm2, %v7588_v12, 0.0 }
 0xdbd   :  { %3773 = vadd.xlane.f32.xlu0 %v3772_v19  ;;  %v3769_v32 = vsel %vm417_vm2, %v7590_v3, 0.0 }
 0xdbe   :  { %6306 = vpow2.f32 %v3741_v16  ;;  %3770 = vadd.xlane.f32.xlu1 %v3769_v32 }
 0xdbf   :  { %6308 = vpow2.f32 %v3739_v30 }
 0xdc1   :  { %v3696_v33 = vpop.xlane.xlu0 %3695  ;;  %v3693_v10 = vpop.xlane.xlu1 %3692 }
 0xdc2   :  { %v3716_v28 = vsub.f32 %v7531_v27, %v3696_v33  ;;  %v3715_v58 = vsub.f32 %v7528_v20, %v3693_v10 }
 0xdc3   :  { %v7598_v36 = vpop.eup %6302 }
 0xdc4   :  { %v3743_v45 = vmul.f32 1.442695, %v3715_v58  ;;  %v3745_v38 = vmul.f32 1.442695, %v3716_v28  ;;  %v3775_v2 = vsel %vm417_vm2, %v7598_v36, 0.0  ;;  %v7602_v14 = vpop.eup %6304 }
 0xdc5   :  { %3776 = vadd.xlane.f32.xlu0 %v3775_v2  ;;  %v3778_v26 = vsel %vm417_vm2, %v7602_v14, 0.0 }
 0xdc6   :  { %6310 = vpow2.f32 %v3743_v45 }
 0xdc7   :  { %6312 = vpow2.f32 %v3745_v38 }
 0xdc9   :  { %3779 = vadd.xlane.f32.xlu0 %v3778_v26 }
 0xdcb   :  { %v7606_v34 = vpop.eup %6306 }
 0xdcc   :  { %v7608_v27 = vpop.eup %6308  ;;  %v3753_v20 = vpop.xlane.xlu1 %3752  ;;  %v3784_v39 = vsel %vm417_vm2, %v7606_v34, 0.0 }
 0xdcd   :  { %6314 = vrcp.f32 %v3753_v20  ;;  %v3781_v40 = vsel %vm417_vm2, %v7608_v27, 0.0  ;;  %3785 = vadd.xlane.f32.xlu0 %v3784_v39 }
 0xdce   :  { %3782 = vadd.xlane.f32.xlu1 %v3781_v40 }
 0xdd0   :  { %v3699_v22 = vpop.xlane.xlu1 %3698 }
 0xdd1   :  { %v3717_v44 = vsub.f32 %v7541_v24, %v3699_v22  ;;  %v2825_v24 = vpack.c.bf16 %v6087_v62, %v6087_v62 }
 0xdd3   :  { %v3747_v29 = vmul.f32 1.442695, %v3717_v44  ;;  %v7615_v6 = vpop.eup %6310  ;;  %v3943_v35 = vsel %vm1436_vm3, %v2825_v24, 0 }
 0xdd4   :  { %v3756_v42 = vpop.xlane.xlu0 %3755  ;;  %v3787_v63 = vsel %vm417_vm2, %v7615_v6, 0.0  ;;  %v7619_v50 = vpop.eup %6312 }
 0xdd5   :  { %6316 = vpow2.f32 %v3747_v29  ;;  %3788 = vadd.xlane.f32.xlu0 %v3787_v63  ;;  %v3790_v52 = vsel %vm417_vm2, %v7619_v50, 0.0 }
 0xdd6   :  { %6318 = vrcp.f32 %v3756_v42 }
 0xdd8   :  { %v3702_v60 = vpop.xlane.xlu0 %3701 }
 0xdd9   :  { %3791 = vadd.xlane.f32.xlu0 %v3790_v52  ;;  %v3718_v61 = vsub.f32 %v7550_v31, %v3702_v60  ;;  %v6096_v31 = vpop.permute.xlu1 %6095 }
 0xdda   :  { %v6315_v51 = vpop.eup %6314  ;;  %v6097_v44 = vunpack.i.l.bf16 %v6096_v31  ;;  %v6098_v63 = vunpack.i.h.bf16 %v6096_v31 }
 0xddb   :  { %v3815_v13 = vmul.f32 %v6315_v51, %v7538_v23  ;;  %v3749_v25 = vmul.f32 1.442695, %v3718_v61 }
 0xddc   :  { %v6091_v16 = vpop.permute.xlu0 %6090 }
 0xddd   :  { %v3831_v9 = vpack.c.bf16 %v3815_v13, %v3815_v13  ;;  %6320 = vpow2.f32 %v3749_v25  ;;  %v6092_v10 = vunpack.i.l.bf16 %v6091_v16  ;;  %v6093_v58 = vunpack.i.h.bf16 %v6091_v16 }
 0xddf   :  { %5770 = vmatmul.mubr.msk.bf16.vlgmr.msra.gmra.mxu0 %vm417_vm2, %v3831_v9  ;;  %6100 = vrot.lane.b32.xlu1 %v7297_v41, %s6527_s1  ;;  %v2827_v45 = vpack.c.bf16 %v6092_v10, %v6092_v10  ;;  %v2828_v39 = vpack.c.bf16 %v6093_v58, %v6093_v58  ;;  %v2830_v9 = vpack.c.bf16 %v6098_v63, %v6098_v63 }
 0xde0   :  { %5780 = vmatpush3.bf16.msra.mxu0 %v3943_v35  ;;  %5781 = vmatprep.mubr.msk.bf16.mxu0 %vm6526_vm1, %v6523_v1 }
 0xde1   :  { %5791 = vmatprep.subr.bf16.mxu0 %v6523_v1  ;;  %v4035_v22 = vsel %vm1436_vm3, %v2827_v45, 0  ;;  %v4081_v62 = vsel %vm1436_vm3, %v2828_v39, 0 }
 0xde2   :  { %v7633_v54 = vpop.eup %6316 }
 0xde3   :  { %v6319_v49 = vpop.eup %6318  ;;  %v3793_v23 = vsel %vm417_vm2, %v7633_v54, 0.0 }
 0xde4   :  { %v3816_v43 = vmul.f32 %v6319_v49, %v7547_v8  ;;  %3794 = vadd.xlane.f32.xlu0 %v3793_v23  ;;  %v4173_v23 = vsel %vm1436_vm3, %v2830_v9, 0 }
 0xde6   :  { %v3832_v53 = vpack.c.bf16 %v3816_v43, %v3816_v43 }
 0xde8   :  { %5776 = vmatmul.mubr.msk.bf16.vlgmr.msra.gmra.mxu1 %vm417_vm2, %v3832_v53 }
 0xde9   :  { %5786 = vmatpush3.bf16.msra.mxu1 %v3989_v5  ;;  %5787 = vmatprep.mubr.msk.bf16.mxu1 %vm6526_vm1, %v6523_v1 }
 0xdea   :  { %5797 = vmatprep.subr.bf16.mxu1 %v6523_v1  ;;  %v7648_v8 = vpop.eup %6320 }
 0xdeb   :  { %v3796_v11 = vsel %vm417_vm2, %v7648_v8, 0.0 }
 0xdfa   :  { %6105 = vrot.lane.b32.xlu0 %v7297_v41, %s6529_s6 }
 0xdfe   :  { %6110 = vrot.lane.b32.xlu0 %v7297_v41, %s6530_s20 }
 0xe02   :  { %6115 = vrot.lane.b32.xlu0 %v7297_v41, %s6531_s21 }
 0xe03   :  { %3797 = vadd.xlane.f32.xlu1 %v3796_v11 }
 0xe36   :  { %v3759_v30 = vpop.xlane.xlu1 %3758 }
 0xe37   :  { %6322 = vrcp.f32 %v3759_v30 }
 0xe3a   :  { %v3762_v19 = vpop.xlane.xlu0 %3761 }
 0xe3b   :  { %6324 = vrcp.f32 %v3762_v19 }
 0xe3e   :  { %v3768_v32 = vpop.xlane.xlu0 %3767 }
 0xe3f   :  { %6326 = vrcp.f32 %v3768_v32  ;;  %v3765_v33 = vpop.xlane.xlu1 %3764 }
 0xe40   :  { %6328 = vrcp.f32 %v3765_v33 }
 0xe44   :  { %v6323_v28 = vpop.eup %6322 }
 0xe45   :  { %v3817_v41 = vmul.f32 %v6323_v28, %v7568_v46 }
 0xe46   :  { %v3774_v38 = vpop.xlane.xlu0 %3773 }
 0xe47   :  { %6330 = vrcp.f32 %v3774_v38  ;;  %v3771_v2 = vpop.xlane.xlu1 %3770  ;;  %v3833_v26 = vpack.c.bf16 %v3817_v41, %v3817_v41 }
 0xe48   :  { %v6325_v20 = vpop.eup %6324  ;;  %6332 = vrcp.f32 %v3771_v2 }
 0xe49   :  { %v3818_v40 = vmul.f32 %v6325_v20, %v7572_v37  ;;  %5782 = vmatmul.mubr.msk.bf16.vlgmr.msra.gmra.mxu0 %vm417_vm2, %v3833_v26  ;;  %v2829_v37 = vpack.c.bf16 %v6097_v44, %v6097_v44 }
 0xe4a   :  { %5792 = vmatpush3.bf16.msra.mxu0 %v4035_v22  ;;  %5793 = vmatprep.mubr.msk.bf16.mxu0 %vm6526_vm1, %v6523_v1 }
 0xe4b   :  { %v3834_v29 = vpack.c.bf16 %v3818_v40, %v3818_v40  ;;  %5803 = vmatprep.subr.bf16.mxu0 %v6523_v1  ;;  %v4127_v35 = vsel %vm1436_vm3, %v2829_v37, 0 }
 0xe4c   :  { %v6327_v46 = vpop.eup %6326 }
 0xe4d   :  { %v6329_v42 = vpop.eup %6328  ;;  %5788 = vmatmul.mubr.msk.bf16.vlgmr.msra.gmra.mxu1 %vm417_vm2, %v3834_v29  ;;  %v3820_v51 = vmul.f32 %v6327_v46, %v7578_v57 }
 0xe4e   :  { %5798 = vmatpush3.bf16.msra.mxu1 %v4081_v62  ;;  %v3819_v52 = vmul.f32 %v6329_v42, %v7580_v59  ;;  %5799 = vmatprep.mubr.msk.bf16.mxu1 %vm6526_vm1, %v6523_v1  ;;  %v3777_v24 = vpop.xlane.xlu0 %3776 }
 0xe4f   :  { %5809 = vmatprep.subr.bf16.mxu1 %v6523_v1  ;;  %6334 = vrcp.f32 %v3777_v24  ;;  %v3836_v48 = vpack.c.bf16 %v3820_v51, %v3820_v51 }
 0xe50   :  { %v3835_v13 = vpack.c.bf16 %v3819_v52, %v3819_v52 }
 0xe52   :  { %5794 = vmatmul.mubr.msk.bf16.vlgmr.msra.gmra.mxu0 %vm417_vm2, %v3835_v13  ;;  %v3780_v49 = vpop.xlane.xlu0 %3779 }
 0xe53   :  { %5804 = vmatpush3.bf16.msra.mxu0 %v4127_v35  ;;  %5805 = vmatprep.mubr.msk.bf16.mxu0 %vm6526_vm1, %v6523_v1  ;;  %6336 = vrcp.f32 %v3780_v49 }
 0xe54   :  { %v6331_v59 = vpop.eup %6330  ;;  %5815 = vmatprep.subr.bf16.mxu0 %v6523_v1 }
 0xe55   :  { %v6333_v57 = vpop.eup %6332  ;;  %5800 = vmatmul.mubr.msk.bf16.vlgmr.msra.gmra.mxu1 %vm417_vm2, %v3836_v48  ;;  %v3822_v43 = vmul.f32 %v6331_v59, %v7588_v12 }
 0xe56   :  { %5810 = vmatpush3.bf16.msra.mxu1 %v4173_v23  ;;  %v3821_v15 = vmul.f32 %v6333_v57, %v7590_v3  ;;  %5811 = vmatprep.mubr.msk.bf16.mxu1 %vm6526_vm1, %v6523_v1  ;;  %v3786_v30 = vpop.xlane.xlu0 %3785 }
 0xe57   :  { %v3783_v53 = vpop.xlane.xlu1 %3782  ;;  %5821 = vmatprep.subr.bf16.mxu1 %v6523_v1  ;;  %v3838_v5 = vpack.c.bf16 %v3822_v43, %v3822_v43  ;;  %6338 = vrcp.f32 %v3786_v30 }
 0xe58   :  { %v3837_v60 = vpack.c.bf16 %v3821_v15, %v3821_v15  ;;  %6340 = vrcp.f32 %v3783_v53 }
 0xe5a   :  { %5806 = vmatmul.mubr.msk.bf16.vlgmr.msra.gmra.mxu0 %vm417_vm2, %v3837_v60 }
 0xe5b   :  { %v6101_v61 = vpop.permute.xlu1 %6100  ;;  %5817 = vmatprep.mubr.msk.bf16.mxu0 %vm6526_vm1, %v6523_v1 }
 0xe5c   :  { %v6103_v25 = vunpack.i.h.bf16 %v6101_v61  ;;  %v6102_v11 = vunpack.i.l.bf16 %v6101_v61  ;;  %v6335_v31 = vpop.eup %6334 }
 0xe5d   :  { %5812 = vmatmul.mubr.msk.bf16.vlgmr.msra.gmra.mxu1 %vm417_vm2, %v3838_v5  ;;  %v3823_v3 = vmul.f32 %v6335_v31, %v7598_v36 }
 0xe5e   :  { %v2832_v16 = vpack.c.bf16 %v6103_v25, %v6103_v25  ;;  %v2831_v12 = vpack.c.bf16 %v6102_v11, %v6102_v11  ;;  %5823 = vmatprep.mubr.msk.bf16.mxu1 %vm6526_vm1, %v6523_v1  ;;  %v3789_v36 = vpop.xlane.xlu0 %3788 }
 0xe5f   :  { %v3839_v10 = vpack.c.bf16 %v3823_v3, %v3823_v3  ;;  %6342 = vrcp.f32 %v3789_v36 }
 0xe60   :  { %v4219_v19 = vsel %vm1436_vm3, %v2831_v12, 0  ;;  %v4265_v32 = vsel %vm1436_vm3, %v2832_v16, 0  ;;  %v6337_v33 = vpop.eup %6336 }
 0xe61   :  { %5816 = vmatpush3.bf16.msra.mxu0 %v4219_v19  ;;  %5822 = vmatpush3.bf16.msra.mxu1 %v4265_v32  ;;  %v3824_v28 = vmul.f32 %v6337_v33, %v7602_v14 }
 0xe62   :  { %5827 = vmatprep.subr.bf16.mxu0 %v6523_v1  ;;  %5833 = vmatprep.subr.bf16.mxu1 %v6523_v1  ;;  %v3792_v45 = vpop.xlane.xlu0 %3791 }
 0xe63   :  { %v3840_v58 = vpack.c.bf16 %v3824_v28, %v3824_v28  ;;  %6344 = vrcp.f32 %v3792_v45 }
 0xe64   :  { %5818 = vmatmul.mubr.msk.bf16.vlgmr.msra.gmra.mxu0 %vm417_vm2, %v3839_v10  ;;  %v6339_v41 = vpop.eup %6338 }
 0xe65   :  { %5829 = vmatprep.mubr.msk.bf16.mxu0 %vm6526_vm1, %v6523_v1  ;;  %5824 = vmatmul.mubr.msk.bf16.vlgmr.msra.gmra.mxu1 %vm417_vm2, %v3840_v58  ;;  %v6341_v38 = vpop.eup %6340  ;;  %v3826_v39 = vmul.f32 %v6339_v41, %v7606_v34 }
 0xe66   :  { %5835 = vmatprep.mubr.msk.bf16.mxu1 %vm6526_vm1, %v6523_v1  ;;  %v3825_v40 = vmul.f32 %v6341_v38, %v7608_v27 }
 0xe67   :  { %v3842_v37 = vpack.c.bf16 %v3826_v39, %v3826_v39 }
 0xe68   :  { %v3841_v51 = vpack.c.bf16 %v3825_v40, %v3825_v40 }
 0xe6c   :  { %v6343_v52 = vpop.eup %6342 }
 0xe6d   :  { %v3795_v14 = vpop.xlane.xlu0 %3794  ;;  %v3827_v59 = vmul.f32 %v6343_v52, %v7615_v6 }
 0xe6e   :  { %6346 = vrcp.f32 %v3795_v14 }
 0xe6f   :  { %v3843_v43 = vpack.c.bf16 %v3827_v59, %v3827_v59 }
 0xe70   :  { %v6345_v34 = vpop.eup %6344 }
 0xe71   :  { %v6106_v2 = vpop.permute.xlu0 %6105  ;;  %v3828_v57 = vmul.f32 %v6345_v34, %v7619_v50 }
 0xe72   :  { %v6108_v26 = vunpack.i.h.bf16 %v6106_v2  ;;  %v6107_v20 = vunpack.i.l.bf16 %v6106_v2 }
 0xe73   :  { %v3844_v53 = vpack.c.bf16 %v3828_v57, %v3828_v57 }
 0xe74   :  { %v2834_v22 = vpack.c.bf16 %v6108_v26, %v6108_v26  ;;  %v2833_v44 = vpack.c.bf16 %v6107_v20, %v6107_v20 }
 0xe75   :  { %v6111_v29 = vpop.permute.xlu0 %6110 }
 0xe76   :  { %v6113_v46 = vunpack.i.h.bf16 %v6111_v29  ;;  %v6112_v42 = vunpack.i.l.bf16 %v6111_v29  ;;  %v4311_v63 = vsel %vm1436_vm3, %v2833_v44, 0  ;;  %v4357_v62 = vsel %vm1436_vm3, %v2834_v22, 0 }
 0xe77   :  { %5828 = vmatpush3.bf16.msra.mxu0 %v4311_v63  ;;  %5834 = vmatpush3.bf16.msra.mxu1 %v4357_v62 }
 0xe78   :  { %v2836_v24 = vpack.c.bf16 %v6113_v46, %v6113_v46  ;;  %v2835_v13 = vpack.c.bf16 %v6112_v42, %v6112_v42  ;;  %5839 = vmatprep.subr.bf16.mxu0 %v6523_v1  ;;  %5845 = vmatprep.subr.bf16.mxu1 %v6523_v1 }
 0xe79   :  { %v6116_v27 = vpop.permute.xlu0 %6115 }
 0xe7a   :  { %v6118_v9 = vunpack.i.h.bf16 %v6116_v27  ;;  %v6117_v35 = vunpack.i.l.bf16 %v6116_v27  ;;  %5830 = vmatmul.mubr.msk.bf16.vlgmr.msra.gmra.mxu0 %vm417_vm2, %v3841_v51  ;;  %5836 = vmatmul.mubr.msk.bf16.vlgmr.msra.gmra.mxu1 %vm417_vm2, %v3842_v37  ;;  %v4403_v48 = vsel %vm1436_vm3, %v2835_v13, 0  ;;  %v4449_v49 = vsel %vm1436_vm3, %v2836_v24, 0 }
 0xe7b   :  { %5840 = vmatpush3.bf16.msra.mxu0 %v4403_v48  ;;  %5846 = vmatpush3.bf16.msra.mxu1 %v4449_v49  ;;  %v6347_v60 = vpop.eup %6346 }
 0xe7c   :  { %5841 = vmatprep.mubr.msk.bf16.mxu0 %vm6526_vm1, %v6523_v1  ;;  %5847 = vmatprep.mubr.msk.bf16.mxu1 %vm6526_vm1, %v6523_v1  ;;  %v2838_v23 = vpack.c.bf16 %v6118_v9, %v6118_v9  ;;  %v2837_v15 = vpack.c.bf16 %v6117_v35, %v6117_v35  ;;  %v3829_v5 = vmul.f32 %v6347_v60, %v7633_v54 }
 0xe7d   :  { %5851 = vmatprep.subr.bf16.mxu0 %v6523_v1  ;;  %5857 = vmatprep.subr.bf16.mxu1 %v6523_v1 }
 0xe7e   :  { %v4495_v6 = vsel %vm1436_vm3, %v2837_v15, 0  ;;  %v4541_v50 = vsel %vm1436_vm3, %v2838_v23, 0  ;;  %v3845_v61 = vpack.c.bf16 %v3829_v5, %v3829_v5 }
 0xe82   :  { %5842 = vmatmul.mubr.msk.bf16.vlgmr.msra.gmra.mxu0 %vm417_vm2, %v3843_v43  ;;  %5848 = vmatmul.mubr.msk.bf16.vlgmr.msra.gmra.mxu1 %vm417_vm2, %v3844_v53 }
 0xe83   :  { %5852 = vmatpush3.bf16.msra.mxu0 %v4495_v6  ;;  %5858 = vmatpush3.bf16.msra.mxu1 %v4541_v50  ;;  %v6194_v6 = vld [vmem:[%s7878_s5 + $0x38] sm:$0xff]  }
 0xe84   :  { %5853 = vmatprep.mubr.msk.bf16.mxu0 %vm6526_vm1, %v6523_v1  ;;  %5859 = vmatprep.mubr.msk.bf16.mxu1 %vm6526_vm1, %v6523_v1 }
 0xe85   :  { %5863 = vmatprep.subr.bf16.mxu0 %v6523_v1  ;;  %5875 = vmatprep.subr.bf16.mxu1 %v6523_v1 }
 0xe8a   :  { %5854 = vmatmul.mubr.msk.bf16.vlgmr.msra.gmra.mxu0 %vm417_vm2, %v3845_v61 }
 0xe8b   :  { %5871 = vmatprep.mubr.msk.bf16.mxu0 %vm6526_vm1, %v6523_v1  ;;  %5864 = vmatpush3.bf16.msra.mxu0 %v6194_v6 }
 0xe8c   :  { %v3798_v25 = vpop.xlane.xlu1 %3797  ;;  %5865 = vmatprep.subr.bf16.mxu0 %v6523_v1 }
 0xe8d   :  { %6348 = vrcp.f32 %v3798_v25  ;;  %v6195_v25 = vld [vmem:[%s7878_s5 + $0x30] sm:$0xff]  }
 0xe8f   :  { %5866 = vmatpush3.bf16.msra.mxu0 %v6195_v25 }
 0xe90   :  { %5867 = vmatprep.subr.bf16.mxu0 %v6523_v1 }
 0xe9a   :  { %v6349_v11 = vpop.eup %6348 }
 0xe9b   :  { %v3830_v54 = vmul.f32 %v6349_v11, %v7648_v8 }
 0xe9d   :  { %v3846_v31 = vpack.c.bf16 %v3830_v54, %v3830_v54 }
 0xe9f   :  { %v7731_v3 = vpop.f32.mrf.mxu0  ;;  %5860 = vmatmul.mubr.msk.bf16.vlgmr.msra.gmra.mxu1 %vm417_vm2, %v3846_v31 }
 0xea0   :  { %5883 = vmatprep.mubr.msk.bf16.mxu1 %vm6526_vm1, %v6523_v1 }
 0xea1   :  { %v5771_v16 = vpop.f32.mrf.mxu0 }
 0xea3   :  { %v3890_v12 = vpop.f32.mrf.mxu0 }
 0xea4   :  { %v6196_v12 = vld [vmem:[%s7878_s5 + $0x28] sm:$0xff]  }
 0xea5   :  { %v5772_v30 = vpop.f32.mrf.mxu0  ;;  %5868 = vmatpush3.bf16.msra.mxu0 %v6196_v12 }
 0xea6   :  { %5869 = vmatprep.subr.bf16.mxu0 %v6523_v1 }
 0xea8   :  { %v7736_v19 = vpop.f32.mrf.mxu1 }
 0xeaa   :  { %v5777_v32 = vpop.f32.mrf.mxu1 }
 0xeac   :  { %v3936_v33 = vpop.f32.mrf.mxu1 }
 0xeae   :  { %v5778_v10 = vpop.f32.mrf.mxu1 }
 0xf09   :  { %v3979_v28 = vpop.f32.mrf.mxu0 }
 0xf0b   :  { %v5783_v36 = vpop.f32.mrf.mxu0 }
 0xf0d   :  { %v3982_v58 = vpop.f32.mrf.mxu0  ;;  %v4025_v8 = vpop.f32.mrf.mxu1 }
 0xf0e   :  { %v6119_v45 = vpack.i.bf16 %v4025_v8, %v3979_v28 }
 0xf0f   :  { %v5784_v14 = vpop.f32.mrf.mxu0  ;;  %v5789_v41 = vpop.f32.mrf.mxu1 }
 0xf10   :  { %6120 = vrot.lane.b32.xlu0 %v6119_v45, %s6514_s18 }
 0xf11   :  { %v4028_v38 = vpop.f32.mrf.mxu1 }
 0xf12   :  { %v4071_v2 = vpop.f32.mrf.mxu0 }
 0xf13   :  { %v5790_v26 = vpop.f32.mrf.mxu1 }
 0xf14   :  { %v5795_v20 = vpop.f32.mrf.mxu0  ;;  %v6197_v26 = vld [vmem:[%s7878_s5 + $0x20] sm:$0xff]  }
 0xf15   :  { %v4117_v39 = vpop.f32.mrf.mxu1  ;;  %5870 = vmatpush3.bf16.msra.mxu0 %v6197_v26 }
 0xf16   :  { %v4074_v40 = vpop.f32.mrf.mxu0  ;;  %v6124_v22 = vpack.i.bf16 %v4117_v39, %v4071_v2  ;;  %5887 = vmatprep.subr.bf16.mxu0 %v6523_v1 }
 0xf17   :  { %v5801_v44 = vpop.f32.mrf.mxu1 }
 0xf18   :  { %v5796_v29 = vpop.f32.mrf.mxu0  ;;  %6125 = vrot.lane.b32.xlu0 %v6124_v22, %s6520_s16 }
 0xf19   :  { %v4120_v46 = vpop.f32.mrf.mxu1 }
 0xf1a   :  { %v4163_v42 = vpop.f32.mrf.mxu0 }
 0xf1b   :  { %v5802_v63 = vpop.f32.mrf.mxu1 }
 0xf1c   :  { %v5807_v62 = vpop.f32.mrf.mxu0 }
 0xf1d   :  { %v4209_v37 = vpop.f32.mrf.mxu1 }
 0xf1e   :  { %v4166_v52 = vpop.f32.mrf.mxu0  ;;  %v6129_v51 = vpack.i.bf16 %v4209_v37, %v4163_v42 }
 0xf1f   :  { %v5813_v24 = vpop.f32.mrf.mxu1 }
 0xf20   :  { %v5808_v13 = vpop.f32.mrf.mxu0  ;;  %6130 = vrot.lane.b32.xlu1 %v6129_v51, %s6533_s7 }
 0xf21   :  { %v4212_v34 = vpop.f32.mrf.mxu1 }
 0xf23   :  { %v5814_v27 = vpop.f32.mrf.mxu1 }
 0xf24   :  { %v4255_v9 = vpop.f32.mrf.mxu0 }
 0xf25   :  { %v4301_v48 = vpop.f32.mrf.mxu1 }
 0xf26   :  { %v5819_v35 = vpop.f32.mrf.mxu0  ;;  %v6134_v49 = vpack.i.bf16 %v4301_v48, %v4255_v9 }
 0xf27   :  { %v5825_v57 = vpop.f32.mrf.mxu1 }
 0xf28   :  { %v4258_v59 = vpop.f32.mrf.mxu0  ;;  %6135 = vrot.lane.b32.xlu0 %v6134_v49, %s6510_s29 }
 0xf29   :  { %v4304_v15 = vpop.f32.mrf.mxu1 }
 0xf2a   :  { %v5820_v23 = vpop.f32.mrf.mxu0 }
 0xf2b   :  { %v5826_v43 = vpop.f32.mrf.mxu1 }
 0xf3a   :  { %v4347_v53 = vpop.f32.mrf.mxu0  ;;  %v4393_v60 = vpop.f32.mrf.mxu1 }
 0xf3b   :  { %v6139_v50 = vpack.i.bf16 %v4393_v60, %v4347_v53 }
 0xf3c   :  { %v5831_v5 = vpop.f32.mrf.mxu0  ;;  %v5837_v61 = vpop.f32.mrf.mxu1 }
 0xf3d   :  { %6140 = vrot.lane.b32.xlu0 %v6139_v50, %s6534_s25 }
 0xf3e   :  { %v4350_v11 = vpop.f32.mrf.mxu0  ;;  %v4396_v54 = vpop.f32.mrf.mxu1 }
 0xf40   :  { %v5832_v31 = vpop.f32.mrf.mxu0  ;;  %v5838_v16 = vpop.f32.mrf.mxu1 }
 0xf42   :  { %v4439_v30 = vpop.f32.mrf.mxu0  ;;  %v4485_v32 = vpop.f32.mrf.mxu1 }
 0xf43   :  { %v6144_v33 = vpack.i.bf16 %v4485_v32, %v4439_v30  ;;  %v7783_v32 = vld [vmem:[%s7882_s9 + $0x8] sm:$0x3f] }
 0xf44   :  { %v5843_v10 = vpop.f32.mrf.mxu0  ;;  %v5849_v28 = vpop.f32.mrf.mxu1 }
 0xf45   :  { %6145 = vrot.lane.b32.xlu0 %v6144_v33, %s6535_s28  ;;  %v4657_v33 = vrot.slane %v7783_v32, %v6665_v18 }
 0xf46   :  { %v4442_v36 = vpop.f32.mrf.mxu0  ;;  %v4488_v58 = vpop.f32.mrf.mxu1 }
 0xf48   :  { %v5844_v8 = vpop.f32.mrf.mxu0  ;;  %v5850_v45 = vpop.f32.mrf.mxu1 }
 0xf4a   :  { %v4531_v14 = vpop.f32.mrf.mxu0 }
 0xf4c   :  { %v5855_v41 = vpop.f32.mrf.mxu0 }
 0xf4e   :  { %v4534_v38 = vpop.f32.mrf.mxu0 }
 0xf50   :  { %v5856_v2 = vpop.f32.mrf.mxu0 }
 0xf5f   :  { %v4577_v20 = vpop.f32.mrf.mxu1 }
 0xf60   :  { %v6149_v39 = vpack.i.bf16 %v4577_v20, %v4531_v14 }
 0xf61   :  { %v5861_v40 = vpop.f32.mrf.mxu1 }
 0xf62   :  { %6150 = vrot.lane.b32.xlu0 %v6149_v39, %s7887_s19  ;;  %s6537_s19 = smov [#allocation13]  }
 0xf63   :  { %v4580_v22 = vpop.f32.mrf.mxu1  ;;  %s5093_s5 = sshll.u32 %s6537_s19, 4  ;;  %s5094_s5 = int_to_ptr.vmem [resolvable:$true] %s5093_s5 }
 0xf64   :  { %s6478_s6 = scalar_lea.vmem %s5094_s5, 32  ;;  %p6483_p3 = scmp.lt.s32.totalorder %s5094_s5, %s5094_s5 }
 0xf65   :  { %v5862_v44 = vpop.f32.mrf.mxu1  ;;  %p6479_p2 = scmp.ne.s32.totalorder %s5094_s5, %s6478_s6  ;;  %p6484_p4 = scmp.lt.s32.totalorder %s6478_s6, %s6478_s6 }
 0xf67   :  { %p6485_p5 = por %p6484_p4, %p6483_p3 }
 0xf69   :  { %p6486_p6 = pnand %p6485_p5, %p6479_p2 }
 0xf82   :  { %v6121_v29 = vpop.permute.xlu0 %6120 }
 0xf83   :  { %v6123_v37 = vunpack.i.h.bf16 %v6121_v29  ;;  %v6122_v52 = vunpack.i.l.bf16 %v6121_v29 }
 0xf85   :  { %v4640_v48 = vsel %vm417_vm2, %v7736_v19, %v6123_v37  ;;  %v4639_v49 = vsel %vm417_vm2, %v7731_v3, %v6122_v52  ;;  %v6202_v37 = vld [vmem:[%s7881_s8 + $0x78] sm:$0xff]   ;;  %v6203_v52 = vld [vmem:[%s7881_s8 + $0x70] sm:$0xff]  }
 0xf8a   :  { %v6126_v46 = vpop.permute.xlu0 %6125 }
 0xf8b   :  { %v6128_v51 = vunpack.i.h.bf16 %v6126_v46  ;;  %v6127_v24 = vunpack.i.l.bf16 %v6126_v46 }
 0xf8d   :  { %v4642_v23 = vsel %vm2228_vm5, %v4640_v48, %v6128_v51  ;;  %v4641_v15 = vsel %vm2228_vm5, %v4639_v49, %v6127_v24  ;;  %v6204_v51 = vld [vmem:[%s7881_s8 + $0x68] sm:$0xff]   ;;  %v6205_v24 = vld [vmem:[%s7881_s8 + $0x60] sm:$0xff]  }
 0xf92   :  { %v6131_v62 = vpop.permute.xlu1 %6130 }
 0xf93   :  { %v6133_v13 = vunpack.i.h.bf16 %v6131_v62  ;;  %v6132_v34 = vunpack.i.l.bf16 %v6131_v62  ;;  %v6201_v62 = vld [vmem:[#allocation10 + $0x20] sm:$0xff]  }
 0xf95   :  { %v4644_v60 = vsel %vm2231_vm6, %v4642_v23, %v6133_v13  ;;  %v4643_v6 = vsel %vm2231_vm6, %v4641_v15, %v6132_v34  ;;  %v6206_v13 = vld [vmem:[%s7881_s8 + $0x58] sm:$0xff]  }
 0xf9a   :  { %v6136_v42 = vpop.permute.xlu0 %6135 }
 0xf9b   :  { %v6138_v9 = vunpack.i.h.bf16 %v6136_v42  ;;  %v6137_v35 = vunpack.i.l.bf16 %v6136_v42  ;;  %v6198_v42 = vld [vmem:[#allocation10 + $0x38] sm:$0xff]  }
 0xf9c   :  { %5876 = vmatpush3.bf16.msra.mxu1 %v6198_v42 }
 0xf9d   :  { %v4646_v50 = vsel %vm2234_vm7, %v4644_v60, %v6138_v9  ;;  %v4645_v5 = vsel %vm2234_vm7, %v4643_v6, %v6137_v35  ;;  %5877 = vmatprep.subr.bf16.mxu1 %v6523_v1 }
 0xfaf   :  { %v6141_v63 = vpop.permute.xlu0 %6140 }
 0xfb0   :  { %v6143_v59 = vunpack.i.h.bf16 %v6141_v63  ;;  %v6142_v57 = vunpack.i.l.bf16 %v6141_v63  ;;  %v6200_v63 = vld [vmem:[#allocation10 + $0x28] sm:$0xff]  }
 0xfb2   :  { %v4648_v61 = vsel %vm2237_vm8, %v4646_v50, %v6143_v59  ;;  %v4647_v3 = vsel %vm2237_vm8, %v4645_v5, %v6142_v57  ;;  %v4757_v57 = vrot.slane %v7783_v32, %v6669_v21  ;;  %v6207_v21 = vld [vmem:[%s7881_s8 + $0x50] sm:$0xff]  }
 0xfb7   :  { %v6146_v27 = vpop.permute.xlu0 %6145 }
 0xfb8   :  { %v6148_v43 = vunpack.i.h.bf16 %v6146_v27  ;;  %v6147_v53 = vunpack.i.l.bf16 %v6146_v27 }
 0xfba   :  { %v4650_v54 = vsel %vm2240_vm9, %v4648_v61, %v6148_v43  ;;  %v4649_v31 = vsel %vm2240_vm9, %v4647_v3, %v6147_v53  ;;  %v4763_v43 = vrot.slane %v7783_v32, %v2356_v47  ;;  %v6208_v47 = vld [vmem:[%s7881_s8 + $0x48] sm:$0xff]   ;;  %v6209_v61 = vld [vmem:[%s7881_s8 + $0x40] sm:$0xff]   ;;  %v5244_v3 = vld [vmem:[#allocation11 + $0x1] ss:$0 sm:$0xff] }
 0xfd4   :  { %v6151_v19 = vpop.permute.xlu0 %6150 }
 0xfd5   :  { %v6153_v25 = vunpack.i.h.bf16 %v6151_v19  ;;  %v6152_v11 = vunpack.i.l.bf16 %v6151_v19 }
 0xfd7   :  { %v4652_v16 = vsel %vm2243_vm10, %v4650_v54, %v6153_v25  ;;  %v4651_v12 = vsel %vm2243_vm10, %v4649_v31, %v6152_v11 }
 0xfd8   :  { %v4653_v30 = vpack.c.bf16 %v4652_v16, %v4651_v12 }
 0xfda   :  { %5872 = vmatmul.mubr.msk.bf16.vlgmr.msra.gmra.mxu0 %vm247_vm0, %v4653_v30 }
 0xfdb   :  { %5903 = vmatprep.mubr.msk.bf16.mxu0 %vm6526_vm1, %v6523_v1  ;;  %5888 = vmatpush3.bf16.msra.mxu0 %v6202_v37  ;;  %v6213_v37 = vld [vmem:[%s7883_s10] sm:$0xff]  }
 0xfdc   :  { %5889 = vmatprep.subr.bf16.mxu0 %v6523_v1 }
 0xfdf   :  { %5890 = vmatpush3.bf16.msra.mxu0 %v6203_v52 }
 0xfe0   :  { %5891 = vmatprep.subr.bf16.mxu0 %v6523_v1 }
 0xfe3   :  { %5892 = vmatpush3.bf16.msra.mxu0 %v6204_v51 }
 0xfe4   :  { %5893 = vmatprep.subr.bf16.mxu0 %v6523_v1 }
 0xfe7   :  { %5894 = vmatpush3.bf16.msra.mxu0 %v6205_v24 }
 0xfe8   :  { %5895 = vmatprep.subr.bf16.mxu0 %v6523_v1 }
 0xfeb   :  { %5896 = vmatpush3.bf16.msra.mxu0 %v6206_v13 }
 0xfec   :  { %5897 = vmatprep.subr.bf16.mxu0 %v6523_v1 }
 0xfef   :  { %5898 = vmatpush3.bf16.msra.mxu0 %v6207_v21 }
 0xff0   :  { %5899 = vmatprep.subr.bf16.mxu0 %v6523_v1 }
 0xff3   :  { %5900 = vmatpush3.bf16.msra.mxu0 %v6208_v47 }
 0xff4   :  { %5901 = vmatprep.subr.bf16.mxu0 %v6523_v1 }
 0xff7   :  { %5902 = vmatpush3.bf16.msra.mxu0 %v6209_v61 }
0x109a   :  { %v4719_v10 = vpop.f32.mrf.mxu0 }
0x109b   :  { %v4720_v28 = vadd.f32 %v4719_v10, %v4657_v33 }
0x109c   :  { %v5873_v36 = vpop.f32.mrf.mxu0 }
0x109d   :  { %v4726_v58 = vadd.f32 %v4720_v28, %v7278_v0  ;;  %v4847_v28 = vrot.slane %v7783_v32, %v2440_v56 }
0x109e   :  { %v4722_v8 = vpop.f32.mrf.mxu0 }
0x109f   :  { %v4723_v45 = vadd.f32 %v4722_v8, %v4657_v33  ;;  %v4728_v14 = vsel %vm247_vm0, %v4726_v58, 0.0 }
0x10a0   :  { %4729 = vadd.xlane.f32.xlu1 %v4728_v14  ;;  %v5874_v41 = vpop.f32.mrf.mxu0 }
0x10a1   :  { %v4727_v38 = vadd.f32 %v4723_v45, %v7280_v7  ;;  %v6199_v7 = vld [vmem:[#allocation10 + $0x30] sm:$0xff]  }
0x10a2   :  { %5878 = vmatpush3.bf16.msra.mxu1 %v6199_v7  ;;  %v6210_v7 = vld [vmem:[%s7883_s10 + $0x18] sm:$0xff]  }
0x10a3   :  { %v4731_v2 = vsel %vm247_vm0, %v4727_v38, 0.0  ;;  %5879 = vmatprep.subr.bf16.mxu1 %v6523_v1 }
0x10a4   :  { %4732 = vadd.xlane.f32.xlu0 %v4731_v2 }
0x10a6   :  { %5880 = vmatpush3.bf16.msra.mxu1 %v6200_v63  ;;  %v6211_v63 = vld [vmem:[%s7883_s10 + $0x10] sm:$0xff]  }
0x10a7   :  { %5881 = vmatprep.subr.bf16.mxu1 %v6523_v1 }
0x10aa   :  { %5882 = vmatpush3.bf16.msra.mxu1 %v6201_v62  ;;  %v6212_v62 = vld [vmem:[%s7883_s10 + $0x8] sm:$0xff]  }
0x10ab   :  { %5907 = vmatprep.subr.bf16.mxu1 %v6523_v1 }
0x1129   :  { %v4730_v26 = vpop.xlane.xlu1 %4729 }
0x112a   :  { %v4734_v20 = vmul.f32 0.015625, %v4730_v26 }
0x112c   :  { %v4736_v39 = vsub.f32 %v4726_v58, %v4734_v20 }
0x112d   :  { %v4733_v18 = vpop.xlane.xlu0 %4732 }
0x112e   :  { %v4735_v40 = vmul.f32 0.015625, %v4733_v18  ;;  %v4738_v22 = vmul.f32 %v4736_v39, %v4736_v39 }
0x1130   :  { %v4737_v44 = vsub.f32 %v4727_v38, %v4735_v40  ;;  %v4740_v0 = vsel %vm247_vm0, %v4738_v22, 0.0 }
0x1131   :  { %4741 = vadd.xlane.f32.xlu0 %v4740_v0 }
0x1132   :  { %v4739_v29 = vmul.f32 %v4737_v44, %v4737_v44 }
0x1134   :  { %v4743_v46 = vsel %vm247_vm0, %v4739_v29, 0.0 }
0x1135   :  { %4744 = vadd.xlane.f32.xlu1 %v4743_v46 }
0x11ba   :  { %v4742_v34 = vpop.xlane.xlu0 %4741 }
0x11bb   :  { %v4746_v27 = vmul.f32 0.015625, %v4742_v34 }
0x11bd   :  { %v4748_v9 = vadd.f32 1e-05, %v4746_v27 }
0x11be   :  { %v4745_v35 = vpop.xlane.xlu1 %4744 }
0x11bf   :  { %6350 = vrsqrt.f32 %v4748_v9  ;;  %v4747_v48 = vmul.f32 0.015625, %v4745_v35  ;;  %v4968_v9 = vrot.slane %v7783_v32, %v2561_v55 }
0x11c1   :  { %v4749_v49 = vadd.f32 1e-05, %v4747_v48  ;;  %v4974_v48 = vrot.slane %v7783_v32, %v2567_v4 }
0x11c3   :  { %6352 = vrsqrt.f32 %v4749_v49 }
0x11cc   :  { %v6351_v59 = vpop.eup %6350 }
0x11cd   :  { %v4752_v23 = vmul.f32 %v6351_v59, %v4736_v39 }
0x11cf   :  { %v4758_v53 = vmul.f32 %v4757_v57, %v4752_v23 }
0x11d0   :  { %v6353_v15 = vpop.eup %6352 }
0x11d1   :  { %v4753_v60 = vmul.f32 %v6353_v15, %v4737_v44  ;;  %v4764_v50 = vadd.f32 %v4763_v43, %v4758_v53 }
0x11d3   :  { %v4759_v6 = vmul.f32 %v4757_v57, %v4753_v60 }
0x11d5   :  { %v4765_v5 = vadd.f32 %v4763_v43, %v4759_v6 }
0x11d7   :  { %v4766_v19 = vpack.c.bf16 %v4765_v5, %v4764_v50 }
0x11d9   :  { %5884 = vmatmul.mubr.msk.bf16.vlgmr.msra.gmra.mxu1 %vm247_vm0, %v4766_v19 }
0x11da   :  { %5915 = vmatprep.mubr.msk.bf16.mxu1 %vm6526_vm1, %v6523_v1  ;;  %5908 = vmatpush3.bf16.msra.mxu1 %v6210_v7 }
0x11db   :  { %5909 = vmatprep.subr.bf16.mxu1 %v6523_v1 }
0x11de   :  { %5910 = vmatpush3.bf16.msra.mxu1 %v6211_v63 }
0x11df   :  { %5911 = vmatprep.subr.bf16.mxu1 %v6523_v1 }
0x11e2   :  { %5912 = vmatpush3.bf16.msra.mxu1 %v6212_v62 }
0x11e3   :  { %5913 = vmatprep.subr.bf16.mxu1 %v6523_v1 }
0x11e6   :  { %5914 = vmatpush3.bf16.msra.mxu1 %v6213_v37 }
0x1299   :  { %v4834_v25 = vpop.f32.mrf.mxu1 }
0x129a   :  { %v4835_v54 = vadd.f32 %v5244_v3, %v4834_v25 }
0x129b   :  { %v5885_v11 = vpop.f32.mrf.mxu1 }
0x129c   :  { %v4841_v30 = vmax.f32 %v4835_v54, 0.0 }
0x129d   :  { %v4837_v31 = vpop.f32.mrf.mxu1 }
0x129e   :  { %v4838_v16 = vadd.f32 %v5244_v3, %v4837_v31 }
0x129f   :  { %v5886_v12 = vpop.f32.mrf.mxu1 }
0x12a0   :  { %v4842_v33 = vmax.f32 %v4838_v16, 0.0 }
0x12a2   :  { %v4843_v10 = vpack.c.bf16 %v4842_v33, %v4841_v30 }
0x12a4   :  { %5904 = vmatmul.mubr.bf16.vlgmr.msra.gmra.mxu0 %v4843_v10  ;;  %v5258_v10 = vld [vmem:[%s7884_s11] ss:$0 sm:$0xff] }
0x1364   :  { %v4930_v36 = vpop.f32.mrf.mxu0 }
0x1365   :  { %v4931_v58 = vadd.f32 %v4930_v36, %v4847_v28 }
0x1366   :  { %v5905_v8 = vpop.f32.mrf.mxu0 }
0x1367   :  { %v4937_v45 = vadd.f32 %v4931_v58, %v4764_v50 }
0x1368   :  { %v4933_v14 = vpop.f32.mrf.mxu0 }
0x1369   :  { %v4934_v41 = vadd.f32 %v4933_v14, %v4847_v28  ;;  %v4939_v38 = vsel %vm247_vm0, %v4937_v45, 0.0 }
0x136a   :  { %4940 = vadd.xlane.f32.xlu0 %v4939_v38  ;;  %v5906_v2 = vpop.f32.mrf.mxu0 }
0x136b   :  { %v4938_v26 = vadd.f32 %v4934_v41, %v4765_v5 }
0x136d   :  { %v4942_v20 = vsel %vm247_vm0, %v4938_v26, 0.0 }
0x136e   :  { %4943 = vadd.xlane.f32.xlu1 %v4942_v20 }
0x13f3   :  { %v4941_v39 = vpop.xlane.xlu0 %4940 }
0x13f4   :  { %v4945_v18 = vmul.f32 0.015625, %v4941_v39 }
0x13f6   :  { %v4947_v40 = vsub.f32 %v4937_v45, %v4945_v18 }
0x13f7   :  { %v4944_v22 = vpop.xlane.xlu1 %4943 }
0x13f8   :  { %v4946_v44 = vmul.f32 0.015625, %v4944_v22  ;;  %v4949_v56 = vmul.f32 %v4947_v40, %v4947_v40 }
0x13fa   :  { %v4948_v0 = vsub.f32 %v4938_v26, %v4946_v44  ;;  %v4951_v29 = vsel %vm247_vm0, %v4949_v56, 0.0 }
0x13fb   :  { %4952 = vadd.xlane.f32.xlu0 %v4951_v29 }
0x13fc   :  { %v4950_v46 = vmul.f32 %v4948_v0, %v4948_v0 }
0x13fe   :  { %v4954_v42 = vsel %vm247_vm0, %v4950_v46, 0.0 }
0x13ff   :  { %4955 = vadd.xlane.f32.xlu1 %v4954_v42 }
0x1484   :  { %v4953_v52 = vpop.xlane.xlu0 %4952 }
0x1485   :  { %v4957_v51 = vmul.f32 0.015625, %v4953_v52 }
0x1487   :  { %v4959_v24 = vadd.f32 1e-05, %v4957_v51 }
0x1488   :  { %v4956_v13 = vpop.xlane.xlu1 %4955 }
0x1489   :  { %6354 = vrsqrt.f32 %v4959_v24  ;;  %v4958_v34 = vmul.f32 0.015625, %v4956_v13 }
0x148b   :  { %v4960_v27 = vadd.f32 1e-05, %v4958_v34 }
0x148d   :  { %6356 = vrsqrt.f32 %v4960_v27 }
0x1496   :  { %v6355_v35 = vpop.eup %6354 }
0x1497   :  { %v4963_v49 = vmul.f32 %v6355_v35, %v4947_v40 }
0x1499   :  { %v4969_v1 = vmul.f32 %v4968_v9, %v4963_v49 }
0x149a   :  { %v6357_v59 = vpop.eup %6356 }
0x149b   :  { %v4975_v57 = vadd.f32 %v4974_v48, %v4969_v1  ;;  %v4964_v23 = vmul.f32 %v6357_v59, %v4948_v0 }
0x149d   :  { %v4977_v15 = vsel %vm247_vm0, %v4975_v57, 0.0  ;;  %v4970_v43 = vmul.f32 %v4968_v9, %v4964_v23 }
0x149e   :  { %v4978_v53 = vrot.slane %v4977_v15, 4 }
0x149f   :  { %v4976_v60 = vadd.f32 %v4974_v48, %v4970_v43 }
0x14a0   :  { %v4979_v6 = vadd.f32 %v4978_v53, %v4977_v15 }
0x14a1   :  { %v4984_v50 = vsel %vm247_vm0, %v4976_v60, 0.0 }
0x14a2   :  { %v4980_v5 = vrot.slane %v4979_v6, 2  ;;  %v4985_v55 = vrot.slane %v4984_v50, 4 }
0x14a4   :  { %v4981_v19 = vadd.f32 %v4980_v5, %v4979_v6  ;;  %v4986_v21 = vadd.f32 %v4985_v55, %v4984_v50 }
0x14a6   :  { %v4987_v17 = vrot.slane %v4986_v21, 2  ;;  %v4982_v47 = vrot.slane %v4981_v19, 1 }
0x14a8   :  { %v4988_v4 = vadd.f32 %v4987_v17, %v4986_v21  ;;  %v4983_v32 = vadd.f32 %v4982_v47, %v4981_v19 }
0x14aa   :  { %v4989_v61 = vrot.slane %v4988_v4, 1  ;;  %v4992_v3 = vmul.f32 0.125, %v4983_v32 }
0x14ac   :  { %v4990_v25 = vadd.f32 %v4989_v61, %v4988_v4  ;;  %v4994_v54 = vpack.c.bf16 %v4992_v3, %v4992_v3 }
0x14ae   :  { %v4993_v11 = vmul.f32 0.125, %v4990_v25  ;;  %v5013_v16 = vunpack.c.l.b16 %v4994_v54 }
0x14b0   :  { %v4995_v31 = vpack.c.bf16 %v4993_v11, %v4993_v11 }
0x14b2   :  { %v5014_v12 = vunpack.c.l.b16 %v4995_v31 }
0x14b4   :  { %v5016_v30 = vsel %vm5015_vm11, %v5014_v12, %v5013_v16 }
0x14b5   :  { %v5017_v33 = vpack.c.b16 %v5016_v30, %v5016_v30 }
0x14b7   :  { %5916 = vmatmul.mubr.msk.bf16.vlgmr.msra.gmra.mxu1 %vm247_vm0, %v5017_v33 }
0x1577   :  { %v5079_v28 = vpop.f32.mrf.mxu1 }
0x1578   :  { %v5080_v36 = vadd.f32 %v5258_v10, %v5079_v28 }
0x1579   :  { %v5917_v58 = vpop.f32.mrf.mxu1 }
0x157a   :  { %5086 = vst.msk [vmem:[#allocation13] sm:$0x3] %vm5085_vm12, %v5080_v36 }
0x157b   :  { %v5082_v8 = vpop.f32.mrf.mxu1 }
0x157c   :  { %6489 = shalt.err (!%p6486_p6)
}
0x157d   :  { %5096 = dma.vmem_to_hbm [thread:$0]  %s5094_s5, 32, %s7885_s12, [#allocation4]   ;;  %v5918_v45 = vpop.f32.mrf.mxu1 }
0x157e   :  { %6506 = dma.done.wait [#allocation4], 32  }
0x157f   :  { %6507 = vsyncadd [#allocation4], 4294967264 }
0x1580   :  { %5100 = vsyncpa [#allocation3], 1 }
0x1581   :  { %5101 = vsyncpa [#allocation6], 1 }
0x1582   :  { %5102 = vsyncpa [#allocation9], 1 }
0x1583   :  { %5103 = vsyncpa [#allocation12], 1 }
0x1584   :  { %5104 = vsyncpa [#allocation4], 1 }

</bundles_post_ra>
